<compile_context>
chip_gen: v7x
topology: tpu7x:2x2x1
jax: 0.10.0
libtpu: 0.0.40
codegen_flags: <defaults>
</compile_context>

<pallas_src>
import functools

import jax
import jax.numpy as jnp
from jax.experimental import pallas as pl
from jax.experimental.pallas import tpu as pltpu


def _round_up(x, m):
    return (x + m - 1) // m * m


# ----------------------------- Pallas kernel --------------------------------

def _fused_matmul_kernel(a_ref, w_ref, bias_ref, o_ref, *, activation):
    """o = act(A @ W + bias). A/W are bf16, accumulate f32, epilogue in f32."""
    acc = jnp.dot(a_ref[...], w_ref[...], preferred_element_type=jnp.float32)
    y = acc + bias_ref[...]
    if activation == "leaky_relu":
        y = jnp.where(y > 0, y, 0.2 * y)
    elif activation == "sigmoid":
        # exp + reciprocal both go to the (otherwise idle) EUP slot.
        y = pl.reciprocal(1.0 + jnp.exp(-y), approx=True)
    o_ref[...] = y.astype(o_ref.dtype)


def fused_matmul(a, w_p, bias_p, activation, out_dtype, tm=256):
    """a:(M,K) bf16 @ w_p:(K,Np) bf16 (BN-scale pre-folded) + bias_p:(1,Np) f32.

    Gridded over M; W/bias stay resident across the grid. Returns (M, Np).
    """
    M, K = a.shape
    Kw, Np = w_p.shape
    assert K == Kw and Np % 128 == 0

    if M > tm:
        Mp = _round_up(M, tm)
        if Mp != M:
            a = jnp.pad(a, ((0, Mp - M), (0, 0)))
        tm_eff = tm
    else:
        # Full-extent block: no M padding needed, (8,128) rule satisfied.
        Mp = M
        tm_eff = M

    out = pl.pallas_call(
        functools.partial(_fused_matmul_kernel, activation=activation),
        out_shape=jax.ShapeDtypeStruct((Mp, Np), out_dtype),
        grid_spec=pltpu.PrefetchScalarGridSpec(
            num_scalar_prefetch=0,
            grid=(Mp // tm_eff,),
            in_specs=[
                pl.BlockSpec((tm_eff, K), lambda i: (i, 0)),   # A tile (pipelined)
                pl.BlockSpec((K, Np), lambda i: (0, 0)),        # W resident
                pl.BlockSpec((1, Np), lambda i: (0, 0)),        # bias resident
            ],
            out_specs=pl.BlockSpec((tm_eff, Np), lambda i: (i, 0)),
        ),
        compiler_params=pltpu.CompilerParams(
            dimension_semantics=("parallel",)),
    )(a, w_p, bias_p)
    return out[:M] if Mp != M else out


# ------------------------------- Glue (JAX) ----------------------------------

def im2col_nhwc(x, k, stride, pad):
    """x: (N,H,W,C) -> (N*Ho*Wo, k*k*C) with column ordering (kh, kw, c)."""
    n, h, w, c = x.shape
    if pad:
        x = jnp.pad(x, ((0, 0), (pad, pad), (pad, pad), (0, 0)))
    ho = (h + 2 * pad - k) // stride + 1
    wo = (w + 2 * pad - k) // stride + 1
    cols = [
        x[:, kh:kh + stride * ho:stride, kw:kw + stride * wo:stride, :]
        for kh in range(k) for kw in range(k)
    ]
    cols = jnp.concatenate(cols, axis=-1)            # (N, Ho, Wo, k*k*C)
    return cols.reshape(n * ho * wo, k * k * c), ho, wo


def conv_block(x_nhwc, layer, cout, k, stride, pad, activation, out_dtype):
    """Conv2d(bias=False) + folded-BN bias + activation. x: NHWC bf16."""
    n = x_nhwc.shape[0]
    cols, ho, wo = im2col_nhwc(x_nhwc, k, stride, pad)
    out = fused_matmul(cols, layer["w"], layer["b"], activation, out_dtype)
    return out[:, :cout].reshape(n, ho, wo, cout)


# -------------------------- Parameter preparation ----------------------------

def prepare_layer(w_oihw, scale, bias):
    """Fold BN scale into the weight, reorder OIHW -> (kh*kw*cin, cout),
    pad cout to a lane-dense multiple of 128, cast to bf16. Done once at init."""
    cout, cin, kh, kw = w_oihw.shape
    w2 = (w_oihw * scale[:, None, None, None]).transpose(2, 3, 1, 0)
    w2 = w2.reshape(kh * kw * cin, cout)
    npad = _round_up(cout, 128)
    w_p = jnp.zeros((kh * kw * cin, npad), jnp.float32).at[:, :cout].set(w2)
    b_p = jnp.zeros((1, npad), jnp.float32).at[:, :cout].set(bias[None, :])
    return {"w": w_p.astype(jnp.bfloat16), "b": b_p}


def init_raw_params(key):
    """PyTorch-style raw parameters (f32 OIHW weights + BN stats)."""
    nc, ndf = 3, 64
    ks = jax.random.split(key, 12)
    p = {}
    p["w1"] = 0.02 * jax.random.normal(ks[0], (ndf, nc, 4, 4), jnp.float32)
    p["w2"] = 0.02 * jax.random.normal(ks[1], (ndf * 2, ndf, 4, 4), jnp.float32)
    p["w3"] = 0.02 * jax.random.normal(ks[2], (ndf * 4, ndf * 2, 4, 4), jnp.float32)
    p["w4"] = 0.02 * jax.random.normal(ks[3], (1, ndf * 4, 4, 4), jnp.float32)

    def bn(kg, kb, km, kv, c):
        return {
            "gamma": 1.0 + 0.1 * jax.random.normal(kg, (c,), jnp.float32),
            "beta": 0.1 * jax.random.normal(kb, (c,), jnp.float32),
            "mean": 0.1 * jax.random.normal(km, (c,), jnp.float32),
            "var": 0.5 + jax.random.uniform(kv, (c,), jnp.float32),
        }

    p["bn2"] = bn(ks[4], ks[5], ks[6], ks[7], ndf * 2)
    p["bn3"] = bn(ks[8], ks[9], ks[10], ks[11], ndf * 4)
    return p


def prepare_params(raw, eps=1e-5):
    def fold(bn):
        scale = bn["gamma"] / jnp.sqrt(bn["var"] + eps)
        return scale, bn["beta"] - bn["mean"] * scale

    ndf = 64
    ones = lambda c: jnp.ones((c,), jnp.float32)
    zeros = lambda c: jnp.zeros((c,), jnp.float32)
    s2, b2 = fold(raw["bn2"])
    s3, b3 = fold(raw["bn3"])
    return {
        "l1": prepare_layer(raw["w1"], ones(ndf), zeros(ndf)),
        "l2": prepare_layer(raw["w2"], s2, b2),
        "l3": prepare_layer(raw["w3"], s3, b3),
        "l4": prepare_layer(raw["w4"], ones(1), zeros(1)),
    }


# --------------------------------- Forward -----------------------------------

@jax.jit
def pneumonia_discriminator_forward(x_nchw, params):
    ndf = 64
    x = x_nchw.transpose(0, 2, 3, 1).astype(jnp.bfloat16)           # NHWC bf16
    # input_layer: Conv(3->64, k4 s2 p1) + LeakyReLU(0.2)
    y = conv_block(x, params["l1"], ndf, 4, 2, 1, "leaky_relu", jnp.bfloat16)
    # hidden1: Conv(64->128, k4 s2 p1) + BN + LeakyReLU(0.2)
    y = conv_block(y, params["l2"], ndf * 2, 4, 2, 1, "leaky_relu", jnp.bfloat16)
    # hidden2: Conv(128->256, k4 s2 p1) + BN + LeakyReLU(0.2)
    y = conv_block(y, params["l3"], ndf * 4, 4, 2, 1, "leaky_relu", jnp.bfloat16)
    # out: Conv(256->1, k4 s1 p0) + Dropout2d (eval: identity) + Sigmoid
    y = conv_block(y, params["l4"], 1, 4, 1, 0, "sigmoid", jnp.float32)
    return y.transpose(0, 3, 1, 2)                                   # back to NCHW


# Pure-JAX f32 reference (eval-mode semantics) for the correctness check.
def ref_forward(x, raw, eps=1e-5):
    def conv(x, w, s, pad):
        return jax.lax.conv_general_dilated(
            x, w, (s, s), [(pad, pad), (pad, pad)],
            dimension_numbers=("NCHW", "OIHW", "NCHW"))

    def bn(x, p):
        scale = p["gamma"] / jnp.sqrt(p["var"] + eps)
        bias = p["beta"] - p["mean"] * scale
        return x * scale[None, :, None, None] + bias[None, :, None, None]

    lrelu = lambda v: jnp.where(v > 0, v, 0.2 * v)
    y = lrelu(conv(x, raw["w1"], 2, 1))
    y = lrelu(bn(conv(y, raw["w2"], 2, 1), raw["bn2"]))
    y = lrelu(bn(conv(y, raw["w3"], 2, 1), raw["bn3"]))
    y = conv(y, raw["w4"], 1, 0)
    return jax.nn.sigmoid(y)


if __name__ == "__main__":
    key = jax.random.PRNGKey(0)
    k_params, k_x = jax.random.split(key)
    raw = init_raw_params(k_params)
    params = prepare_params(raw)

    # Small NCHW input consistent with the module (3 channels); 32x32 so the final
    # k4/s1/p0 conv sees a 4x4 map -> output (2, 1, 1, 1).
    x = jax.random.normal(k_x, (2, 3, 32, 32), jnp.float32)

    out = jax.block_until_ready(pneumonia_discriminator_forward(x, params))
    assert out.shape == (2, 1, 1, 1), out.shape

    ref = jax.block_until_ready(ref_forward(x, raw))
    # bf16 inputs / f32 accumulation vs f32 reference: loose tolerance.
    assert jnp.allclose(out, ref, atol=2e-2, rtol=2e-2), (out, ref)

    print("KERNEL_OK")
</pallas_src>

<mosaic_0001>
module attributes {stable_mosaic.version = 11 : i64} {
  func.func @_fused_matmul_kernel(%arg0: i32, %arg1: memref<256x48xbf16, #tpu.memory_space<vmem>>, %arg2: memref<48x128xbf16, #tpu.memory_space<vmem>>, %arg3: memref<1x128xf32, #tpu.memory_space<vmem>>, %arg4: memref<256x128xbf16, #tpu.memory_space<vmem>>) attributes {dimension_semantics = [#tpu.dimension_semantics<parallel>], iteration_bounds = array<i64: 2>, scalar_prefetch = 0 : i64, scratch_operands = 0 : i64, tpu.core_type = #tpu.core_type<tc>, window_params = [{transform_indices = @transform_0, window_bounds = array<i64: 256, 48>}, {pipeline_mode = #tpu.pipeline_mode<synchronous>, transform_indices = @transform_1, window_bounds = array<i64: 48, 128>}, {pipeline_mode = #tpu.pipeline_mode<synchronous>, transform_indices = @transform_2, window_bounds = array<i64: 1, 128>}, {transform_indices = @transform_3, window_bounds = array<i64: 256, 128>}]} {
    %c0 = arith.constant 0 : index
    %c0_0 = arith.constant 0 : index
    %0 = vector.load %arg1[%c0, %c0_0] : memref<256x48xbf16, #tpu.memory_space<vmem>>, vector<256x48xbf16>
    %c0_1 = arith.constant 0 : index
    %c0_2 = arith.constant 0 : index
    %1 = vector.load %arg2[%c0_1, %c0_2] : memref<48x128xbf16, #tpu.memory_space<vmem>>, vector<48x128xbf16>
    %cst = arith.constant dense<0.000000e+00> : vector<256x128xf32>
    %2 = tpu.matmul %0, %1, %cst {dimension_numbers = #tpu.dot_dimension_numbers<[1], [0], [0], [1], [0, 0, 1, 1], [], []>} : vector<256x48xbf16>, vector<48x128xbf16>, vector<256x128xf32> -> vector<256x128xf32>
    %c0_3 = arith.constant 0 : index
    %c0_4 = arith.constant 0 : index
    %3 = vector.load %arg3[%c0_3, %c0_4] : memref<1x128xf32, #tpu.memory_space<vmem>>, vector<1x128xf32>
    %4 = vector.broadcast %3 : vector<1x128xf32> to vector<256x128xf32>
    %5 = arith.addf %2, %4 : vector<256x128xf32>
    %cst_5 = arith.constant 0.000000e+00 : f32
    %6 = vector.broadcast %cst_5 : f32 to vector<256x128xf32>
    %7 = arith.cmpf ogt, %5, %6 : vector<256x128xf32>
    %cst_6 = arith.constant 2.000000e-01 : f32
    %8 = vector.broadcast %cst_6 : f32 to vector<256x128xf32>
    %9 = arith.mulf %8, %5 : vector<256x128xf32>
    %10 = arith.select %7, %5, %9 : vector<256x128xi1>, vector<256x128xf32>
    %11 = arith.truncf %10 : vector<256x128xf32> to vector<256x128xbf16>
    %c0_7 = arith.constant 0 : index
    %c0_8 = arith.constant 0 : index
    %12 = vector.load %arg4[%c0_7, %c0_8] : memref<256x128xbf16, #tpu.memory_space<vmem>>, vector<256x128xbf16>
    tpu.vector_store %arg4[%c0_7, %c0_8], %11 {strides = array<i32>} : memref<256x128xbf16, #tpu.memory_space<vmem>>, vector<256x128xbf16>,
    return
  }
  func.func @transform_0(%arg0: i32) -> (i32, i32) {
    %c0_i32 = arith.constant 0 : i32
    %c0_i32_0 = arith.constant 0 : i32
    return %arg0, %c0_i32 : i32, i32
  }
  func.func @transform_1(%arg0: i32) -> (i32, i32) {
    %c0_i32 = arith.constant 0 : i32
    %c0_i32_0 = arith.constant 0 : i32
    %c0_i32_1 = arith.constant 0 : i32
    return %c0_i32, %c0_i32_0 : i32, i32
  }
  func.func @transform_2(%arg0: i32) -> (i32, i32) {
    %c0_i32 = arith.constant 0 : i32
    %c0_i32_0 = arith.constant 0 : i32
    %c0_i32_1 = arith.constant 0 : i32
    return %c0_i32, %c0_i32_0 : i32, i32
  }
  func.func @transform_3(%arg0: i32) -> (i32, i32) {
    %c0_i32 = arith.constant 0 : i32
    %c0_i32_0 = arith.constant 0 : i32
    return %arg0, %c0_i32 : i32, i32
  }
}

module attributes {stable_mosaic.version = 11 : i64} {
  func.func @_fused_matmul_kernel(%arg0: i32, %arg1: memref<128x1024xbf16, #tpu.memory_space<vmem>>, %arg2: memref<1024x128xbf16, #tpu.memory_space<vmem>>, %arg3: memref<1x128xf32, #tpu.memory_space<vmem>>, %arg4: memref<128x128xbf16, #tpu.memory_space<vmem>>) attributes {dimension_semantics = [#tpu.dimension_semantics<parallel>], iteration_bounds = array<i64: 1>, scalar_prefetch = 0 : i64, scratch_operands = 0 : i64, tpu.core_type = #tpu.core_type<tc>, window_params = [{transform_indices = @transform_0, window_bounds = array<i64: 128, 1024>}, {pipeline_mode = #tpu.pipeline_mode<synchronous>, transform_indices = @transform_1, window_bounds = array<i64: 1024, 128>}, {pipeline_mode = #tpu.pipeline_mode<synchronous>, transform_indices = @transform_2, window_bounds = array<i64: 1, 128>}, {transform_indices = @transform_3, window_bounds = array<i64: 128, 128>}]} {
    %c0 = arith.constant 0 : index
    %c0_0 = arith.constant 0 : index
    %0 = vector.load %arg1[%c0, %c0_0] : memref<128x1024xbf16, #tpu.memory_space<vmem>>, vector<128x1024xbf16>
    %c0_1 = arith.constant 0 : index
    %c0_2 = arith.constant 0 : index
    %1 = vector.load %arg2[%c0_1, %c0_2] : memref<1024x128xbf16, #tpu.memory_space<vmem>>, vector<1024x128xbf16>
    %cst = arith.constant dense<0.000000e+00> : vector<128x128xf32>
    %2 = tpu.matmul %0, %1, %cst {dimension_numbers = #tpu.dot_dimension_numbers<[1], [0], [0], [1], [0, 0, 1, 1], [], []>} : vector<128x1024xbf16>, vector<1024x128xbf16>, vector<128x128xf32> -> vector<128x128xf32>
    %c0_3 = arith.constant 0 : index
    %c0_4 = arith.constant 0 : index
    %3 = vector.load %arg3[%c0_3, %c0_4] : memref<1x128xf32, #tpu.memory_space<vmem>>, vector<1x128xf32>
    %4 = vector.broadcast %3 : vector<1x128xf32> to vector<128x128xf32>
    %5 = arith.addf %2, %4 : vector<128x128xf32>
    %cst_5 = arith.constant 0.000000e+00 : f32
    %6 = vector.broadcast %cst_5 : f32 to vector<128x128xf32>
    %7 = arith.cmpf ogt, %5, %6 : vector<128x128xf32>
    %cst_6 = arith.constant 2.000000e-01 : f32
    %8 = vector.broadcast %cst_6 : f32 to vector<128x128xf32>
    %9 = arith.mulf %8, %5 : vector<128x128xf32>
    %10 = arith.select %7, %5, %9 : vector<128x128xi1>, vector<128x128xf32>
    %11 = arith.truncf %10 : vector<128x128xf32> to vector<128x128xbf16>
    %c0_7 = arith.constant 0 : index
    %c0_8 = arith.constant 0 : index
    %12 = vector.load %arg4[%c0_7, %c0_8] : memref<128x128xbf16, #tpu.memory_space<vmem>>, vector<128x128xbf16>
    tpu.vector_store %arg4[%c0_7, %c0_8], %11 {strides = array<i32>} : memref<128x128xbf16, #tpu.memory_space<vmem>>, vector<128x128xbf16>,
    return
  }
  func.func @transform_0(%arg0: i32) -> (i32, i32) {
    %c0_i32 = arith.constant 0 : i32
    %c0_i32_0 = arith.constant 0 : i32
    return %arg0, %c0_i32 : i32, i32
  }
  func.func @transform_1(%arg0: i32) -> (i32, i32) {
    %c0_i32 = arith.constant 0 : i32
    %c0_i32_0 = arith.constant 0 : i32
    %c0_i32_1 = arith.constant 0 : i32
    return %c0_i32, %c0_i32_0 : i32, i32
  }
  func.func @transform_2(%arg0: i32) -> (i32, i32) {
    %c0_i32 = arith.constant 0 : i32
    %c0_i32_0 = arith.constant 0 : i32
    %c0_i32_1 = arith.constant 0 : i32
    return %c0_i32, %c0_i32_0 : i32, i32
  }
  func.func @transform_3(%arg0: i32) -> (i32, i32) {
    %c0_i32 = arith.constant 0 : i32
    %c0_i32_0 = arith.constant 0 : i32
    return %arg0, %c0_i32 : i32, i32
  }
}

module attributes {stable_mosaic.version = 11 : i64} {
  func.func @_fused_matmul_kernel(%arg0: i32, %arg1: memref<32x2048xbf16, #tpu.memory_space<vmem>>, %arg2: memref<2048x256xbf16, #tpu.memory_space<vmem>>, %arg3: memref<1x256xf32, #tpu.memory_space<vmem>>, %arg4: memref<32x256xbf16, #tpu.memory_space<vmem>>) attributes {dimension_semantics = [#tpu.dimension_semantics<parallel>], iteration_bounds = array<i64: 1>, scalar_prefetch = 0 : i64, scratch_operands = 0 : i64, tpu.core_type = #tpu.core_type<tc>, window_params = [{transform_indices = @transform_0, window_bounds = array<i64: 32, 2048>}, {pipeline_mode = #tpu.pipeline_mode<synchronous>, transform_indices = @transform_1, window_bounds = array<i64: 2048, 256>}, {pipeline_mode = #tpu.pipeline_mode<synchronous>, transform_indices = @transform_2, window_bounds = array<i64: 1, 256>}, {transform_indices = @transform_3, window_bounds = array<i64: 32, 256>}]} {
    %c0 = arith.constant 0 : index
    %c0_0 = arith.constant 0 : index
    %0 = vector.load %arg1[%c0, %c0_0] : memref<32x2048xbf16, #tpu.memory_space<vmem>>, vector<32x2048xbf16>
    %c0_1 = arith.constant 0 : index
    %c0_2 = arith.constant 0 : index
    %1 = vector.load %arg2[%c0_1, %c0_2] : memref<2048x256xbf16, #tpu.memory_space<vmem>>, vector<2048x256xbf16>
    %cst = arith.constant dense<0.000000e+00> : vector<32x256xf32>
    %2 = tpu.matmul %0, %1, %cst {dimension_numbers = #tpu.dot_dimension_numbers<[1], [0], [0], [1], [0, 0, 1, 1], [], []>} : vector<32x2048xbf16>, vector<2048x256xbf16>, vector<32x256xf32> -> vector<32x256xf32>
    %c0_3 = arith.constant 0 : index
    %c0_4 = arith.constant 0 : index
    %3 = vector.load %arg3[%c0_3, %c0_4] : memref<1x256xf32, #tpu.memory_space<vmem>>, vector<1x256xf32>
    %4 = vector.broadcast %3 : vector<1x256xf32> to vector<32x256xf32>
    %5 = arith.addf %2, %4 : vector<32x256xf32>
    %cst_5 = arith.constant 0.000000e+00 : f32
    %6 = vector.broadcast %cst_5 : f32 to vector<32x256xf32>
    %7 = arith.cmpf ogt, %5, %6 : vector<32x256xf32>
    %cst_6 = arith.constant 2.000000e-01 : f32
    %8 = vector.broadcast %cst_6 : f32 to vector<32x256xf32>
    %9 = arith.mulf %8, %5 : vector<32x256xf32>
    %10 = arith.select %7, %5, %9 : vector<32x256xi1>, vector<32x256xf32>
    %11 = arith.truncf %10 : vector<32x256xf32> to vector<32x256xbf16>
    %c0_7 = arith.constant 0 : index
    %c0_8 = arith.constant 0 : index
    %12 = vector.load %arg4[%c0_7, %c0_8] : memref<32x256xbf16, #tpu.memory_space<vmem>>, vector<32x256xbf16>
    tpu.vector_store %arg4[%c0_7, %c0_8], %11 {strides = array<i32>} : memref<32x256xbf16, #tpu.memory_space<vmem>>, vector<32x256xbf16>,
    return
  }
  func.func @transform_0(%arg0: i32) -> (i32, i32) {
    %c0_i32 = arith.constant 0 : i32
    %c0_i32_0 = arith.constant 0 : i32
    return %arg0, %c0_i32 : i32, i32
  }
  func.func @transform_1(%arg0: i32) -> (i32, i32) {
    %c0_i32 = arith.constant 0 : i32
    %c0_i32_0 = arith.constant 0 : i32
    %c0_i32_1 = arith.constant 0 : i32
    return %c0_i32, %c0_i32_0 : i32, i32
  }
  func.func @transform_2(%arg0: i32) -> (i32, i32) {
    %c0_i32 = arith.constant 0 : i32
    %c0_i32_0 = arith.constant 0 : i32
    %c0_i32_1 = arith.constant 0 : i32
    return %c0_i32, %c0_i32_0 : i32, i32
  }
  func.func @transform_3(%arg0: i32) -> (i32, i32) {
    %c0_i32 = arith.constant 0 : i32
    %c0_i32_0 = arith.constant 0 : i32
    return %arg0, %c0_i32 : i32, i32
  }
}

module attributes {stable_mosaic.version = 11 : i64} {
  func.func @_fused_matmul_kernel(%arg0: i32, %arg1: memref<2x4096xbf16, #tpu.memory_space<vmem>>, %arg2: memref<4096x128xbf16, #tpu.memory_space<vmem>>, %arg3: memref<1x128xf32, #tpu.memory_space<vmem>>, %arg4: memref<2x128xf32, #tpu.memory_space<vmem>>) attributes {dimension_semantics = [#tpu.dimension_semantics<parallel>], iteration_bounds = array<i64: 1>, scalar_prefetch = 0 : i64, scratch_operands = 0 : i64, tpu.core_type = #tpu.core_type<tc>, window_params = [{transform_indices = @transform_0, window_bounds = array<i64: 2, 4096>}, {pipeline_mode = #tpu.pipeline_mode<synchronous>, transform_indices = @transform_1, window_bounds = array<i64: 4096, 128>}, {pipeline_mode = #tpu.pipeline_mode<synchronous>, transform_indices = @transform_2, window_bounds = array<i64: 1, 128>}, {transform_indices = @transform_3, window_bounds = array<i64: 2, 128>}]} {
    %c0 = arith.constant 0 : index
    %c0_0 = arith.constant 0 : index
    %0 = vector.load %arg1[%c0, %c0_0] : memref<2x4096xbf16, #tpu.memory_space<vmem>>, vector<2x4096xbf16>
    %c0_1 = arith.constant 0 : index
    %c0_2 = arith.constant 0 : index
    %1 = vector.load %arg2[%c0_1, %c0_2] : memref<4096x128xbf16, #tpu.memory_space<vmem>>, vector<4096x128xbf16>
    %cst = arith.constant dense<0.000000e+00> : vector<2x128xf32>
    %2 = tpu.matmul %0, %1, %cst {dimension_numbers = #tpu.dot_dimension_numbers<[1], [0], [0], [1], [0, 0, 1, 1], [], []>} : vector<2x4096xbf16>, vector<4096x128xbf16>, vector<2x128xf32> -> vector<2x128xf32>
    %c0_3 = arith.constant 0 : index
    %c0_4 = arith.constant 0 : index
    %3 = vector.load %arg3[%c0_3, %c0_4] : memref<1x128xf32, #tpu.memory_space<vmem>>, vector<1x128xf32>
    %4 = vector.broadcast %3 : vector<1x128xf32> to vector<2x128xf32>
    %5 = arith.addf %2, %4 : vector<2x128xf32>
    %cst_5 = arith.constant 0.000000e+00 : f32
    %6 = vector.broadcast %cst_5 : f32 to vector<2x128xf32>
    %7 = arith.subf %6, %5 : vector<2x128xf32>
    %8 = math.exp %7 : vector<2x128xf32>
    %cst_6 = arith.constant 1.000000e+00 : f32
    %9 = vector.broadcast %cst_6 : f32 to vector<2x128xf32>
    %10 = arith.addf %9, %8 : vector<2x128xf32>
    %11 = tpu.reciprocal %10 {approx = true} : vector<2x128xf32> -> vector<2x128xf32>
    %c0_7 = arith.constant 0 : index
    %c0_8 = arith.constant 0 : index
    %12 = vector.load %arg4[%c0_7, %c0_8] : memref<2x128xf32, #tpu.memory_space<vmem>>, vector<2x128xf32>
    tpu.vector_store %arg4[%c0_7, %c0_8], %11 {strides = array<i32>} : memref<2x128xf32, #tpu.memory_space<vmem>>, vector<2x128xf32>,
    return
  }
  func.func @transform_0(%arg0: i32) -> (i32, i32) {
    %c0_i32 = arith.constant 0 : i32
    %c0_i32_0 = arith.constant 0 : i32
    return %arg0, %c0_i32 : i32, i32
  }
  func.func @transform_1(%arg0: i32) -> (i32, i32) {
    %c0_i32 = arith.constant 0 : i32
    %c0_i32_0 = arith.constant 0 : i32
    %c0_i32_1 = arith.constant 0 : i32
    return %c0_i32, %c0_i32_0 : i32, i32
  }
  func.func @transform_2(%arg0: i32) -> (i32, i32) {
    %c0_i32 = arith.constant 0 : i32
    %c0_i32_0 = arith.constant 0 : i32
    %c0_i32_1 = arith.constant 0 : i32
    return %c0_i32, %c0_i32_0 : i32, i32
  }
  func.func @transform_3(%arg0: i32) -> (i32, i32) {
    %c0_i32 = arith.constant 0 : i32
    %c0_i32_0 = arith.constant 0 : i32
    return %arg0, %c0_i32 : i32, i32
  }
}

</mosaic_0001>

<bundles_post_ra>
// kernel: pneumonia_discriminator_forward.4
= control target key start
LH: loop header
LB: loop body
LE: loop exit
PB: predicated region body
PF: predicated region fallthrough
CT: control target
= control target key end

     0   :  { %s1164_s12 = smov 0   ;;  %s1292_s0 = inlined_call_operand.vmem [shape: bf16[512,48], index: 0, kind: input, shape index: {}]   ;;  %s1293_s1 = inlined_call_operand.vmem [shape: bf16[48,128], index: 1, kind: input, shape index: {}]   ;;  %s1294_s2 = inlined_call_operand.vmem [shape: f32[1,128], index: 2, kind: input, shape index: {}]   ;;  %s1295_s3 = inlined_call_operand.vmem [shape: bf16[512,128], index: 3, kind: output, shape index: {}]  }
   0x1 LB: > { %s840_s13 = sadd.s32 4294967295, %s1142_s12   ;;  %p844_p0 = scmp.ge.s32.totalorder %s1142_s12, 1  ;;  %s1142_s12 = sphi %s1164_s12, %s13_s12  }
   0x2   : > { %p138_p1 = scmp.lt.s32.totalorder %s1142_s12, 3 }
   0x4   : > { %p139_p2 = pnand %p844_p0, %p138_p1 }
   0x5   : > { %v1117_v0 = vld [vmem:[%s1293_s1] sm:$0xff] (!%p139_p2)   ;;  %s845_s16 = sshll.u32 (!%p139_p2), %s840_s13, 5  ;;  %v1118_v1 = vld [vmem:[%s1293_s1 + $0x8] sm:$0xff] (!%p139_p2)   ;;  %v1119_v2 = vld [vmem:[%s1293_s1 + $0x10] sm:$0xff] (!%p139_p2)   ;;  %vm318_vm0 = vcmask (!%p139_p2), 392192  }
   0x6   : > { %142 = sbr.rel (%p139_p2) target bundleno = 273 (0x111), region = 32  ;;  %p163_p3 = scmp.lt.s32.totalorder (!%p139_p2), %s845_s16, 63  ;;  %1065 = vmatprep.subr.bf16.mxu0 (!%p139_p2), %v1117_v0  ;;  %1103 = vmatprep.subr.bf16.mxu1 (!%p139_p2), %v1117_v0  ;;  %v1226_v19 = vld [vmem:[%s1294_s2] ss:$0 sm:$0xff] (!%p139_p2) }
   0x7   : > { %1066 = vmatpush3.bf16.msra.mxu0 (!%p139_p2), %v1117_v0  ;;  %1106 = vmatpush3.bf16.msra.mxu1 (!%p139_p2), %v1117_v0 }
   0x8   : > { %1067 = vmatprep.subr.bf16.mxu0 (!%p139_p2), %v1118_v1  ;;  %1104 = vmatprep.subr.bf16.mxu1 (!%p139_p2), %v1118_v1 }
   0xb   : > { %1068 = vmatpush3.bf16.msra.mxu0 (!%p139_p2), %v1118_v1  ;;  %1107 = vmatpush3.bf16.msra.mxu1 (!%p139_p2), %v1118_v1 }
   0xc   : > { %1069 = vmatprep.subr.bf16.mxu0 (!%p139_p2), %v1119_v2  ;;  %1105 = vmatprep.subr.bf16.mxu1 (!%p139_p2), %v1119_v2 }
   0xd   : > { %s1297_s16 = smov (!%p163_p3, %s845_s16), 63 }
   0xe   : > { %s846_s21 = sshll.u32 %s1297_s16, 2 }
   0xf   : > { %s1189_s24 = scalar_lea.vmem %s1292_s0, %s846_s21  ;;  %1070 = vmatpush3.bf16.msra.mxu0 %v1119_v2  ;;  %1108 = vmatpush3.bf16.msra.mxu1 %v1119_v2  ;;  %s1243_s29 = scalar_lea.vmem %s1295_s3, %s846_s21 }
  0x10   : > { %v1120_v3 = vld [vmem:[%s1189_s24] sm:$0xff]   ;;  %v1122_v5 = vld [vmem:[%s1189_s24 + $0x8] sm:$0xff]   ;;  %v1124_v7 = vld [vmem:[%s1189_s24 + $0x10] sm:$0xff]  }
  0x11   : > { %v1121_v4 = vld [vmem:[%s1189_s24 + $0x40] sm:$0xff]   ;;  %1071 = vmatprep.mubr.msk.bf16.mxu0 %vm318_vm0, %v1120_v3  ;;  %v1123_v6 = vld [vmem:[%s1189_s24 + $0x48] sm:$0xff]   ;;  %v1125_v8 = vld [vmem:[%s1189_s24 + $0x50] sm:$0xff]  }
  0x12   : > { %1087 = vmatprep.mubr.msk.bf16.mxu1 %vm318_vm0, %v1121_v4  ;;  %1072 = vmatmul.mubr.msk.bf16.vlgmr.msra.gmra.mrb[0].mxu0 %vm318_vm0, %v1122_v5  ;;  %v1126_v9 = vld [vmem:[%s1189_s24 + $0x18] sm:$0xff]   ;;  %v1128_v11 = vld [vmem:[%s1189_s24 + $0x20] sm:$0xff]   ;;  %v1130_v13 = vld [vmem:[%s1189_s24 + $0x28] sm:$0xff]  }
  0x13   : > { %1088 = vmatmul.mubr.msk.bf16.vlgmr.msra.gmra.mrb[0].mxu1 %vm318_vm0, %v1123_v6  ;;  %1075 = vmatprep.mubr.msk.bf16.mxu0 %vm318_vm0, %v1124_v7  ;;  %v1127_v10 = vld [vmem:[%s1189_s24 + $0x58] sm:$0xff]   ;;  %v1129_v12 = vld [vmem:[%s1189_s24 + $0x60] sm:$0xff]   ;;  %v1131_v14 = vld [vmem:[%s1189_s24 + $0x68] sm:$0xff]  }
  0x14   : > { %1091 = vmatprep.mubr.msk.bf16.mxu1 %vm318_vm0, %v1125_v8  ;;  %v1132_v15 = vld [vmem:[%s1189_s24 + $0x30] sm:$0xff]   ;;  %v1134_v17 = vld [vmem:[%s1189_s24 + $0x38] sm:$0xff]  }
  0x15   : > { %v1133_v16 = vld [vmem:[%s1189_s24 + $0x70] sm:$0xff]   ;;  %v1135_v18 = vld [vmem:[%s1189_s24 + $0x78] sm:$0xff]  }
  0x1a   : > { %1076 = vmatmul.mubr.msk.bf16.gmra.mrb[4].mxu0 %vm318_vm0, %v1126_v9 }
  0x1b   : > { %1092 = vmatmul.mubr.msk.bf16.gmra.mrb[4].mxu1 %vm318_vm0, %v1127_v10  ;;  %1079 = vmatprep.mubr.msk.bf16.mxu0 %vm318_vm0, %v1128_v11 }
  0x1c   : > { %1095 = vmatprep.mubr.msk.bf16.mxu1 %vm318_vm0, %v1129_v12 }
  0x22   : > { %1080 = vmatmul.mubr.msk.bf16.gmra.mrb[8].mxu0 %vm318_vm0, %v1130_v13 }
  0x23   : > { %1096 = vmatmul.mubr.msk.bf16.gmra.mrb[8].mxu1 %vm318_vm0, %v1131_v14  ;;  %1083 = vmatprep.mubr.msk.bf16.mxu0 %vm318_vm0, %v1132_v15 }
  0x24   : > { %1099 = vmatprep.mubr.msk.bf16.mxu1 %vm318_vm0, %v1133_v16 }
  0x2a   : > { %1084 = vmatmul.mubr.msk.bf16.gmra.mrb[12].mxu0 %vm318_vm0, %v1134_v17 }
  0x2b   : > { %1100 = vmatmul.mubr.msk.bf16.gmra.mrb[12].mxu1 %vm318_vm0, %v1135_v18 }
  0xe5   : > { %v1073_v20 = vpop.f32.mrb[0].mxu0 }
  0xe6   : > { %v1089_v21 = vpop.f32.mrb[0].mxu1  ;;  %v410_v22 = vadd.f32 %v1073_v20, %v1226_v19  ;;  %v401_v24 = vpop.f32.mrb[1].mxu0 }
  0xe7   : > { %v474_v23 = vadd.f32 %v1089_v21, %v1226_v19  ;;  %v465_v25 = vpop.f32.mrb[1].mxu1  ;;  %v402_v26 = vadd.f32 %v1226_v19, %v401_v24  ;;  %v1074_v28 = vpop.f32.mrb[2].mxu0 }
  0xe8   : > { %v466_v27 = vadd.f32 %v1226_v19, %v465_v25  ;;  %v1090_v29 = vpop.f32.mrb[2].mxu1  ;;  %vm530_vm1 = vcmp.gt.f32.partialorder %v410_v22, 0.0  ;;  %v562_v30 = vmul.f32 0.2, %v410_v22  ;;  %v413_v34 = vadd.f32 %v1074_v28, %v1226_v19  ;;  %v404_v36 = vpop.f32.mrb[3].mxu0 }
  0xe9   : > { %vm546_vm2 = vcmp.gt.f32.partialorder %v474_v23, 0.0  ;;  %v578_v31 = vmul.f32 0.2, %v474_v23  ;;  %vm528_vm3 = vcmp.gt.f32.partialorder %v402_v26, 0.0  ;;  %v560_v32 = vmul.f32 0.2, %v402_v26 }
  0xea   : > { %vm544_vm4 = vcmp.gt.f32.partialorder %v466_v27, 0.0  ;;  %v576_v33 = vmul.f32 0.2, %v466_v27  ;;  %v477_v35 = vadd.f32 %v1090_v29, %v1226_v19  ;;  %v468_v37 = vpop.f32.mrb[3].mxu1  ;;  %v594_v38 = vsel %vm530_vm1, %v410_v22, %v562_v30 }
  0xeb   : > { %v610_v39 = vsel %vm546_vm2, %v474_v23, %v578_v31  ;;  %v405_v40 = vadd.f32 %v1226_v19, %v404_v36  ;;  %v469_v41 = vadd.f32 %v1226_v19, %v468_v37  ;;  %vm531_vm5 = vcmp.gt.f32.partialorder %v413_v34, 0.0 }
  0xec   : > { %v563_v42 = vmul.f32 0.2, %v413_v34  ;;  %vm547_vm6 = vcmp.gt.f32.partialorder %v477_v35, 0.0  ;;  %v579_v43 = vmul.f32 0.2, %v477_v35  ;;  %v592_v46 = vsel %vm528_vm3, %v402_v26, %v560_v32 }
  0xed   : > { %vm529_vm7 = vcmp.gt.f32.partialorder %v405_v40, 0.0  ;;  %v561_v44 = vmul.f32 0.2, %v405_v40  ;;  %vm545_vm8 = vcmp.gt.f32.partialorder %v469_v41, 0.0  ;;  %v577_v45 = vmul.f32 0.2, %v469_v41 }
  0xee   : > { %v608_v47 = vsel %vm544_vm4, %v466_v27, %v576_v33  ;;  %v595_v48 = vsel %vm531_vm5, %v413_v34, %v563_v42  ;;  %v611_v49 = vsel %vm547_vm6, %v477_v35, %v579_v43  ;;  %v1077_v50 = vpop.f32.mrb[4].mxu0  ;;  %v1093_v51 = vpop.f32.mrb[4].mxu1 }
  0xef   : > { %v959_v52 = vpack.c.bf16 %v595_v48, %v594_v38  ;;  %v999_v53 = vpack.c.bf16 %v611_v49, %v610_v39  ;;  %v593_v54 = vsel %vm529_vm7, %v405_v40, %v561_v44  ;;  %v609_v55 = vsel %vm545_vm8, %v469_v41, %v577_v45  ;;  %v417_v56 = vpop.f32.mrb[5].mxu0  ;;  %v481_v57 = vpop.f32.mrb[5].mxu1 }
  0xf0   : > { %v954_v58 = vpack.c.bf16 %v593_v54, %v592_v46  ;;  %v994_v59 = vpack.c.bf16 %v609_v55, %v608_v47  ;;  %v426_v60 = vadd.f32 %v1077_v50, %v1226_v19  ;;  %v490_v61 = vadd.f32 %v1093_v51, %v1226_v19  ;;  %v1078_v62 = vpop.f32.mrb[6].mxu0  ;;  %v1094_v63 = vpop.f32.mrb[6].mxu1 }
  0xf1   : > { %1031 = vst [vmem:[%s1243_s29 + $0x8] sm:$0xff] %v959_v52   ;;  %1039 = vst [vmem:[%s1243_s29 + $0x48] sm:$0xff] %v999_v53   ;;  %v418_v0 = vadd.f32 %v1226_v19, %v417_v56  ;;  %v482_v1 = vadd.f32 %v1226_v19, %v481_v57  ;;  %v429_v2 = vadd.f32 %v1078_v62, %v1226_v19  ;;  %v420_v4 = vpop.f32.mrb[7].mxu0  ;;  %v484_v5 = vpop.f32.mrb[7].mxu1 }
  0xf2   : > { %v493_v3 = vadd.f32 %v1094_v63, %v1226_v19  ;;  %955 = vst [vmem:[%s1243_s29] sm:$0xff] %v954_v58   ;;  %1038 = vst [vmem:[%s1243_s29 + $0x40] sm:$0xff] %v994_v59   ;;  %vm534_vm9 = vcmp.gt.f32.partialorder %v426_v60, 0.0  ;;  %v566_v6 = vmul.f32 0.2, %v426_v60  ;;  %vm550_vm10 = vcmp.gt.f32.partialorder %v490_v61, 0.0 }
  0xf3   : > { %v582_v7 = vmul.f32 0.2, %v490_v61  ;;  %vm532_vm11 = vcmp.gt.f32.partialorder %v418_v0, 0.0  ;;  %v564_v8 = vmul.f32 0.2, %v418_v0  ;;  %vm548_vm12 = vcmp.gt.f32.partialorder %v482_v1, 0.0 }
  0xf4   : > { %v598_v9 = vsel %vm534_vm9, %v426_v60, %v566_v6  ;;  %v580_v10 = vmul.f32 0.2, %v482_v1  ;;  %vm535_vm13 = vcmp.gt.f32.partialorder %v429_v2, 0.0  ;;  %v567_v11 = vmul.f32 0.2, %v429_v2 }
  0xf5   : > { %v614_v12 = vsel %vm550_vm10, %v490_v61, %v582_v7  ;;  %v596_v13 = vsel %vm532_vm11, %v418_v0, %v564_v8  ;;  %vm551_vm14 = vcmp.gt.f32.partialorder %v493_v3, 0.0  ;;  %v583_v14 = vmul.f32 0.2, %v493_v3  ;;  %v1081_v15 = vpop.f32.mrb[8].mxu0 }
  0xf6   : > { %v1097_v16 = vpop.f32.mrb[8].mxu1  ;;  %v599_v17 = vsel %vm535_vm13, %v429_v2, %v567_v11  ;;  %v421_v18 = vadd.f32 %v1226_v19, %v420_v4  ;;  %v485_v20 = vadd.f32 %v1226_v19, %v484_v5  ;;  %v442_v21 = vadd.f32 %v1081_v15, %v1226_v19  ;;  %v433_v22 = vpop.f32.mrb[9].mxu0 }
  0xf7   : > { %v497_v23 = vpop.f32.mrb[9].mxu1  ;;  %v969_v24 = vpack.c.bf16 %v599_v17, %v598_v9  ;;  %v615_v25 = vsel %vm551_vm14, %v493_v3, %v583_v14  ;;  %v506_v26 = vadd.f32 %v1097_v16, %v1226_v19  ;;  %v434_v27 = vadd.f32 %v1226_v19, %v433_v22  ;;  %v1082_v28 = vpop.f32.mrb[10].mxu0 }
  0xf8   : > { %v1098_v29 = vpop.f32.mrb[10].mxu1  ;;  %v1009_v30 = vpack.c.bf16 %v615_v25, %v614_v12  ;;  %vm533_vm15 = vcmp.gt.f32.partialorder %v421_v18, 0.0  ;;  %v565_v31 = vmul.f32 0.2, %v421_v18  ;;  %vm549_vm0 = vcmp.gt.f32.partialorder %v485_v20, 0.0  ;;  %v436_v32 = vpop.f32.mrb[11].mxu0 }
  0xf9   : > { %v500_v33 = vpop.f32.mrb[11].mxu1  ;;  %1033 = vst [vmem:[%s1243_s29 + $0x18] sm:$0xff] %v969_v24   ;;  %v581_v34 = vmul.f32 0.2, %v485_v20  ;;  %vm538_vm1 = vcmp.gt.f32.partialorder %v442_v21, 0.0  ;;  %vm554_vm2 = vcmp.gt.f32.partialorder %v506_v26, 0.0  ;;  %v612_v36 = vsel %vm548_vm12, %v482_v1, %v580_v10 }
  0xfa   : > { %v570_v35 = vmul.f32 0.2, %v442_v21  ;;  %1041 = vst [vmem:[%s1243_s29 + $0x58] sm:$0xff] %v1009_v30   ;;  %v597_v37 = vsel %vm533_vm15, %v421_v18, %v565_v31  ;;  %v586_v38 = vmul.f32 0.2, %v506_v26  ;;  %vm536_vm3 = vcmp.gt.f32.partialorder %v434_v27, 0.0 }
  0xfb   : > { %v964_v39 = vpack.c.bf16 %v597_v37, %v596_v13  ;;  %v613_v40 = vsel %vm549_vm0, %v485_v20, %v581_v34  ;;  %v568_v41 = vmul.f32 0.2, %v434_v27  ;;  %v498_v42 = vadd.f32 %v1226_v19, %v497_v23 }
  0xfc   : > { %v1004_v43 = vpack.c.bf16 %v613_v40, %v612_v36  ;;  %v602_v44 = vsel %vm538_vm1, %v442_v21, %v570_v35  ;;  %v618_v45 = vsel %vm554_vm2, %v506_v26, %v586_v38  ;;  %v445_v46 = vadd.f32 %v1082_v28, %v1226_v19 }
  0xfd   : > { %1032 = vst [vmem:[%s1243_s29 + $0x10] sm:$0xff] %v964_v39   ;;  %vm552_vm4 = vcmp.gt.f32.partialorder %v498_v42, 0.0  ;;  %v584_v47 = vmul.f32 0.2, %v498_v42  ;;  %v509_v48 = vadd.f32 %v1098_v29, %v1226_v19  ;;  %v437_v49 = vadd.f32 %v1226_v19, %v436_v32  ;;  %v1085_v50 = vpop.f32.mrb[12].mxu0 }
  0xfe   : > { %v1101_v51 = vpop.f32.mrb[12].mxu1  ;;  %1040 = vst [vmem:[%s1243_s29 + $0x50] sm:$0xff] %v1004_v43   ;;  %vm539_vm5 = vcmp.gt.f32.partialorder %v445_v46, 0.0  ;;  %v571_v52 = vmul.f32 0.2, %v445_v46  ;;  %v501_v53 = vadd.f32 %v1226_v19, %v500_v33  ;;  %v458_v54 = vadd.f32 %v1085_v50, %v1226_v19  ;;  %v449_v55 = vpop.f32.mrb[13].mxu0 }
  0xff   : > { %v513_v56 = vpop.f32.mrb[13].mxu1  ;;  %v600_v57 = vsel %vm536_vm3, %v434_v27, %v568_v41  ;;  %vm555_vm6 = vcmp.gt.f32.partialorder %v509_v48, 0.0  ;;  %v587_v58 = vmul.f32 0.2, %v509_v48  ;;  %vm537_vm7 = vcmp.gt.f32.partialorder %v437_v49, 0.0  ;;  %v1086_v59 = vpop.f32.mrb[14].mxu0 }
 0x100   : > { %v1102_v60 = vpop.f32.mrb[14].mxu1  ;;  %v603_v61 = vsel %vm539_vm5, %v445_v46, %v571_v52  ;;  %v569_v62 = vmul.f32 0.2, %v437_v49  ;;  %vm553_vm8 = vcmp.gt.f32.partialorder %v501_v53, 0.0  ;;  %v585_v63 = vmul.f32 0.2, %v501_v53 }
 0x101   : > { %v452_v0 = vpop.f32.mrb[15].mxu0  ;;  %v616_v1 = vsel %vm552_vm4, %v498_v42, %v584_v47  ;;  %v979_v2 = vpack.c.bf16 %v603_v61, %v602_v44  ;;  %v619_v3 = vsel %vm555_vm6, %v509_v48, %v587_v58  ;;  %v574_v4 = vmul.f32 0.2, %v458_v54  ;;  %v516_v5 = vpop.f32.mrb[15].mxu1 }
 0x102   : > { %v1019_v6 = vpack.c.bf16 %v619_v3, %v618_v45  ;;  %v601_v7 = vsel %vm537_vm7, %v437_v49, %v569_v62  ;;  %v617_v8 = vsel %vm553_vm8, %v501_v53, %v585_v63  ;;  %v522_v9 = vadd.f32 %v1101_v51, %v1226_v19 }
 0x103   : > { %1035 = vst [vmem:[%s1243_s29 + $0x28] sm:$0xff] %v979_v2   ;;  %v974_v10 = vpack.c.bf16 %v601_v7, %v600_v57  ;;  %v1014_v11 = vpack.c.bf16 %v617_v8, %v616_v1  ;;  %vm542_vm9 = vcmp.gt.f32.partialorder %v458_v54, 0.0  ;;  %v450_v12 = vadd.f32 %v1226_v19, %v449_v55 }
 0x104   : > { %1043 = vst [vmem:[%s1243_s29 + $0x68] sm:$0xff] %v1019_v6   ;;  %vm558_vm10 = vcmp.gt.f32.partialorder %v522_v9, 0.0  ;;  %v590_v13 = vmul.f32 0.2, %v522_v9  ;;  %v514_v14 = vadd.f32 %v1226_v19, %v513_v56  ;;  %v461_v15 = vadd.f32 %v1086_v59, %v1226_v19 }
 0x105   : > { %1034 = vst [vmem:[%s1243_s29 + $0x20] sm:$0xff] %v974_v10   ;;  %1042 = vst [vmem:[%s1243_s29 + $0x60] sm:$0xff] %v1014_v11   ;;  %v572_v16 = vmul.f32 0.2, %v450_v12  ;;  %v525_v17 = vadd.f32 %v1102_v60, %v1226_v19  ;;  %v453_v18 = vadd.f32 %v1226_v19, %v452_v0  ;;  %v606_v20 = vsel %vm542_vm9, %v458_v54, %v574_v4 }
 0x106   : > { %vm540_vm11 = vcmp.gt.f32.partialorder %v450_v12, 0.0  ;;  %vm543_vm12 = vcmp.gt.f32.partialorder %v461_v15, 0.0  ;;  %v622_v21 = vsel %vm558_vm10, %v522_v9, %v590_v13  ;;  %v575_v22 = vmul.f32 0.2, %v461_v15 }
 0x107   : > { %vm559_vm13 = vcmp.gt.f32.partialorder %v525_v17, 0.0  ;;  %v591_v23 = vmul.f32 0.2, %v525_v17  ;;  %vm556_vm14 = vcmp.gt.f32.partialorder %v514_v14, 0.0  ;;  %vm541_vm15 = vcmp.gt.f32.partialorder %v453_v18, 0.0 }
 0x108   : > { %v573_v24 = vmul.f32 0.2, %v453_v18  ;;  %v517_v25 = vadd.f32 %v1226_v19, %v516_v5  ;;  %v604_v26 = vsel %vm540_vm11, %v450_v12, %v572_v16  ;;  %v588_v27 = vmul.f32 0.2, %v514_v14 }
 0x109   : > { %v607_v28 = vsel %vm543_vm12, %v461_v15, %v575_v22  ;;  %v623_v29 = vsel %vm559_vm13, %v525_v17, %v591_v23 }
 0x10a   : > { %v989_v30 = vpack.c.bf16 %v607_v28, %v606_v20  ;;  %v1029_v31 = vpack.c.bf16 %v623_v29, %v622_v21  ;;  %v605_v32 = vsel %vm541_vm15, %v453_v18, %v573_v24  ;;  %vm557_vm0 = vcmp.gt.f32.partialorder %v517_v25, 0.0 }
 0x10b   : > { %v984_v33 = vpack.c.bf16 %v605_v32, %v604_v26  ;;  %v589_v34 = vmul.f32 0.2, %v517_v25  ;;  %v620_v35 = vsel %vm556_vm14, %v514_v14, %v588_v27 }
 0x10c   : > { %1037 = vst [vmem:[%s1243_s29 + $0x38] sm:$0xff] %v989_v30   ;;  %1045 = vst [vmem:[%s1243_s29 + $0x78] sm:$0xff] %v1029_v31  }
 0x10d   : > { %1036 = vst [vmem:[%s1243_s29 + $0x30] sm:$0xff] %v984_v33   ;;  %v621_v36 = vsel %vm557_vm0, %v517_v25, %v589_v34 }
 0x10e   : > { %v1024_v37 = vpack.c.bf16 %v621_v36, %v620_v35 }
 0x110   : > { %1044 = vst [vmem:[%s1243_s29 + $0x70] sm:$0xff] %v1024_v37  }
 0x111 PF: > { %s13_s12 = sadd.s32 1, %s1142_s12  }
 0x112   : > { %p10_p4 = scmp.ge.s32.totalorder %s13_s12, 4  }
 0x114   :  { %12 = sbr.rel (!%p10_p4) target bundleno = 1 (0x1), region = 62 }

// kernel: pneumonia_discriminator_forward.5
= control target key start
LH: loop header
LB: loop body
LE: loop exit
PB: predicated region body
PF: predicated region fallthrough
CT: control target
= control target key end

     0   :  { %s2463_s1 = inlined_call_operand.vmem [shape: bf16[1024,128], index: 1, kind: input, shape index: {}]   ;;  %s2464_s0 = inlined_call_operand.vmem [shape: bf16[128,1024], index: 0, kind: input, shape index: {}]   ;;  %s2465_s2 = inlined_call_operand.vmem [shape: f32[1,128], index: 2, kind: input, shape index: {}]   ;;  %s2466_s3 = inlined_call_operand.vmem [shape: bf16[128,128], index: 3, kind: output, shape index: {}]  }
   0x1   :  { %v1902_v0 = vld [vmem:[%s2463_s1 + $0x40] sm:$0xff]   ;;  %v1906_v4 = vld [vmem:[%s2463_s1 + $0x48] sm:$0xff]   ;;  %v1910_v8 = vld [vmem:[%s2463_s1 + $0x50] sm:$0xff]  }
   0x2   :  { %v1903_v1 = vld [vmem:[%s2463_s1 + $0xc0] sm:$0xff]   ;;  %1646 = vmatprep.subr.bf16.mxu0 %v1902_v0  ;;  %v1907_v5 = vld [vmem:[%s2463_s1 + $0xc8] sm:$0xff]   ;;  %v1911_v9 = vld [vmem:[%s2463_s1 + $0xd0] sm:$0xff]  }
   0x3   :  { %v1904_v2 = vld [vmem:[%s2463_s1] sm:$0xff]   ;;  %1710 = vmatprep.subr.bf16.mxu1 %v1903_v1  ;;  %v1908_v6 = vld [vmem:[%s2463_s1 + $0x8] sm:$0xff]   ;;  %v1912_v10 = vld [vmem:[%s2463_s1 + $0x10] sm:$0xff]  }
   0x4   :  { %v1905_v3 = vld [vmem:[%s2463_s1 + $0x80] sm:$0xff]   ;;  %1647 = vmatpush3.bf16.msra.mxu0 %v1904_v2  ;;  %v1909_v7 = vld [vmem:[%s2463_s1 + $0x88] sm:$0xff]   ;;  %v1913_v11 = vld [vmem:[%s2463_s1 + $0x90] sm:$0xff]  }
   0x5   :  { %1711 = vmatpush3.bf16.msra.mxu1 %v1905_v3  ;;  %1648 = vmatprep.subr.bf16.mxu0 %v1906_v4  ;;  %v1914_v12 = vld [vmem:[%s2463_s1 + $0x58] sm:$0xff]   ;;  %v1918_v16 = vld [vmem:[%s2463_s1 + $0x60] sm:$0xff]   ;;  %v1922_v20 = vld [vmem:[%s2463_s1 + $0x68] sm:$0xff]  }
   0x6   :  { %1712 = vmatprep.subr.bf16.mxu1 %v1907_v5  ;;  %v1915_v13 = vld [vmem:[%s2463_s1 + $0xd8] sm:$0xff]   ;;  %v1919_v17 = vld [vmem:[%s2463_s1 + $0xe0] sm:$0xff]   ;;  %v1923_v21 = vld [vmem:[%s2463_s1 + $0xe8] sm:$0xff]  }
   0x7   :  { %v1916_v14 = vld [vmem:[%s2463_s1 + $0x18] sm:$0xff]   ;;  %v1920_v18 = vld [vmem:[%s2463_s1 + $0x20] sm:$0xff]   ;;  %v1924_v22 = vld [vmem:[%s2463_s1 + $0x28] sm:$0xff]  }
   0x8   :  { %1649 = vmatpush3.bf16.msra.mxu0 %v1908_v6  ;;  %v1917_v15 = vld [vmem:[%s2463_s1 + $0x98] sm:$0xff]   ;;  %v1921_v19 = vld [vmem:[%s2463_s1 + $0xa0] sm:$0xff]   ;;  %v1925_v23 = vld [vmem:[%s2463_s1 + $0xa8] sm:$0xff]  }
   0x9   :  { %1713 = vmatpush3.bf16.msra.mxu1 %v1909_v7  ;;  %1650 = vmatprep.subr.bf16.mxu0 %v1910_v8  ;;  %v1926_v24 = vld [vmem:[%s2463_s1 + $0x70] sm:$0xff]   ;;  %v1930_v28 = vld [vmem:[%s2463_s1 + $0x78] sm:$0xff]   ;;  %v15_v32 = vld [vmem:[%s2464_s0] sm:$0xff] }
   0xa   :  { %1714 = vmatprep.subr.bf16.mxu1 %v1911_v9  ;;  %v1927_v25 = vld [vmem:[%s2463_s1 + $0xf0] sm:$0xff]   ;;  %v1931_v29 = vld [vmem:[%s2463_s1 + $0xf8] sm:$0xff]   ;;  %v19_v33 = vld [vmem:[%s2464_s0 + $0x20] sm:$0xff] }
   0xb   :  { %v1928_v26 = vld [vmem:[%s2463_s1 + $0x30] sm:$0xff]   ;;  %v1932_v30 = vld [vmem:[%s2463_s1 + $0x38] sm:$0xff]   ;;  %v16_v34 = vld [vmem:[%s2464_s0 + $0x8] sm:$0xff]  ;;  %v1439_v35 = vcombine.low %v15_v32, %v19_v33  ;;  %v1440_v36 = vcombine.high %v15_v32, %v19_v33 }
   0xc   :  { %1651 = vmatpush3.bf16.msra.mxu0 %v1912_v10  ;;  %v1929_v27 = vld [vmem:[%s2463_s1 + $0xb0] sm:$0xff]   ;;  %v1933_v31 = vld [vmem:[%s2463_s1 + $0xb8] sm:$0xff]   ;;  %v20_v37 = vld [vmem:[%s2464_s0 + $0x28] sm:$0xff] }
   0xd   :  { %1715 = vmatpush3.bf16.msra.mxu1 %v1913_v11  ;;  %1652 = vmatprep.subr.bf16.mxu0 %v1914_v12  ;;  %v1441_v38 = vcombine.low %v16_v34, %v20_v37  ;;  %v1442_v39 = vcombine.high %v16_v34, %v20_v37  ;;  %v1934_v40 = vld [vmem:[%s2463_s1 + $0x140] sm:$0xff]   ;;  %v24_v47 = vld [vmem:[%s2464_s0 + $0x48] sm:$0xff]  ;;  %v1942_v62 = vld [vmem:[%s2463_s1 + $0x150] sm:$0xff]  }
   0xe   :  { %1716 = vmatprep.subr.bf16.mxu1 %v1915_v13  ;;  %950 = vmatprep.mubr.bf16.mxu0 %v1440_v36  ;;  %v1935_v41 = vld [vmem:[%s2463_s1 + $0x100] sm:$0xff]   ;;  %v28_v48 = vld [vmem:[%s2464_s0 + $0x68] sm:$0xff]  ;;  %v1943_v63 = vld [vmem:[%s2463_s1 + $0x110] sm:$0xff]  }
   0xf   :  { %1047 = vmatprep.mubr.bf16.mxu1 %v1442_v39  ;;  %v1936_v42 = vld [vmem:[%s2463_s1 + $0x1c0] sm:$0xff]   ;;  %v1450_v49 = vcombine.high %v24_v47, %v28_v48  ;;  %v1938_v50 = vld [vmem:[%s2463_s1 + $0x148] sm:$0xff]   ;;  %v1449_v53 = vcombine.low %v24_v47, %v28_v48  ;;  %v1944_v0 = vld [vmem:[%s2463_s1 + $0x1d0] sm:$0xff]  }
  0x10   :  { %1653 = vmatpush3.bf16.msra.mxu0 %v1916_v14  ;;  %v1937_v43 = vld [vmem:[%s2463_s1 + $0x180] sm:$0xff]   ;;  %v1939_v52 = vld [vmem:[%s2463_s1 + $0x108] sm:$0xff]   ;;  %v1945_v1 = vld [vmem:[%s2463_s1 + $0x190] sm:$0xff]  }
  0x11   :  { %1717 = vmatpush3.bf16.msra.mxu1 %v1917_v15  ;;  %1654 = vmatprep.subr.bf16.mxu0 %v1918_v16  ;;  %v23_v44 = vld [vmem:[%s2464_s0 + $0x40] sm:$0xff]  ;;  %v1940_v54 = vld [vmem:[%s2463_s1 + $0x1c8] sm:$0xff]   ;;  %v1946_v10 = vld [vmem:[%s2463_s1 + $0x158] sm:$0xff]  }
  0x12   :  { %1718 = vmatprep.subr.bf16.mxu1 %v1919_v17  ;;  %v27_v45 = vld [vmem:[%s2464_s0 + $0x60] sm:$0xff]  ;;  %v1941_v55 = vld [vmem:[%s2463_s1 + $0x188] sm:$0xff]   ;;  %v1947_v11 = vld [vmem:[%s2463_s1 + $0x118] sm:$0xff]  }
  0x13   :  { %v1448_v46 = vcombine.high %v23_v44, %v27_v45  ;;  %v1447_v51 = vcombine.low %v23_v44, %v27_v45  ;;  %v31_v56 = vld [vmem:[%s2464_s0 + $0x80] sm:$0xff]  ;;  %v32_v58 = vld [vmem:[%s2464_s0 + $0x88] sm:$0xff]  ;;  %v1948_v12 = vld [vmem:[%s2463_s1 + $0x1d8] sm:$0xff]  }
  0x14   :  { %1655 = vmatpush3.bf16.msra.mxu0 %v1920_v18  ;;  %v35_v57 = vld [vmem:[%s2464_s0 + $0xa0] sm:$0xff]  ;;  %v36_v59 = vld [vmem:[%s2464_s0 + $0xa8] sm:$0xff]  ;;  %v1949_v13 = vld [vmem:[%s2463_s1 + $0x198] sm:$0xff]  }
  0x15   :  { %1719 = vmatpush3.bf16.msra.mxu1 %v1921_v19  ;;  %1656 = vmatprep.subr.bf16.mxu0 %v1922_v20  ;;  %v1456_v60 = vcombine.high %v31_v56, %v35_v57  ;;  %v1458_v61 = vcombine.high %v32_v58, %v36_v59  ;;  %v1455_v2 = vcombine.low %v31_v56, %v35_v57  ;;  %v39_v3 = vld [vmem:[%s2464_s0 + $0xc0] sm:$0xff]  ;;  %v40_v5 = vld [vmem:[%s2464_s0 + $0xc8] sm:$0xff]  ;;  %v1959_v39 = vld [vmem:[%s2463_s1 + $0x130] sm:$0xff]  }
  0x16   :  { %1720 = vmatprep.subr.bf16.mxu1 %v1923_v21  ;;  %v43_v4 = vld [vmem:[%s2464_s0 + $0xe0] sm:$0xff]  ;;  %v1457_v6 = vcombine.low %v32_v58, %v36_v59  ;;  %v44_v8 = vld [vmem:[%s2464_s0 + $0xe8] sm:$0xff]  ;;  %v1963_v48 = vld [vmem:[%s2463_s1 + $0x138] sm:$0xff]  }
  0x17   :  { %v1464_v7 = vcombine.high %v39_v3, %v43_v4  ;;  %v1466_v9 = vcombine.high %v40_v5, %v44_v8  ;;  %v47_v14 = vld [vmem:[%s2464_s0 + $0x100] sm:$0xff]  ;;  %v48_v16 = vld [vmem:[%s2464_s0 + $0x108] sm:$0xff]  ;;  %v1463_v19 = vcombine.low %v39_v3, %v43_v4  ;;  %v1465_v21 = vcombine.low %v40_v5, %v44_v8  ;;  %v26_v8 = vld [vmem:[%s2464_s0 + $0x58] sm:$0xff] }
  0x18   :  { %1657 = vmatpush3.bf16.msra.mxu0 %v1924_v22  ;;  %v51_v15 = vld [vmem:[%s2464_s0 + $0x120] sm:$0xff]  ;;  %v52_v17 = vld [vmem:[%s2464_s0 + $0x128] sm:$0xff] }
  0x19   :  { %1721 = vmatpush3.bf16.msra.mxu1 %v1925_v23  ;;  %1658 = vmatprep.subr.bf16.mxu0 %v1926_v24  ;;  %v1950_v18 = vld [vmem:[%s2463_s1 + $0x160] sm:$0xff]   ;;  %v1472_v22 = vcombine.high %v47_v14, %v51_v15  ;;  %v1474_v24 = vcombine.high %v48_v16, %v52_v17  ;;  %v1956_v32 = vld [vmem:[%s2463_s1 + $0x1e8] sm:$0xff]   ;;  %v1471_v34 = vcombine.low %v47_v14, %v51_v15  ;;  %v33_v14 = vld [vmem:[%s2464_s0 + $0x90] sm:$0xff] }
  0x1a   :  { %1722 = vmatprep.subr.bf16.mxu1 %v1927_v25  ;;  %v1951_v20 = vld [vmem:[%s2463_s1 + $0x120] sm:$0xff]   ;;  %v1957_v33 = vld [vmem:[%s2463_s1 + $0x1a8] sm:$0xff]   ;;  %v37_v15 = vld [vmem:[%s2464_s0 + $0xb0] sm:$0xff] }
  0x1b   :  { %v1952_v23 = vld [vmem:[%s2463_s1 + $0x1e0] sm:$0xff]   ;;  %v64_v44 = vld [vmem:[%s2464_s0 + $0x188] sm:$0xff] }
  0x1c   :  { %1659 = vmatpush3.bf16.msra.mxu0 %v1928_v26  ;;  %v1953_v25 = vld [vmem:[%s2463_s1 + $0x1a0] sm:$0xff]   ;;  %v68_v45 = vld [vmem:[%s2464_s0 + $0x1a8] sm:$0xff] }
  0x1d   :  { %1723 = vmatpush3.bf16.msra.mxu1 %v1929_v27  ;;  %1660 = vmatprep.subr.bf16.mxu0 %v1930_v28  ;;  %v55_v26 = vld [vmem:[%s2464_s0 + $0x140] sm:$0xff]  ;;  %v1954_v28 = vld [vmem:[%s2463_s1 + $0x168] sm:$0xff]   ;;  %v1489_v59 = vcombine.low %v64_v44, %v68_v45 }
  0x1e   :  { %1724 = vmatprep.subr.bf16.mxu1 %v1931_v29  ;;  %v59_v27 = vld [vmem:[%s2464_s0 + $0x160] sm:$0xff]  ;;  %v56_v29 = vld [vmem:[%s2464_s0 + $0x148] sm:$0xff] }
  0x1f   :  { %v1480_v36 = vcombine.high %v55_v26, %v59_v27  ;;  %v1479_v47 = vcombine.low %v55_v26, %v59_v27  ;;  %v72_v56 = vld [vmem:[%s2464_s0 + $0x1c8] sm:$0xff]  ;;  %v1459_v26 = vcombine.low %v33_v14, %v37_v15 }
  0x20   :  { %1661 = vmatpush3.bf16.msra.mxu0 %v1932_v30  ;;  %v60_v30 = vld [vmem:[%s2464_s0 + $0x168] sm:$0xff] }
  0x21   :  { %1725 = vmatpush3.bf16.msra.mxu1 %v1933_v31  ;;  %1774 = vmatprep.subr.bf16.mxu0 %v1934_v40  ;;  %v1955_v31 = vld [vmem:[%s2463_s1 + $0x128] sm:$0xff]   ;;  %v1482_v37 = vcombine.high %v56_v29, %v60_v30  ;;  %v1960_v40 = vld [vmem:[%s2463_s1 + $0x1f0] sm:$0xff]  }
  0x22   :  { %1838 = vmatprep.subr.bf16.mxu1 %v1936_v42  ;;  %v67_v42 = vld [vmem:[%s2464_s0 + $0x1a0] sm:$0xff]  ;;  %v76_v57 = vld [vmem:[%s2464_s0 + $0x1e8] sm:$0xff] }
  0x23   :  { %951 = vmatmul.mubr.bf16.vlgmr.msra.gmra.mrb[0].mxu0 %v1439_v35  ;;  %v1473_v35 = vcombine.low %v48_v16, %v52_v17  ;;  %v1497_v3 = vcombine.low %v72_v56, %v76_v57  ;;  %v34_v16 = vld [vmem:[%s2464_s0 + $0x98] sm:$0xff] }
  0x24   :  { %1048 = vmatmul.mubr.bf16.vlgmr.msra.gmra.mrb[0].mxu1 %v1441_v38  ;;  %1775 = vmatpush3.bf16.msra.mxu0 %v1935_v41  ;;  %v1958_v38 = vld [vmem:[%s2463_s1 + $0x170] sm:$0xff]   ;;  %v63_v41 = vld [vmem:[%s2464_s0 + $0x180] sm:$0xff]  ;;  %v38_v17 = vld [vmem:[%s2464_s0 + $0xb8] sm:$0xff] }
  0x25   :  { %1839 = vmatpush3.bf16.msra.mxu1 %v1937_v43  ;;  %958 = vmatprep.mubr.bf16.mxu0 %v1448_v46  ;;  %v1961_v43 = vld [vmem:[%s2463_s1 + $0x1b0] sm:$0xff]   ;;  %v1962_v46 = vld [vmem:[%s2463_s1 + $0x178] sm:$0xff]   ;;  %v1487_v58 = vcombine.low %v63_v41, %v67_v42  ;;  %v1461_v27 = vcombine.low %v34_v16, %v38_v17 }
  0x26   :  { %1055 = vmatprep.mubr.bf16.mxu1 %v1450_v49  ;;  %1776 = vmatprep.subr.bf16.mxu0 %v1938_v50  ;;  %v1481_v49 = vcombine.low %v56_v29, %v60_v30  ;;  %v1488_v50 = vcombine.high %v63_v41, %v67_v42  ;;  %v49_v30 = vld [vmem:[%s2464_s0 + $0x110] sm:$0xff]  ;;  %v62_v41 = vld [vmem:[%s2464_s0 + $0x178] sm:$0xff] }
  0x27   :  { %1840 = vmatprep.subr.bf16.mxu1 %v1940_v54  ;;  %v71_v54 = vld [vmem:[%s2464_s0 + $0x1c0] sm:$0xff] }
  0x28   :  { %1777 = vmatpush3.bf16.msra.mxu0 %v1939_v52  ;;  %v1490_v52 = vcombine.high %v64_v44, %v68_v45 }
  0x29   :  { %1841 = vmatpush3.bf16.msra.mxu1 %v1941_v55  ;;  %1778 = vmatprep.subr.bf16.mxu0 %v1942_v62  ;;  %v75_v55 = vld [vmem:[%s2464_s0 + $0x1e0] sm:$0xff]  ;;  %v17_v62 = vld [vmem:[%s2464_s0 + $0x10] sm:$0xff] }
  0x2a   :  { %1842 = vmatprep.subr.bf16.mxu1 %v1944_v0  ;;  %v18_v0 = vld [vmem:[%s2464_s0 + $0x18] sm:$0xff] }
  0x2b   :  { %959 = vmatmul.mubr.bf16.gmra.mrb[4].mxu0 %v1447_v51  ;;  %v1964_v51 = vld [vmem:[%s2463_s1 + $0x1f8] sm:$0xff]  }
  0x2c   :  { %1056 = vmatmul.mubr.bf16.gmra.mrb[4].mxu1 %v1449_v53  ;;  %966 = vmatprep.mubr.bf16.mxu0 %v1456_v60  ;;  %v1965_v53 = vld [vmem:[%s2463_s1 + $0x1b8] sm:$0xff]   ;;  %v1496_v60 = vcombine.high %v71_v54, %v75_v55 }
  0x2d   :  { %1063 = vmatprep.mubr.bf16.mxu1 %v1458_v61  ;;  %1779 = vmatpush3.bf16.msra.mxu0 %v1943_v63  ;;  %v1498_v61 = vcombine.high %v72_v56, %v76_v57  ;;  %v21_v63 = vld [vmem:[%s2464_s0 + $0x30] sm:$0xff]  ;;  %v74_v56 = vld [vmem:[%s2464_s0 + $0x1d8] sm:$0xff] }
  0x2e   :  { %1843 = vmatpush3.bf16.msra.mxu1 %v1945_v1  ;;  %1780 = vmatprep.subr.bf16.mxu0 %v1946_v10  ;;  %v22_v1 = vld [vmem:[%s2464_s0 + $0x38] sm:$0xff]  ;;  %v1444_v4 = vcombine.high %v17_v62, %v21_v63  ;;  %v1443_v10 = vcombine.low %v17_v62, %v21_v63 }
  0x2f   :  { %1844 = vmatprep.subr.bf16.mxu1 %v1948_v12  ;;  %v1446_v5 = vcombine.high %v18_v0, %v22_v1  ;;  %v78_v57 = vld [vmem:[%s2464_s0 + $0x1f8] sm:$0xff] }
  0x30   :  { %v1501_v63 = vcombine.low %v74_v56, %v78_v57 }
  0x31   :  { %1781 = vmatpush3.bf16.msra.mxu0 %v1947_v11  ;;  %v1445_v11 = vcombine.low %v18_v0, %v22_v1 }
  0x32   :  { %1845 = vmatpush3.bf16.msra.mxu1 %v1949_v13  ;;  %1782 = vmatprep.subr.bf16.mxu0 %v1950_v18 }
  0x33   :  { %967 = vmatmul.mubr.bf16.gmra.mrb[8].mxu0 %v1455_v2  ;;  %1846 = vmatprep.subr.bf16.mxu1 %v1952_v23  ;;  %v1495_v2 = vcombine.low %v71_v54, %v75_v55  ;;  %v45_v23 = vld [vmem:[%s2464_s0 + $0xf0] sm:$0xff] }
  0x34   :  { %1064 = vmatmul.mubr.bf16.gmra.mrb[8].mxu1 %v1457_v6  ;;  %974 = vmatprep.mubr.bf16.mxu0 %v1464_v7  ;;  %v25_v6 = vld [vmem:[%s2464_s0 + $0x50] sm:$0xff] }
  0x35   :  { %1071 = vmatprep.mubr.bf16.mxu1 %v1466_v9  ;;  %1783 = vmatpush3.bf16.msra.mxu0 %v1951_v20  ;;  %v29_v7 = vld [vmem:[%s2464_s0 + $0x70] sm:$0xff]  ;;  %v30_v9 = vld [vmem:[%s2464_s0 + $0x78] sm:$0xff]  ;;  %v1460_v20 = vcombine.high %v33_v14, %v37_v15 }
  0x36   :  { %1847 = vmatpush3.bf16.msra.mxu1 %v1953_v25  ;;  %1784 = vmatprep.subr.bf16.mxu0 %v1954_v28  ;;  %v1452_v12 = vcombine.high %v25_v6, %v29_v7  ;;  %v1454_v13 = vcombine.high %v26_v8, %v30_v9  ;;  %v1451_v18 = vcombine.low %v25_v6, %v29_v7  ;;  %v46_v25 = vld [vmem:[%s2464_s0 + $0xf8] sm:$0xff]  ;;  %v73_v54 = vld [vmem:[%s2464_s0 + $0x1d0] sm:$0xff] }
  0x37   :  { %1848 = vmatprep.subr.bf16.mxu1 %v1956_v32  ;;  %v50_v32 = vld [vmem:[%s2464_s0 + $0x118] sm:$0xff]  ;;  %v77_v55 = vld [vmem:[%s2464_s0 + $0x1f0] sm:$0xff] }
  0x38   :  { %v1499_v62 = vcombine.low %v73_v54, %v77_v55 }
  0x39   :  { %1785 = vmatpush3.bf16.msra.mxu0 %v1955_v31  ;;  %v53_v31 = vld [vmem:[%s2464_s0 + $0x130] sm:$0xff] }
  0x3a   :  { %1849 = vmatpush3.bf16.msra.mxu1 %v1957_v33  ;;  %1786 = vmatprep.subr.bf16.mxu0 %v1958_v38  ;;  %v54_v33 = vld [vmem:[%s2464_s0 + $0x138] sm:$0xff]  ;;  %v57_v38 = vld [vmem:[%s2464_s0 + $0x150] sm:$0xff]  ;;  %v1475_v42 = vcombine.low %v49_v30, %v53_v31 }
  0x3b   :  { %975 = vmatmul.mubr.bf16.gmra.mrb[12].mxu0 %v1463_v19  ;;  %1850 = vmatprep.subr.bf16.mxu1 %v1960_v40  ;;  %v1453_v19 = vcombine.low %v26_v8, %v30_v9  ;;  %v58_v40 = vld [vmem:[%s2464_s0 + $0x158] sm:$0xff] }
  0x3c   :  { %1072 = vmatmul.mubr.bf16.gmra.mrb[12].mxu1 %v1465_v21  ;;  %982 = vmatprep.mubr.bf16.mxu0 %v1472_v22  ;;  %v1462_v21 = vcombine.high %v34_v16, %v38_v17  ;;  %v41_v22 = vld [vmem:[%s2464_s0 + $0xd0] sm:$0xff]  ;;  %v1486_v45 = vcombine.high %v58_v40, %v62_v41 }
  0x3d   :  { %1079 = vmatprep.mubr.bf16.mxu1 %v1474_v24  ;;  %1787 = vmatpush3.bf16.msra.mxu0 %v1959_v39  ;;  %v42_v24 = vld [vmem:[%s2464_s0 + $0xd8] sm:$0xff]  ;;  %v1468_v28 = vcombine.high %v41_v22, %v45_v23  ;;  %v61_v39 = vld [vmem:[%s2464_s0 + $0x170] sm:$0xff] }
  0x3e   :  { %1851 = vmatpush3.bf16.msra.mxu1 %v1961_v43  ;;  %1788 = vmatprep.subr.bf16.mxu0 %v1962_v46  ;;  %v1470_v29 = vcombine.high %v42_v24, %v46_v25  ;;  %v1477_v43 = vcombine.low %v50_v32, %v54_v33  ;;  %v1484_v44 = vcombine.high %v57_v38, %v61_v39  ;;  %v65_v46 = vld [vmem:[%s2464_s0 + $0x190] sm:$0xff] }
  0x3f   :  { %1852 = vmatprep.subr.bf16.mxu1 %v1964_v51  ;;  %v1485_v51 = vcombine.low %v58_v40, %v62_v41 }
  0x41   :  { %1789 = vmatpush3.bf16.msra.mxu0 %v1963_v48  ;;  %v66_v48 = vld [vmem:[%s2464_s0 + $0x198] sm:$0xff] }
  0x42   :  { %1853 = vmatpush3.bf16.msra.mxu1 %v1965_v53 }
  0x43   :  { %983 = vmatmul.mubr.bf16.gmra.mrb[16].mxu0 %v1471_v34  ;;  %v1467_v34 = vcombine.low %v41_v22, %v45_v23 }
  0x44   :  { %1080 = vmatmul.mubr.bf16.gmra.mrb[16].mxu1 %v1473_v35  ;;  %990 = vmatprep.mubr.bf16.mxu0 %v1480_v36  ;;  %v1469_v35 = vcombine.low %v42_v24, %v46_v25  ;;  %v1476_v36 = vcombine.high %v49_v30, %v53_v31 }
  0x45   :  { %1087 = vmatprep.mubr.bf16.mxu1 %v1482_v37  ;;  %v1478_v37 = vcombine.high %v50_v32, %v54_v33 }
  0x4b   :  { %991 = vmatmul.mubr.bf16.gmra.mrb[20].mxu0 %v1479_v47  ;;  %v69_v47 = vld [vmem:[%s2464_s0 + $0x1b0] sm:$0xff] }
  0x4c   :  { %1088 = vmatmul.mubr.bf16.gmra.mrb[20].mxu1 %v1481_v49  ;;  %998 = vmatprep.mubr.bf16.mxu0 %v1488_v50  ;;  %v70_v49 = vld [vmem:[%s2464_s0 + $0x1b8] sm:$0xff]  ;;  %v1483_v50 = vcombine.low %v57_v38, %v61_v39 }
  0x4d   :  { %1095 = vmatprep.mubr.bf16.mxu1 %v1490_v52  ;;  %v1492_v52 = vcombine.high %v65_v46, %v69_v47  ;;  %v1494_v53 = vcombine.high %v66_v48, %v70_v49 }
  0x53   :  { %999 = vmatmul.mubr.bf16.gmra.mrb[24].mxu0 %v1487_v58  ;;  %v1491_v58 = vcombine.low %v65_v46, %v69_v47 }
  0x54   :  { %1096 = vmatmul.mubr.bf16.gmra.mrb[24].mxu1 %v1489_v59  ;;  %1006 = vmatprep.mubr.bf16.mxu0 %v1496_v60  ;;  %v1493_v59 = vcombine.low %v66_v48, %v70_v49  ;;  %v1500_v60 = vcombine.high %v73_v54, %v77_v55 }
  0x55   :  { %1103 = vmatprep.mubr.bf16.mxu1 %v1498_v61  ;;  %v1502_v61 = vcombine.high %v74_v56, %v78_v57 }
  0x5b   :  { %1007 = vmatmul.mubr.bf16.gmra.mrb[28].mxu0 %v1495_v2  ;;  %v2373_v2 = vld [vmem:[%s2465_s2] ss:$0 sm:$0xff] }
  0x5c   :  { %1104 = vmatmul.mubr.bf16.gmra.mrb[28].mxu1 %v1497_v3  ;;  %1144 = vmatprep.mubr.bf16.mxu0 %v1444_v4 }
  0x5d   :  { %1241 = vmatprep.mubr.bf16.mxu1 %v1446_v5 }
  0x63   :  { %1145 = vmatmul.mubr.bf16.vlgmr.msra.gmra.mrb[32].mxu0 %v1443_v10 }
  0x64   :  { %1242 = vmatmul.mubr.bf16.vlgmr.msra.gmra.mrb[32].mxu1 %v1445_v11  ;;  %1152 = vmatprep.mubr.bf16.mxu0 %v1452_v12 }
  0x65   :  { %1249 = vmatprep.mubr.bf16.mxu1 %v1454_v13 }
  0x6b   :  { %1153 = vmatmul.mubr.bf16.gmra.mrb[36].mxu0 %v1451_v18 }
  0x6c   :  { %1250 = vmatmul.mubr.bf16.gmra.mrb[36].mxu1 %v1453_v19  ;;  %1160 = vmatprep.mubr.bf16.mxu0 %v1460_v20 }
  0x6d   :  { %1257 = vmatprep.mubr.bf16.mxu1 %v1462_v21 }
  0x73   :  { %1161 = vmatmul.mubr.bf16.gmra.mrb[40].mxu0 %v1459_v26 }
  0x74   :  { %1258 = vmatmul.mubr.bf16.gmra.mrb[40].mxu1 %v1461_v27  ;;  %1168 = vmatprep.mubr.bf16.mxu0 %v1468_v28 }
  0x75   :  { %1265 = vmatprep.mubr.bf16.mxu1 %v1470_v29 }
  0x7b   :  { %1169 = vmatmul.mubr.bf16.gmra.mrb[44].mxu0 %v1467_v34 }
  0x7c   :  { %1266 = vmatmul.mubr.bf16.gmra.mrb[44].mxu1 %v1469_v35  ;;  %1176 = vmatprep.mubr.bf16.mxu0 %v1476_v36 }
  0x7d   :  { %1273 = vmatprep.mubr.bf16.mxu1 %v1478_v37 }
  0x83   :  { %1177 = vmatmul.mubr.bf16.gmra.mrb[48].mxu0 %v1475_v42 }
  0x84   :  { %1274 = vmatmul.mubr.bf16.gmra.mrb[48].mxu1 %v1477_v43  ;;  %1184 = vmatprep.mubr.bf16.mxu0 %v1484_v44 }
  0x85   :  { %1281 = vmatprep.mubr.bf16.mxu1 %v1486_v45 }
  0x8b   :  { %1185 = vmatmul.mubr.bf16.gmra.mrb[52].mxu0 %v1483_v50 }
  0x8c   :  { %1282 = vmatmul.mubr.bf16.gmra.mrb[52].mxu1 %v1485_v51  ;;  %1192 = vmatprep.mubr.bf16.mxu0 %v1492_v52 }
  0x8d   :  { %1289 = vmatprep.mubr.bf16.mxu1 %v1494_v53 }
  0x93   :  { %1193 = vmatmul.mubr.bf16.gmra.mrb[56].mxu0 %v1491_v58 }
  0x94   :  { %1290 = vmatmul.mubr.bf16.gmra.mrb[56].mxu1 %v1493_v59  ;;  %1200 = vmatprep.mubr.bf16.mxu0 %v1500_v60 }
  0x95   :  { %1297 = vmatprep.mubr.bf16.mxu1 %v1502_v61 }
  0x9b   :  { %1201 = vmatmul.mubr.bf16.gmra.mrb[60].mxu0 %v1499_v62 }
  0x9c   :  { %1298 = vmatmul.mubr.bf16.gmra.mrb[60].mxu1 %v1501_v63 }
  0xf6   :  { %v1662_v0 = vpop.f32.mrb[0].mxu0 }
  0xf7   :  { %v1726_v1 = vpop.f32.mrb[0].mxu1  ;;  %v1663_v3 = vpop.f32.mrb[1].mxu0 }
  0xf8   :  { %v1664_v4 = vadd.f32 %v1663_v3, %v1662_v0  ;;  %v1727_v5 = vpop.f32.mrb[1].mxu1  ;;  %v1665_v6 = vpop.f32.mrb[2].mxu0 }
  0xf9   :  { %v1728_v7 = vadd.f32 %v1727_v5, %v1726_v1  ;;  %v1729_v8 = vpop.f32.mrb[2].mxu1  ;;  %v1666_v9 = vpop.f32.mrb[3].mxu0 }
  0xfa   :  { %v953_v10 = vadd.f32 %v1664_v4, %v2373_v2  ;;  %v1667_v11 = vadd.f32 %v1666_v9, %v1665_v6  ;;  %v1730_v12 = vpop.f32.mrb[3].mxu1 }
  0xfb   :  { %v1731_v13 = vadd.f32 %v1730_v12, %v1729_v8 }
  0xfc   :  { %v2376_v14 = vadd.f32 %v1728_v7, %v953_v10  ;;  %v956_v15 = vadd.f32 %v1667_v11, %v2373_v2 }
  0xfe   :  { %v2379_v16 = vadd.f32 %v1731_v13, %v956_v15  ;;  %v1668_v17 = vpop.f32.mrb[4].mxu0 }
  0xff   :  { %v1732_v18 = vpop.f32.mrb[4].mxu1  ;;  %v1669_v19 = vpop.f32.mrb[5].mxu0 }
 0x100   :  { %v1670_v20 = vadd.f32 %v1669_v19, %v1668_v17  ;;  %v1733_v21 = vpop.f32.mrb[5].mxu1  ;;  %v1671_v22 = vpop.f32.mrb[6].mxu0 }
 0x101   :  { %v1734_v23 = vadd.f32 %v1733_v21, %v1732_v18  ;;  %v1735_v24 = vpop.f32.mrb[6].mxu1  ;;  %v1672_v25 = vpop.f32.mrb[7].mxu0 }
 0x102   :  { %v961_v26 = vadd.f32 %v1670_v20, %v2373_v2  ;;  %v1673_v27 = vadd.f32 %v1672_v25, %v1671_v22  ;;  %v1736_v28 = vpop.f32.mrb[7].mxu1 }
 0x103   :  { %v1737_v29 = vadd.f32 %v1736_v28, %v1735_v24 }
 0x104   :  { %v2382_v30 = vadd.f32 %v1734_v23, %v961_v26  ;;  %v964_v31 = vadd.f32 %v1673_v27, %v2373_v2 }
 0x106   :  { %v2385_v32 = vadd.f32 %v1737_v29, %v964_v31  ;;  %v1674_v33 = vpop.f32.mrb[8].mxu0 }
 0x107   :  { %v1738_v34 = vpop.f32.mrb[8].mxu1  ;;  %v1675_v35 = vpop.f32.mrb[9].mxu0 }
 0x108   :  { %v1676_v36 = vadd.f32 %v1675_v35, %v1674_v33  ;;  %v1739_v37 = vpop.f32.mrb[9].mxu1  ;;  %v1677_v38 = vpop.f32.mrb[10].mxu0 }
 0x109   :  { %v1740_v39 = vadd.f32 %v1739_v37, %v1738_v34  ;;  %v1741_v40 = vpop.f32.mrb[10].mxu1  ;;  %v1678_v41 = vpop.f32.mrb[11].mxu0 }
 0x10a   :  { %v969_v42 = vadd.f32 %v1676_v36, %v2373_v2  ;;  %v1679_v43 = vadd.f32 %v1678_v41, %v1677_v38  ;;  %v1742_v44 = vpop.f32.mrb[11].mxu1 }
 0x10b   :  { %v1743_v45 = vadd.f32 %v1742_v44, %v1741_v40 }
 0x10c   :  { %v2388_v46 = vadd.f32 %v1740_v39, %v969_v42  ;;  %v972_v47 = vadd.f32 %v1679_v43, %v2373_v2 }
 0x10e   :  { %v2391_v48 = vadd.f32 %v1743_v45, %v972_v47  ;;  %v1680_v49 = vpop.f32.mrb[12].mxu0 }
 0x10f   :  { %v1744_v50 = vpop.f32.mrb[12].mxu1  ;;  %v1681_v51 = vpop.f32.mrb[13].mxu0 }
 0x110   :  { %v1682_v52 = vadd.f32 %v1681_v51, %v1680_v49  ;;  %v1745_v53 = vpop.f32.mrb[13].mxu1  ;;  %v1683_v54 = vpop.f32.mrb[14].mxu0 }
 0x111   :  { %v1746_v55 = vadd.f32 %v1745_v53, %v1744_v50  ;;  %v1747_v56 = vpop.f32.mrb[14].mxu1  ;;  %v1684_v57 = vpop.f32.mrb[15].mxu0 }
 0x112   :  { %v977_v58 = vadd.f32 %v1682_v52, %v2373_v2  ;;  %v1685_v59 = vadd.f32 %v1684_v57, %v1683_v54  ;;  %v1748_v60 = vpop.f32.mrb[15].mxu1 }
 0x113   :  { %v1749_v61 = vadd.f32 %v1748_v60, %v1747_v56 }
 0x114   :  { %v2394_v62 = vadd.f32 %v1746_v55, %v977_v58  ;;  %v980_v63 = vadd.f32 %v1685_v59, %v2373_v2 }
 0x116   :  { %v2397_v0 = vadd.f32 %v1749_v61, %v980_v63  ;;  %v1686_v1 = vpop.f32.mrb[16].mxu0 }
 0x117   :  { %v1750_v3 = vpop.f32.mrb[16].mxu1  ;;  %v1687_v4 = vpop.f32.mrb[17].mxu0 }
 0x118   :  { %v1688_v5 = vadd.f32 %v1687_v4, %v1686_v1  ;;  %v1751_v6 = vpop.f32.mrb[17].mxu1  ;;  %v1689_v7 = vpop.f32.mrb[18].mxu0 }
 0x119   :  { %v1752_v8 = vadd.f32 %v1751_v6, %v1750_v3  ;;  %v1753_v9 = vpop.f32.mrb[18].mxu1  ;;  %v1690_v10 = vpop.f32.mrb[19].mxu0 }
 0x11a   :  { %v985_v11 = vadd.f32 %v1688_v5, %v2373_v2  ;;  %v1691_v12 = vadd.f32 %v1690_v10, %v1689_v7  ;;  %v1754_v13 = vpop.f32.mrb[19].mxu1 }
 0x11b   :  { %v1755_v15 = vadd.f32 %v1754_v13, %v1753_v9 }
 0x11c   :  { %v2400_v17 = vadd.f32 %v1752_v8, %v985_v11  ;;  %v988_v18 = vadd.f32 %v1691_v12, %v2373_v2 }
 0x11e   :  { %v2403_v19 = vadd.f32 %v1755_v15, %v988_v18  ;;  %v1692_v20 = vpop.f32.mrb[20].mxu0 }
 0x11f   :  { %v1756_v21 = vpop.f32.mrb[20].mxu1  ;;  %v1693_v22 = vpop.f32.mrb[21].mxu0 }
 0x120   :  { %v1694_v23 = vadd.f32 %v1693_v22, %v1692_v20  ;;  %v1757_v24 = vpop.f32.mrb[21].mxu1  ;;  %v1695_v25 = vpop.f32.mrb[22].mxu0 }
 0x121   :  { %v1758_v26 = vadd.f32 %v1757_v24, %v1756_v21  ;;  %v1759_v27 = vpop.f32.mrb[22].mxu1  ;;  %v1696_v28 = vpop.f32.mrb[23].mxu0 }
 0x122   :  { %v993_v29 = vadd.f32 %v1694_v23, %v2373_v2  ;;  %v1697_v31 = vadd.f32 %v1696_v28, %v1695_v25  ;;  %v1760_v33 = vpop.f32.mrb[23].mxu1 }
 0x123   :  { %v1761_v34 = vadd.f32 %v1760_v33, %v1759_v27 }
 0x124   :  { %v2406_v35 = vadd.f32 %v1758_v26, %v993_v29  ;;  %v996_v36 = vadd.f32 %v1697_v31, %v2373_v2 }
 0x126   :  { %v2409_v37 = vadd.f32 %v1761_v34, %v996_v36  ;;  %v1698_v38 = vpop.f32.mrb[24].mxu0 }
 0x127   :  { %v1762_v39 = vpop.f32.mrb[24].mxu1  ;;  %v1699_v40 = vpop.f32.mrb[25].mxu0 }
 0x128   :  { %v1700_v41 = vadd.f32 %v1699_v40, %v1698_v38  ;;  %v1763_v42 = vpop.f32.mrb[25].mxu1  ;;  %v1701_v43 = vpop.f32.mrb[26].mxu0 }
 0x129   :  { %v1764_v44 = vadd.f32 %v1763_v42, %v1762_v39  ;;  %v1765_v45 = vpop.f32.mrb[26].mxu1  ;;  %v1702_v47 = vpop.f32.mrb[27].mxu0 }
 0x12a   :  { %v1001_v49 = vadd.f32 %v1700_v41, %v2373_v2  ;;  %v1703_v50 = vadd.f32 %v1702_v47, %v1701_v43  ;;  %v1766_v51 = vpop.f32.mrb[27].mxu1 }
 0x12b   :  { %v1767_v52 = vadd.f32 %v1766_v51, %v1765_v45 }
 0x12c   :  { %v2412_v53 = vadd.f32 %v1764_v44, %v1001_v49  ;;  %v1004_v54 = vadd.f32 %v1703_v50, %v2373_v2 }
 0x12e   :  { %v2415_v55 = vadd.f32 %v1767_v52, %v1004_v54  ;;  %v1704_v56 = vpop.f32.mrb[28].mxu0 }
 0x12f   :  { %v1768_v57 = vpop.f32.mrb[28].mxu1  ;;  %v1705_v58 = vpop.f32.mrb[29].mxu0 }
 0x130   :  { %v1706_v59 = vadd.f32 %v1705_v58, %v1704_v56  ;;  %v1769_v60 = vpop.f32.mrb[29].mxu1  ;;  %v1707_v61 = vpop.f32.mrb[30].mxu0 }
 0x131   :  { %v1770_v63 = vadd.f32 %v1769_v60, %v1768_v57  ;;  %v1771_v1 = vpop.f32.mrb[30].mxu1  ;;  %v1708_v3 = vpop.f32.mrb[31].mxu0 }
 0x132   :  { %v1009_v4 = vadd.f32 %v1706_v59, %v2373_v2  ;;  %v1709_v5 = vadd.f32 %v1708_v3, %v1707_v61  ;;  %v1772_v6 = vpop.f32.mrb[31].mxu1 }
 0x133   :  { %v1773_v7 = vadd.f32 %v1772_v6, %v1771_v1 }
 0x134   :  { %v2418_v8 = vadd.f32 %v1770_v63, %v1009_v4  ;;  %v1012_v9 = vadd.f32 %v1709_v5, %v2373_v2 }
 0x136   :  { %v2421_v10 = vadd.f32 %v1773_v7, %v1012_v9  ;;  %v1790_v11 = vpop.f32.mrb[32].mxu0 }
 0x137   :  { %v1854_v12 = vpop.f32.mrb[32].mxu1  ;;  %v1791_v13 = vpop.f32.mrb[33].mxu0 }
 0x138   :  { %v1792_v15 = vadd.f32 %v1791_v13, %v1790_v11  ;;  %v1855_v18 = vpop.f32.mrb[33].mxu1  ;;  %v1793_v20 = vpop.f32.mrb[34].mxu0 }
 0x139   :  { %v1856_v21 = vadd.f32 %v1855_v18, %v1854_v12  ;;  %v1857_v22 = vpop.f32.mrb[34].mxu1  ;;  %v1794_v23 = vpop.f32.mrb[35].mxu0 }
 0x13a   :  { %v1147_v24 = vadd.f32 %v1792_v15, %v2376_v14  ;;  %v1795_v25 = vadd.f32 %v1794_v23, %v1793_v20  ;;  %v1858_v26 = vpop.f32.mrb[35].mxu1 }
 0x13b   :  { %v1859_v27 = vadd.f32 %v1858_v26, %v1857_v22 }
 0x13c   :  { %v1244_v28 = vadd.f32 %v1856_v21, %v1147_v24  ;;  %v1150_v29 = vadd.f32 %v1795_v25, %v2379_v16 }
 0x13e   :  { %v1322_v2 = vmul.f32 0.2, %v1244_v28  ;;  %v1247_v31 = vadd.f32 %v1859_v27, %v1150_v29  ;;  %v1796_v33 = vpop.f32.mrb[36].mxu0  ;;  %vm1306_vm0 = vcmp.gt.f32.partialorder %v1244_v28, 0.0 }
 0x13f   :  { %v1860_v34 = vpop.f32.mrb[36].mxu1  ;;  %v1797_v36 = vpop.f32.mrb[37].mxu0 }
 0x140   :  { %vm1307_vm1 = vcmp.gt.f32.partialorder %v1247_v31, 0.0  ;;  %v1323_v38 = vmul.f32 0.2, %v1247_v31  ;;  %v1798_v39 = vadd.f32 %v1797_v36, %v1796_v33  ;;  %v1861_v40 = vpop.f32.mrb[37].mxu1  ;;  %v1799_v41 = vpop.f32.mrb[38].mxu0  ;;  %v1338_v44 = vsel %vm1306_vm0, %v1244_v28, %v1322_v2 }
 0x141   :  { %v1862_v42 = vadd.f32 %v1861_v40, %v1860_v34  ;;  %v1863_v43 = vpop.f32.mrb[38].mxu1  ;;  %v1800_v14 = vpop.f32.mrb[39].mxu0 }
 0x142   :  { %v1339_v45 = vsel %vm1307_vm1, %v1247_v31, %v1323_v38  ;;  %v1155_v47 = vadd.f32 %v1798_v39, %v2382_v30  ;;  %v1801_v49 = vadd.f32 %v1800_v14, %v1799_v41  ;;  %v1864_v16 = vpop.f32.mrb[39].mxu1 }
 0x143   :  { %v1602_v50 = vpack.c.bf16 %v1339_v45, %v1338_v44  ;;  %v1865_v51 = vadd.f32 %v1864_v16, %v1863_v43 }
 0x144   :  { %v1252_v52 = vadd.f32 %v1862_v42, %v1155_v47  ;;  %v1158_v54 = vadd.f32 %v1801_v49, %v2385_v32 }
 0x145   :  { %1603 = vst [vmem:[%s2466_s3] sm:$0xff] %v1602_v50  }
 0x146   :  { %v1324_v56 = vmul.f32 0.2, %v1252_v52  ;;  %v1255_v57 = vadd.f32 %v1865_v51, %v1158_v54  ;;  %v1802_v58 = vpop.f32.mrb[40].mxu0  ;;  %vm1308_vm2 = vcmp.gt.f32.partialorder %v1252_v52, 0.0 }
 0x147   :  { %v1866_v59 = vpop.f32.mrb[40].mxu1  ;;  %v1803_v60 = vpop.f32.mrb[41].mxu0 }
 0x148   :  { %vm1309_vm3 = vcmp.gt.f32.partialorder %v1255_v57, 0.0  ;;  %v1325_v61 = vmul.f32 0.2, %v1255_v57  ;;  %v1804_v30 = vadd.f32 %v1803_v60, %v1802_v58  ;;  %v1867_v63 = vpop.f32.mrb[41].mxu1  ;;  %v1805_v1 = vpop.f32.mrb[42].mxu0  ;;  %v1340_v6 = vsel %vm1308_vm2, %v1252_v52, %v1324_v56 }
 0x149   :  { %v1868_v3 = vadd.f32 %v1867_v63, %v1866_v59  ;;  %v1869_v4 = vpop.f32.mrb[42].mxu1  ;;  %v1806_v5 = vpop.f32.mrb[43].mxu0 }
 0x14a   :  { %v1341_v32 = vsel %vm1309_vm3, %v1255_v57, %v1325_v61  ;;  %v1163_v7 = vadd.f32 %v1804_v30, %v2388_v46  ;;  %v1807_v9 = vadd.f32 %v1806_v5, %v1805_v1  ;;  %v1870_v11 = vpop.f32.mrb[43].mxu1 }
 0x14b   :  { %v1607_v12 = vpack.c.bf16 %v1341_v32, %v1340_v6  ;;  %v1871_v13 = vadd.f32 %v1870_v11, %v1869_v4 }
 0x14c   :  { %v1260_v15 = vadd.f32 %v1868_v3, %v1163_v7  ;;  %v1166_v18 = vadd.f32 %v1807_v9, %v2391_v48 }
 0x14d   :  { %1639 = vst [vmem:[%s2466_s3 + $0x8] sm:$0xff] %v1607_v12  }
 0x14e   :  { %v1326_v20 = vmul.f32 0.2, %v1260_v15  ;;  %v1263_v21 = vadd.f32 %v1871_v13, %v1166_v18  ;;  %v1808_v22 = vpop.f32.mrb[44].mxu0  ;;  %vm1310_vm4 = vcmp.gt.f32.partialorder %v1260_v15, 0.0 }
 0x14f   :  { %v1872_v23 = vpop.f32.mrb[44].mxu1  ;;  %v1809_v24 = vpop.f32.mrb[45].mxu0 }
 0x150   :  { %vm1311_vm5 = vcmp.gt.f32.partialorder %v1263_v21, 0.0  ;;  %v1327_v25 = vmul.f32 0.2, %v1263_v21  ;;  %v1810_v46 = vadd.f32 %v1809_v24, %v1808_v22  ;;  %v1873_v26 = vpop.f32.mrb[45].mxu1  ;;  %v1811_v27 = vpop.f32.mrb[46].mxu0  ;;  %v1342_v31 = vsel %vm1310_vm4, %v1260_v15, %v1326_v20 }
 0x151   :  { %v1874_v28 = vadd.f32 %v1873_v26, %v1872_v23  ;;  %v1875_v29 = vpop.f32.mrb[46].mxu1  ;;  %v1812_v2 = vpop.f32.mrb[47].mxu0 }
 0x152   :  { %v1343_v48 = vsel %vm1311_vm5, %v1263_v21, %v1327_v25  ;;  %v1171_v33 = vadd.f32 %v1810_v46, %v2394_v62  ;;  %v1813_v34 = vadd.f32 %v1812_v2, %v1811_v27  ;;  %v1876_v36 = vpop.f32.mrb[47].mxu1 }
 0x153   :  { %v1612_v38 = vpack.c.bf16 %v1343_v48, %v1342_v31  ;;  %v1877_v39 = vadd.f32 %v1876_v36, %v1875_v29 }
 0x154   :  { %v1268_v40 = vadd.f32 %v1874_v28, %v1171_v33  ;;  %v1174_v41 = vadd.f32 %v1813_v34, %v2397_v0 }
 0x155   :  { %1640 = vst [vmem:[%s2466_s3 + $0x10] sm:$0xff] %v1612_v38  }
 0x156   :  { %v1328_v42 = vmul.f32 0.2, %v1268_v40  ;;  %v1271_v43 = vadd.f32 %v1877_v39, %v1174_v41  ;;  %v1814_v14 = vpop.f32.mrb[48].mxu0  ;;  %vm1312_vm6 = vcmp.gt.f32.partialorder %v1268_v40, 0.0 }
 0x157   :  { %v1878_v44 = vpop.f32.mrb[48].mxu1  ;;  %v1815_v45 = vpop.f32.mrb[49].mxu0 }
 0x158   :  { %vm1313_vm7 = vcmp.gt.f32.partialorder %v1271_v43, 0.0  ;;  %v1329_v47 = vmul.f32 0.2, %v1271_v43  ;;  %v1816_v62 = vadd.f32 %v1815_v45, %v1814_v14  ;;  %v1879_v49 = vpop.f32.mrb[49].mxu1  ;;  %v1817_v16 = vpop.f32.mrb[50].mxu0  ;;  %v1344_v54 = vsel %vm1312_vm6, %v1268_v40, %v1328_v42 }
 0x159   :  { %v1880_v50 = vadd.f32 %v1879_v49, %v1878_v44  ;;  %v1881_v51 = vpop.f32.mrb[50].mxu1  ;;  %v1818_v52 = vpop.f32.mrb[51].mxu0 }
 0x15a   :  { %v1345_v0 = vsel %vm1313_vm7, %v1271_v43, %v1329_v47  ;;  %v1179_v56 = vadd.f32 %v1816_v62, %v2400_v17  ;;  %v1819_v57 = vadd.f32 %v1818_v52, %v1817_v16  ;;  %v1882_v58 = vpop.f32.mrb[51].mxu1 }
 0x15b   :  { %v1617_v59 = vpack.c.bf16 %v1345_v0, %v1344_v54  ;;  %v1883_v60 = vadd.f32 %v1882_v58, %v1881_v51 }
 0x15c   :  { %v1276_v61 = vadd.f32 %v1880_v50, %v1179_v56  ;;  %v1182_v30 = vadd.f32 %v1819_v57, %v2403_v19 }
 0x15d   :  { %1641 = vst [vmem:[%s2466_s3 + $0x18] sm:$0xff] %v1617_v59  }
 0x15e   :  { %v1330_v63 = vmul.f32 0.2, %v1276_v61  ;;  %v1279_v1 = vadd.f32 %v1883_v60, %v1182_v30  ;;  %v1820_v3 = vpop.f32.mrb[52].mxu0  ;;  %vm1314_vm8 = vcmp.gt.f32.partialorder %v1276_v61, 0.0 }
 0x15f   :  { %v1884_v4 = vpop.f32.mrb[52].mxu1  ;;  %v1821_v5 = vpop.f32.mrb[53].mxu0 }
 0x160   :  { %vm1315_vm9 = vcmp.gt.f32.partialorder %v1279_v1, 0.0  ;;  %v1331_v6 = vmul.f32 0.2, %v1279_v1  ;;  %v1822_v17 = vadd.f32 %v1821_v5, %v1820_v3  ;;  %v1885_v32 = vpop.f32.mrb[53].mxu1  ;;  %v1823_v7 = vpop.f32.mrb[54].mxu0  ;;  %v1346_v13 = vsel %vm1314_vm8, %v1276_v61, %v1330_v63 }
 0x161   :  { %v1886_v9 = vadd.f32 %v1885_v32, %v1884_v4  ;;  %v1887_v11 = vpop.f32.mrb[54].mxu1  ;;  %v1824_v12 = vpop.f32.mrb[55].mxu0 }
 0x162   :  { %v1347_v19 = vsel %vm1315_vm9, %v1279_v1, %v1331_v6  ;;  %v1187_v15 = vadd.f32 %v1822_v17, %v2406_v35  ;;  %v1825_v18 = vadd.f32 %v1824_v12, %v1823_v7  ;;  %v1888_v20 = vpop.f32.mrb[55].mxu1 }
 0x163   :  { %v1622_v21 = vpack.c.bf16 %v1347_v19, %v1346_v13  ;;  %v1889_v22 = vadd.f32 %v1888_v20, %v1887_v11 }
 0x164   :  { %v1284_v23 = vadd.f32 %v1886_v9, %v1187_v15  ;;  %v1190_v24 = vadd.f32 %v1825_v18, %v2409_v37 }
 0x165   :  { %1642 = vst [vmem:[%s2466_s3 + $0x20] sm:$0xff] %v1622_v21  }
 0x166   :  { %v1332_v25 = vmul.f32 0.2, %v1284_v23  ;;  %v1287_v46 = vadd.f32 %v1889_v22, %v1190_v24  ;;  %v1826_v26 = vpop.f32.mrb[56].mxu0  ;;  %vm1316_vm10 = vcmp.gt.f32.partialorder %v1284_v23, 0.0 }
 0x167   :  { %v1890_v27 = vpop.f32.mrb[56].mxu1  ;;  %v1827_v28 = vpop.f32.mrb[57].mxu0 }
 0x168   :  { %vm1317_vm11 = vcmp.gt.f32.partialorder %v1287_v46, 0.0  ;;  %v1333_v29 = vmul.f32 0.2, %v1287_v46  ;;  %v1828_v35 = vadd.f32 %v1827_v28, %v1826_v26  ;;  %v1891_v2 = vpop.f32.mrb[57].mxu1  ;;  %v1829_v31 = vpop.f32.mrb[58].mxu0  ;;  %v1348_v36 = vsel %vm1316_vm10, %v1284_v23, %v1332_v25 }
 0x169   :  { %v1892_v48 = vadd.f32 %v1891_v2, %v1890_v27  ;;  %v1893_v33 = vpop.f32.mrb[58].mxu1  ;;  %v1830_v34 = vpop.f32.mrb[59].mxu0 }
 0x16a   :  { %v1349_v37 = vsel %vm1317_vm11, %v1287_v46, %v1333_v29  ;;  %v1195_v38 = vadd.f32 %v1828_v35, %v2412_v53  ;;  %v1831_v39 = vadd.f32 %v1830_v34, %v1829_v31  ;;  %v1894_v40 = vpop.f32.mrb[59].mxu1 }
 0x16b   :  { %v1627_v41 = vpack.c.bf16 %v1349_v37, %v1348_v36  ;;  %v1895_v42 = vadd.f32 %v1894_v40, %v1893_v33 }
 0x16c   :  { %v1292_v43 = vadd.f32 %v1892_v48, %v1195_v38  ;;  %v1198_v14 = vadd.f32 %v1831_v39, %v2415_v55 }
 0x16d   :  { %1643 = vst [vmem:[%s2466_s3 + $0x28] sm:$0xff] %v1627_v41  }
 0x16e   :  { %v1334_v44 = vmul.f32 0.2, %v1292_v43  ;;  %v1295_v45 = vadd.f32 %v1895_v42, %v1198_v14  ;;  %v1832_v47 = vpop.f32.mrb[60].mxu0  ;;  %vm1318_vm12 = vcmp.gt.f32.partialorder %v1292_v43, 0.0 }
 0x16f   :  { %v1896_v62 = vpop.f32.mrb[60].mxu1  ;;  %v1833_v49 = vpop.f32.mrb[61].mxu0 }
 0x170   :  { %vm1319_vm13 = vcmp.gt.f32.partialorder %v1295_v45, 0.0  ;;  %v1335_v16 = vmul.f32 0.2, %v1295_v45  ;;  %v1834_v53 = vadd.f32 %v1833_v49, %v1832_v47  ;;  %v1897_v50 = vpop.f32.mrb[61].mxu1  ;;  %v1835_v51 = vpop.f32.mrb[62].mxu0  ;;  %v1350_v56 = vsel %vm1318_vm12, %v1292_v43, %v1334_v44 }
 0x171   :  { %v1898_v52 = vadd.f32 %v1897_v50, %v1896_v62  ;;  %v1899_v54 = vpop.f32.mrb[62].mxu1  ;;  %v1836_v0 = vpop.f32.mrb[63].mxu0 }
 0x172   :  { %v1351_v55 = vsel %vm1319_vm13, %v1295_v45, %v1335_v16  ;;  %v1203_v57 = vadd.f32 %v1834_v53, %v2418_v8  ;;  %v1837_v58 = vadd.f32 %v1836_v0, %v1835_v51  ;;  %v1900_v59 = vpop.f32.mrb[63].mxu1 }
 0x173   :  { %v1632_v60 = vpack.c.bf16 %v1351_v55, %v1350_v56  ;;  %v1901_v61 = vadd.f32 %v1900_v59, %v1899_v54 }
 0x174   :  { %v1300_v30 = vadd.f32 %v1898_v52, %v1203_v57  ;;  %v1206_v63 = vadd.f32 %v1837_v58, %v2421_v10 }
 0x175   :  { %1644 = vst [vmem:[%s2466_s3 + $0x30] sm:$0xff] %v1632_v60  }
 0x176   :  { %v1336_v1 = vmul.f32 0.2, %v1300_v30  ;;  %v1303_v3 = vadd.f32 %v1901_v61, %v1206_v63  ;;  %vm1320_vm14 = vcmp.gt.f32.partialorder %v1300_v30, 0.0 }
 0x178   :  { %vm1321_vm15 = vcmp.gt.f32.partialorder %v1303_v3, 0.0  ;;  %v1337_v4 = vmul.f32 0.2, %v1303_v3  ;;  %v1352_v5 = vsel %vm1320_vm14, %v1300_v30, %v1336_v1 }
 0x17a   :  { %v1353_v6 = vsel %vm1321_vm15, %v1303_v3, %v1337_v4 }
 0x17b   :  { %v1637_v17 = vpack.c.bf16 %v1353_v6, %v1352_v5 }
 0x17d   :  { %1645 = vst [vmem:[%s2466_s3 + $0x38] sm:$0xff] %v1637_v17  }

// kernel: pneumonia_discriminator_forward.6
= control target key start
LH: loop header
LB: loop body
LE: loop exit
PB: predicated region body
PF: predicated region fallthrough
CT: control target
= control target key end

     0   :  { %s3925_s1 = inlined_call_operand.vmem [shape: bf16[2048,256], index: 1, kind: input, shape index: {}]   ;;  %s3926_s0 = inlined_call_operand.vmem [shape: bf16[32,2048], index: 0, kind: input, shape index: {}]   ;;  %s3927_s2 = inlined_call_operand.vmem [shape: f32[1,256], index: 2, kind: input, shape index: {}]   ;;  %s3928_s3 = inlined_call_operand.vmem [shape: bf16[32,256], index: 3, kind: output, shape index: {}]  }
   0x1   :  { %v2594_v0 = vld [vmem:[%s3925_s1 + $0x4] ss:$8 sps:$4 sm:$0xff]   ;;  %v2598_v2 = vld [vmem:[%s3925_s1] ss:$8 sps:$4 sm:$0xff]   ;;  %v2600_v4 = vld [vmem:[%s3925_s1 + $0x14] ss:$8 sps:$4 sm:$0xff]  }
   0x2   :  { %v2596_v1 = vld [vmem:[%s3925_s1 + $0x404] ss:$8 sps:$4 sm:$0xff]   ;;  %1754 = vmatprep.subr.bf16.mxu1 %v2594_v0  ;;  %v2599_v3 = vld [vmem:[%s3925_s1 + $0x400] ss:$8 sps:$4 sm:$0xff]   ;;  %v2602_v5 = vld [vmem:[%s3925_s1 + $0x414] ss:$8 sps:$4 sm:$0xff]  }
   0x3   :  { %1966 = vmatprep.subr.bf16.mxu0 %v2596_v1  ;;  %1755 = vmatpush1.bf16.msra.mxu1 %v2598_v2  ;;  %v2604_v6 = vld [vmem:[%s3925_s1 + $0x10] ss:$8 sps:$4 sm:$0xff]   ;;  %v2606_v8 = vld [vmem:[%s3925_s1 + $0x24] ss:$8 sps:$4 sm:$0xff]   ;;  %v2610_v10 = vld [vmem:[%s3925_s1 + $0x20] ss:$8 sps:$4 sm:$0xff]  }
   0x4   :  { %1967 = vmatpush1.bf16.msra.mxu0 %v2599_v3  ;;  %1756 = vmatprep.subr.bf16.mxu1 %v2600_v4  ;;  %v2605_v7 = vld [vmem:[%s3925_s1 + $0x410] ss:$8 sps:$4 sm:$0xff]   ;;  %v2608_v9 = vld [vmem:[%s3925_s1 + $0x424] ss:$8 sps:$4 sm:$0xff]   ;;  %v2611_v11 = vld [vmem:[%s3925_s1 + $0x420] ss:$8 sps:$4 sm:$0xff]  }
   0x5   :  { %1968 = vmatprep.subr.bf16.mxu0 %v2602_v5  ;;  %v2612_v12 = vld [vmem:[%s3925_s1 + $0x34] ss:$8 sps:$4 sm:$0xff]   ;;  %v2616_v14 = vld [vmem:[%s3925_s1 + $0x30] ss:$8 sps:$4 sm:$0xff]   ;;  %v2618_v16 = vld [vmem:[%s3925_s1 + $0x44] ss:$8 sps:$4 sm:$0xff]  }
   0x6   :  { %v2614_v13 = vld [vmem:[%s3925_s1 + $0x434] ss:$8 sps:$4 sm:$0xff]   ;;  %v2617_v15 = vld [vmem:[%s3925_s1 + $0x430] ss:$8 sps:$4 sm:$0xff]   ;;  %v2620_v17 = vld [vmem:[%s3925_s1 + $0x444] ss:$8 sps:$4 sm:$0xff]  }
   0x7   :  { %1757 = vmatpush1.bf16.msra.mxu1 %v2604_v6  ;;  %v2622_v18 = vld [vmem:[%s3925_s1 + $0x40] ss:$8 sps:$4 sm:$0xff]   ;;  %v2624_v20 = vld [vmem:[%s3925_s1 + $0x54] ss:$8 sps:$4 sm:$0xff]   ;;  %v2628_v22 = vld [vmem:[%s3925_s1 + $0x50] ss:$8 sps:$4 sm:$0xff]  }
   0x8   :  { %1969 = vmatpush1.bf16.msra.mxu0 %v2605_v7  ;;  %1758 = vmatprep.subr.bf16.mxu1 %v2606_v8  ;;  %v2623_v19 = vld [vmem:[%s3925_s1 + $0x440] ss:$8 sps:$4 sm:$0xff]   ;;  %v2626_v21 = vld [vmem:[%s3925_s1 + $0x454] ss:$8 sps:$4 sm:$0xff]   ;;  %v2629_v23 = vld [vmem:[%s3925_s1 + $0x450] ss:$8 sps:$4 sm:$0xff]  }
   0x9   :  { %1970 = vmatprep.subr.bf16.mxu0 %v2608_v9  ;;  %v2630_v24 = vld [vmem:[%s3925_s1 + $0x64] ss:$8 sps:$4 sm:$0xff]   ;;  %v2634_v26 = vld [vmem:[%s3925_s1 + $0x60] ss:$8 sps:$4 sm:$0xff]   ;;  %v2636_v28 = vld [vmem:[%s3925_s1 + $0x74] ss:$8 sps:$4 sm:$0xff]  }
   0xa   :  { %v2632_v25 = vld [vmem:[%s3925_s1 + $0x464] ss:$8 sps:$4 sm:$0xff]   ;;  %v2635_v27 = vld [vmem:[%s3925_s1 + $0x460] ss:$8 sps:$4 sm:$0xff]   ;;  %v2638_v29 = vld [vmem:[%s3925_s1 + $0x474] ss:$8 sps:$4 sm:$0xff]  }
   0xb   :  { %1759 = vmatpush1.bf16.msra.mxu1 %v2610_v10  ;;  %v2640_v30 = vld [vmem:[%s3925_s1 + $0x70] ss:$8 sps:$4 sm:$0xff]   ;;  %v2642_v32 = vld [vmem:[%s3925_s1 + $0x84] ss:$8 sps:$4 sm:$0xff]   ;;  %v2646_v34 = vld [vmem:[%s3925_s1 + $0x80] ss:$8 sps:$4 sm:$0xff]  }
   0xc   :  { %1971 = vmatpush1.bf16.msra.mxu0 %v2611_v11  ;;  %1760 = vmatprep.subr.bf16.mxu1 %v2612_v12  ;;  %v2641_v31 = vld [vmem:[%s3925_s1 + $0x470] ss:$8 sps:$4 sm:$0xff]   ;;  %v2644_v33 = vld [vmem:[%s3925_s1 + $0x484] ss:$8 sps:$4 sm:$0xff]   ;;  %v2647_v35 = vld [vmem:[%s3925_s1 + $0x480] ss:$8 sps:$4 sm:$0xff]  }
   0xd   :  { %1972 = vmatprep.subr.bf16.mxu0 %v2614_v13  ;;  %v2648_v36 = vld [vmem:[%s3925_s1 + $0x94] ss:$8 sps:$4 sm:$0xff]   ;;  %v2652_v38 = vld [vmem:[%s3925_s1 + $0x90] ss:$8 sps:$4 sm:$0xff]   ;;  %v2654_v40 = vld [vmem:[%s3925_s1 + $0xa4] ss:$8 sps:$4 sm:$0xff]  }
   0xe   :  { %v2650_v37 = vld [vmem:[%s3925_s1 + $0x494] ss:$8 sps:$4 sm:$0xff]   ;;  %v2653_v39 = vld [vmem:[%s3925_s1 + $0x490] ss:$8 sps:$4 sm:$0xff]   ;;  %v2656_v41 = vld [vmem:[%s3925_s1 + $0x4a4] ss:$8 sps:$4 sm:$0xff]  }
   0xf   :  { %1761 = vmatpush1.bf16.msra.mxu1 %v2616_v14  ;;  %v2658_v42 = vld [vmem:[%s3925_s1 + $0xa0] ss:$8 sps:$4 sm:$0xff]   ;;  %v2660_v44 = vld [vmem:[%s3925_s1 + $0xb4] ss:$8 sps:$4 sm:$0xff]   ;;  %v2664_v46 = vld [vmem:[%s3925_s1 + $0xb0] ss:$8 sps:$4 sm:$0xff]  }
  0x10   :  { %1973 = vmatpush1.bf16.msra.mxu0 %v2617_v15  ;;  %1762 = vmatprep.subr.bf16.mxu1 %v2618_v16  ;;  %v2659_v43 = vld [vmem:[%s3925_s1 + $0x4a0] ss:$8 sps:$4 sm:$0xff]   ;;  %v2662_v45 = vld [vmem:[%s3925_s1 + $0x4b4] ss:$8 sps:$4 sm:$0xff]   ;;  %v2665_v47 = vld [vmem:[%s3925_s1 + $0x4b0] ss:$8 sps:$4 sm:$0xff]  }
  0x11   :  { %1974 = vmatprep.subr.bf16.mxu0 %v2620_v17  ;;  %v14_v48 = vld [vmem:[%s3926_s0] sm:$0xff]  ;;  %v2672_v58 = vld [vmem:[%s3925_s1 + $0xd4] ss:$8 sps:$4 sm:$0xff]   ;;  %v2676_v60 = vld [vmem:[%s3925_s1 + $0xd0] ss:$8 sps:$4 sm:$0xff]  }
  0x12   :  { %v22_v49 = vld [vmem:[%s3926_s0 + $0x40] sm:$0xff]  ;;  %v2674_v59 = vld [vmem:[%s3925_s1 + $0x4d4] ss:$8 sps:$4 sm:$0xff]   ;;  %v2677_v61 = vld [vmem:[%s3925_s1 + $0x4d0] ss:$8 sps:$4 sm:$0xff]  }
  0x13   :  { %1763 = vmatpush1.bf16.msra.mxu1 %v2622_v18  ;;  %v2666_v50 = vld [vmem:[%s3925_s1 + $0xc4] ss:$8 sps:$4 sm:$0xff]   ;;  %v2235_v52 = vcombine.high %v14_v48, %v22_v49  ;;  %v2670_v56 = vld [vmem:[%s3925_s1 + $0xc0] ss:$8 sps:$4 sm:$0xff]   ;;  %v2684_v2 = vld [vmem:[%s3925_s1 + $0xf4] ss:$8 sps:$4 sm:$0xff]   ;;  %v2234_v8 = vcombine.low %v14_v48, %v22_v49 }
  0x14   :  { %1975 = vmatpush1.bf16.msra.mxu0 %v2623_v19  ;;  %1764 = vmatprep.subr.bf16.mxu1 %v2624_v20  ;;  %v2668_v51 = vld [vmem:[%s3925_s1 + $0x4c4] ss:$8 sps:$4 sm:$0xff]   ;;  %v2671_v57 = vld [vmem:[%s3925_s1 + $0x4c0] ss:$8 sps:$4 sm:$0xff]   ;;  %v2686_v3 = vld [vmem:[%s3925_s1 + $0x4f4] ss:$8 sps:$4 sm:$0xff]  }
  0x15   :  { %1976 = vmatprep.subr.bf16.mxu0 %v2626_v21  ;;  %v18_v53 = vld [vmem:[%s3926_s0 + $0x20] sm:$0xff]  ;;  %1786 = vmatprep.mubr.bf16.mxu1 %v2235_v52  ;;  %v2688_v4 = vld [vmem:[%s3925_s1 + $0xf0] ss:$8 sps:$4 sm:$0xff]   ;;  %v2698_v12 = vld [vmem:[%s3925_s1 + $0x114] ss:$8 sps:$4 sm:$0xff]  }
  0x16   :  { %v26_v54 = vld [vmem:[%s3926_s0 + $0x60] sm:$0xff]  ;;  %v2689_v5 = vld [vmem:[%s3925_s1 + $0x4f0] ss:$8 sps:$4 sm:$0xff]   ;;  %v2701_v13 = vld [vmem:[%s3925_s1 + $0x514] ss:$8 sps:$4 sm:$0xff]  }
  0x17   :  { %1765 = vmatpush1.bf16.msra.mxu1 %v2628_v22  ;;  %v2243_v55 = vcombine.high %v18_v53, %v26_v54  ;;  %v2678_v62 = vld [vmem:[%s3925_s1 + $0xe4] ss:$8 sps:$4 sm:$0xff]   ;;  %v2682_v0 = vld [vmem:[%s3925_s1 + $0xe0] ss:$8 sps:$4 sm:$0xff]   ;;  %v2242_v10 = vcombine.low %v18_v53, %v26_v54  ;;  %v2696_v14 = vld [vmem:[%s3925_s1 + $0x110] ss:$8 sps:$4 sm:$0xff]  }
  0x18   :  { %1977 = vmatpush1.bf16.msra.mxu0 %v2629_v23  ;;  %1766 = vmatprep.subr.bf16.mxu1 %v2630_v24  ;;  %v2680_v63 = vld [vmem:[%s3925_s1 + $0x4e4] ss:$8 sps:$4 sm:$0xff]   ;;  %v2683_v1 = vld [vmem:[%s3925_s1 + $0x4e0] ss:$8 sps:$4 sm:$0xff]   ;;  %v2699_v15 = vld [vmem:[%s3925_s1 + $0x510] ss:$8 sps:$4 sm:$0xff]  }
  0x19   :  { %1978 = vmatprep.subr.bf16.mxu0 %v2632_v25  ;;  %1998 = vmatprep.mubr.bf16.mxu0 %v2243_v55  ;;  %v2692_v6 = vld [vmem:[%s3925_s1 + $0x104] ss:$8 sps:$4 sm:$0xff]   ;;  %v2690_v9 = vld [vmem:[%s3925_s1 + $0x100] ss:$8 sps:$4 sm:$0xff]   ;;  %v2710_v20 = vld [vmem:[%s3925_s1 + $0x134] ss:$8 sps:$4 sm:$0xff]  }
  0x1a   :  { %v2695_v7 = vld [vmem:[%s3925_s1 + $0x504] ss:$8 sps:$4 sm:$0xff]   ;;  %v2693_v11 = vld [vmem:[%s3925_s1 + $0x500] ss:$8 sps:$4 sm:$0xff]   ;;  %v2713_v21 = vld [vmem:[%s3925_s1 + $0x534] ss:$8 sps:$4 sm:$0xff]  }
  0x1b   :  { %1767 = vmatpush1.bf16.msra.mxu1 %v2634_v26  ;;  %v2704_v16 = vld [vmem:[%s3925_s1 + $0x124] ss:$8 sps:$4 sm:$0xff]   ;;  %v2702_v18 = vld [vmem:[%s3925_s1 + $0x120] ss:$8 sps:$4 sm:$0xff]   ;;  %v2708_v22 = vld [vmem:[%s3925_s1 + $0x130] ss:$8 sps:$4 sm:$0xff]  }
  0x1c   :  { %1979 = vmatpush1.bf16.msra.mxu0 %v2635_v27  ;;  %1768 = vmatprep.subr.bf16.mxu1 %v2636_v28  ;;  %v2707_v17 = vld [vmem:[%s3925_s1 + $0x524] ss:$8 sps:$4 sm:$0xff]   ;;  %v2705_v19 = vld [vmem:[%s3925_s1 + $0x520] ss:$8 sps:$4 sm:$0xff]   ;;  %v2711_v23 = vld [vmem:[%s3925_s1 + $0x530] ss:$8 sps:$4 sm:$0xff]  }
  0x1d   :  { %1980 = vmatprep.subr.bf16.mxu0 %v2638_v29  ;;  %v2716_v24 = vld [vmem:[%s3925_s1 + $0x144] ss:$8 sps:$4 sm:$0xff]   ;;  %v2714_v26 = vld [vmem:[%s3925_s1 + $0x140] ss:$8 sps:$4 sm:$0xff]   ;;  %v2722_v28 = vld [vmem:[%s3925_s1 + $0x154] ss:$8 sps:$4 sm:$0xff]  }
  0x1e   :  { %v2719_v25 = vld [vmem:[%s3925_s1 + $0x544] ss:$8 sps:$4 sm:$0xff]   ;;  %v2717_v27 = vld [vmem:[%s3925_s1 + $0x540] ss:$8 sps:$4 sm:$0xff]   ;;  %v2725_v29 = vld [vmem:[%s3925_s1 + $0x554] ss:$8 sps:$4 sm:$0xff]  }
  0x1f   :  { %1769 = vmatpush1.bf16.msra.mxu1 %v2640_v30  ;;  %v30_v30 = vld [vmem:[%s3926_s0 + $0x80] sm:$0xff]  ;;  %v3319_v49 = vld [vmem:[%s3926_s0 + $0x28] sm:$0xff]  ;;  %v2735_v52 = vld [vmem:[%s3925_s1 + $0x570] ss:$8 sps:$4 sm:$0xff]  }
  0x20   :  { %1981 = vmatpush1.bf16.msra.mxu0 %v2641_v31  ;;  %1770 = vmatprep.subr.bf16.mxu1 %v2642_v32  ;;  %v38_v31 = vld [vmem:[%s3926_s0 + $0xc0] sm:$0xff]  ;;  %v2720_v32 = vld [vmem:[%s3925_s1 + $0x150] ss:$8 sps:$4 sm:$0xff]  }
  0x21   :  { %1982 = vmatprep.subr.bf16.mxu0 %v2644_v33  ;;  %v2251_v33 = vcombine.high %v30_v30, %v38_v31  ;;  %v2740_v54 = vld [vmem:[%s3925_s1 + $0x184] ss:$8 sps:$4 sm:$0xff]  }
  0x22   :  { %v2743_v55 = vld [vmem:[%s3925_s1 + $0x584] ss:$8 sps:$4 sm:$0xff]  }
  0x23   :  { %1771 = vmatpush1.bf16.msra.mxu1 %v2646_v34  ;;  %v2723_v34 = vld [vmem:[%s3925_s1 + $0x550] ss:$8 sps:$4 sm:$0xff]  }
  0x24   :  { %1983 = vmatpush1.bf16.msra.mxu0 %v2647_v35  ;;  %1772 = vmatprep.subr.bf16.mxu1 %v2648_v36  ;;  %v34_v35 = vld [vmem:[%s3926_s0 + $0xa0] sm:$0xff] }
  0x25   :  { %1984 = vmatprep.subr.bf16.mxu0 %v2650_v37  ;;  %v42_v36 = vld [vmem:[%s3926_s0 + $0xe0] sm:$0xff]  ;;  %v2250_v37 = vcombine.low %v30_v30, %v38_v31  ;;  %v2794_v30 = vld [vmem:[%s3925_s1 + $0x214] ss:$8 sps:$4 sm:$0xff]  }
  0x26   :  { %v2797_v31 = vld [vmem:[%s3925_s1 + $0x614] ss:$8 sps:$4 sm:$0xff]  }
  0x27   :  { %1773 = vmatpush1.bf16.msra.mxu1 %v2652_v38  ;;  %v2728_v38 = vld [vmem:[%s3925_s1 + $0x164] ss:$8 sps:$4 sm:$0xff]  }
  0x28   :  { %1985 = vmatpush1.bf16.msra.mxu0 %v2653_v39  ;;  %1774 = vmatprep.subr.bf16.mxu1 %v2654_v40  ;;  %v2259_v39 = vcombine.high %v34_v35, %v42_v36  ;;  %v2258_v40 = vcombine.low %v34_v35, %v42_v36  ;;  %v2792_v36 = vld [vmem:[%s3925_s1 + $0x210] ss:$8 sps:$4 sm:$0xff]  }
  0x29   :  { %1986 = vmatprep.subr.bf16.mxu0 %v2656_v41  ;;  %v2731_v41 = vld [vmem:[%s3925_s1 + $0x564] ss:$8 sps:$4 sm:$0xff]  }
  0x2b   :  { %1775 = vmatpush1.bf16.msra.mxu1 %v2658_v42  ;;  %v2726_v42 = vld [vmem:[%s3925_s1 + $0x160] ss:$8 sps:$4 sm:$0xff]  }
  0x2c   :  { %1987 = vmatpush1.bf16.msra.mxu0 %v2659_v43  ;;  %1776 = vmatprep.subr.bf16.mxu1 %v2660_v44  ;;  %v2729_v43 = vld [vmem:[%s3925_s1 + $0x560] ss:$8 sps:$4 sm:$0xff]  }
  0x2d   :  { %1988 = vmatprep.subr.bf16.mxu0 %v2662_v45  ;;  %v3301_v44 = vld [vmem:[%s3926_s0 + $0x8] sm:$0xff] }
  0x2e   :  { %v3306_v45 = vld [vmem:[%s3926_s0 + $0x48] sm:$0xff] }
  0x2f   :  { %1777 = vmatpush1.bf16.msra.mxu1 %v2664_v46  ;;  %v2734_v46 = vld [vmem:[%s3925_s1 + $0x174] ss:$8 sps:$4 sm:$0xff]   ;;  %v2237_v48 = vcombine.high %v3301_v44, %v3306_v45 }
  0x30   :  { %1989 = vmatpush1.bf16.msra.mxu0 %v2665_v47  ;;  %1778 = vmatprep.subr.bf16.mxu1 %v2666_v50  ;;  %v2737_v47 = vld [vmem:[%s3925_s1 + $0x574] ss:$8 sps:$4 sm:$0xff]   ;;  %v3324_v50 = vld [vmem:[%s3926_s0 + $0x68] sm:$0xff] }
  0x31   :  { %1990 = vmatprep.subr.bf16.mxu0 %v2668_v51  ;;  %v2732_v51 = vld [vmem:[%s3925_s1 + $0x170] ss:$8 sps:$4 sm:$0xff]   ;;  %v2245_v53 = vcombine.high %v3319_v49, %v3324_v50 }
  0x33   :  { %1779 = vmatpush1.bf16.msra.mxu1 %v2670_v56  ;;  %v2738_v56 = vld [vmem:[%s3925_s1 + $0x180] ss:$8 sps:$4 sm:$0xff]  }
  0x34   :  { %1991 = vmatpush1.bf16.msra.mxu0 %v2671_v57  ;;  %1780 = vmatprep.subr.bf16.mxu1 %v2672_v58  ;;  %v2741_v57 = vld [vmem:[%s3925_s1 + $0x580] ss:$8 sps:$4 sm:$0xff]   ;;  %v2746_v58 = vld [vmem:[%s3925_s1 + $0x194] ss:$8 sps:$4 sm:$0xff]  }
  0x35   :  { %1992 = vmatprep.subr.bf16.mxu0 %v2674_v59  ;;  %v2749_v59 = vld [vmem:[%s3925_s1 + $0x594] ss:$8 sps:$4 sm:$0xff]  }
  0x37   :  { %1781 = vmatpush1.bf16.msra.mxu1 %v2676_v60  ;;  %v2744_v60 = vld [vmem:[%s3925_s1 + $0x190] ss:$8 sps:$4 sm:$0xff]  }
  0x38   :  { %1993 = vmatpush1.bf16.msra.mxu0 %v2677_v61  ;;  %1782 = vmatprep.subr.bf16.mxu1 %v2678_v62  ;;  %v2747_v61 = vld [vmem:[%s3925_s1 + $0x590] ss:$8 sps:$4 sm:$0xff]   ;;  %v2752_v62 = vld [vmem:[%s3925_s1 + $0x1a4] ss:$8 sps:$4 sm:$0xff]  }
  0x39   :  { %1994 = vmatprep.subr.bf16.mxu0 %v2680_v63  ;;  %v2755_v63 = vld [vmem:[%s3925_s1 + $0x5a4] ss:$8 sps:$4 sm:$0xff]  }
  0x3b   :  { %1783 = vmatpush1.bf16.msra.mxu1 %v2682_v0  ;;  %v2750_v0 = vld [vmem:[%s3925_s1 + $0x1a0] ss:$8 sps:$4 sm:$0xff]  }
  0x3c   :  { %1995 = vmatpush1.bf16.msra.mxu0 %v2683_v1  ;;  %1784 = vmatprep.subr.bf16.mxu1 %v2684_v2  ;;  %v2753_v1 = vld [vmem:[%s3925_s1 + $0x5a0] ss:$8 sps:$4 sm:$0xff]   ;;  %v2758_v2 = vld [vmem:[%s3925_s1 + $0x1b4] ss:$8 sps:$4 sm:$0xff]  }
  0x3d   :  { %1996 = vmatprep.subr.bf16.mxu0 %v2686_v3  ;;  %v2761_v3 = vld [vmem:[%s3925_s1 + $0x5b4] ss:$8 sps:$4 sm:$0xff]  }
  0x3f   :  { %1785 = vmatpush1.bf16.msra.mxu1 %v2688_v4  ;;  %v2756_v4 = vld [vmem:[%s3925_s1 + $0x1b0] ss:$8 sps:$4 sm:$0xff]  }
  0x40   :  { %1997 = vmatpush1.bf16.msra.mxu0 %v2689_v5  ;;  %1807 = vmatprep.subr.bf16.mxu1 %v2692_v6  ;;  %v2759_v5 = vld [vmem:[%s3925_s1 + $0x5b0] ss:$8 sps:$4 sm:$0xff]   ;;  %v2764_v6 = vld [vmem:[%s3925_s1 + $0x1c4] ss:$8 sps:$4 sm:$0xff]  }
  0x41   :  { %2019 = vmatprep.subr.bf16.mxu0 %v2695_v7  ;;  %v2767_v7 = vld [vmem:[%s3925_s1 + $0x5c4] ss:$8 sps:$4 sm:$0xff]  }
  0x42   :  { %1787 = vmatmul.mubr.bf16.vlgmr.msra.gmra.mrb[0].mxu1 %v2234_v8  ;;  %v2762_v8 = vld [vmem:[%s3925_s1 + $0x1c0] ss:$8 sps:$4 sm:$0xff]  }
  0x43   :  { %1999 = vmatmul.mubr.bf16.vlgmr.msra.gmra.mrb[0].mxu0 %v2242_v10  ;;  %1808 = vmatpush1.bf16.msra.mxu1 %v2690_v9  ;;  %v2765_v9 = vld [vmem:[%s3925_s1 + $0x5c0] ss:$8 sps:$4 sm:$0xff]   ;;  %v2770_v10 = vld [vmem:[%s3925_s1 + $0x1d4] ss:$8 sps:$4 sm:$0xff]  }
  0x44   :  { %2020 = vmatpush1.bf16.msra.mxu0 %v2693_v11  ;;  %1809 = vmatprep.subr.bf16.mxu1 %v2698_v12  ;;  %v2773_v11 = vld [vmem:[%s3925_s1 + $0x5d4] ss:$8 sps:$4 sm:$0xff]   ;;  %v2768_v12 = vld [vmem:[%s3925_s1 + $0x1d0] ss:$8 sps:$4 sm:$0xff]  }
  0x45   :  { %2021 = vmatprep.subr.bf16.mxu0 %v2701_v13  ;;  %1796 = vmatprep.mubr.bf16.mxu1 %v2251_v33  ;;  %v2771_v13 = vld [vmem:[%s3925_s1 + $0x5d0] ss:$8 sps:$4 sm:$0xff]   ;;  %v43_v33 = vld [vmem:[%s3926_s0 + $0xe8] sm:$0xff] }
  0x46   :  { %2008 = vmatprep.mubr.bf16.mxu0 %v2259_v39  ;;  %v2803_v39 = vld [vmem:[%s3925_s1 + $0x624] ss:$8 sps:$4 sm:$0xff]  }
  0x47   :  { %1810 = vmatpush1.bf16.msra.mxu1 %v2696_v14  ;;  %v2776_v14 = vld [vmem:[%s3925_s1 + $0x1e4] ss:$8 sps:$4 sm:$0xff]  }
  0x48   :  { %2022 = vmatpush1.bf16.msra.mxu0 %v2699_v15  ;;  %1811 = vmatprep.subr.bf16.mxu1 %v2704_v16  ;;  %v2779_v15 = vld [vmem:[%s3925_s1 + $0x5e4] ss:$8 sps:$4 sm:$0xff]   ;;  %v2774_v16 = vld [vmem:[%s3925_s1 + $0x1e0] ss:$8 sps:$4 sm:$0xff]  }
  0x49   :  { %2023 = vmatprep.subr.bf16.mxu0 %v2707_v17  ;;  %v2777_v17 = vld [vmem:[%s3925_s1 + $0x5e0] ss:$8 sps:$4 sm:$0xff]  }
  0x4a   :  { %1797 = vmatmul.mubr.bf16.gmra.mrb[4].mxu1 %v2250_v37  ;;  %v2795_v37 = vld [vmem:[%s3925_s1 + $0x610] ss:$8 sps:$4 sm:$0xff]  }
  0x4b   :  { %1812 = vmatpush1.bf16.msra.mxu1 %v2702_v18  ;;  %2009 = vmatmul.mubr.bf16.gmra.mrb[4].mxu0 %v2258_v40  ;;  %v2782_v18 = vld [vmem:[%s3925_s1 + $0x1f4] ss:$8 sps:$4 sm:$0xff]   ;;  %v2798_v40 = vld [vmem:[%s3925_s1 + $0x220] ss:$8 sps:$4 sm:$0xff]  }
  0x4c   :  { %2024 = vmatpush1.bf16.msra.mxu0 %v2705_v19  ;;  %1813 = vmatprep.subr.bf16.mxu1 %v2710_v20  ;;  %v2785_v19 = vld [vmem:[%s3925_s1 + $0x5f4] ss:$8 sps:$4 sm:$0xff]   ;;  %v2780_v20 = vld [vmem:[%s3925_s1 + $0x1f0] ss:$8 sps:$4 sm:$0xff]  }
  0x4d   :  { %2025 = vmatprep.subr.bf16.mxu0 %v2713_v21  ;;  %1839 = vmatprep.mubr.bf16.mxu1 %v2237_v48  ;;  %v2783_v21 = vld [vmem:[%s3925_s1 + $0x5f0] ss:$8 sps:$4 sm:$0xff]   ;;  %v2806_v48 = vld [vmem:[%s3925_s1 + $0x234] ss:$8 sps:$4 sm:$0xff]  }
  0x4e   :  { %2051 = vmatprep.mubr.bf16.mxu0 %v2245_v53  ;;  %v2807_v53 = vld [vmem:[%s3925_s1 + $0x630] ss:$8 sps:$4 sm:$0xff]  }
  0x4f   :  { %1814 = vmatpush1.bf16.msra.mxu1 %v2708_v22  ;;  %v2788_v22 = vld [vmem:[%s3925_s1 + $0x204] ss:$8 sps:$4 sm:$0xff]  }
  0x50   :  { %2026 = vmatpush1.bf16.msra.mxu0 %v2711_v23  ;;  %1815 = vmatprep.subr.bf16.mxu1 %v2716_v24  ;;  %v2791_v23 = vld [vmem:[%s3925_s1 + $0x604] ss:$8 sps:$4 sm:$0xff]   ;;  %v2786_v24 = vld [vmem:[%s3925_s1 + $0x200] ss:$8 sps:$4 sm:$0xff]  }
  0x51   :  { %2027 = vmatprep.subr.bf16.mxu0 %v2719_v25  ;;  %v2789_v25 = vld [vmem:[%s3925_s1 + $0x600] ss:$8 sps:$4 sm:$0xff]  }
  0x53   :  { %1816 = vmatpush1.bf16.msra.mxu1 %v2714_v26  ;;  %v31_v26 = vld [vmem:[%s3926_s0 + $0x88] sm:$0xff] }
  0x54   :  { %2028 = vmatpush1.bf16.msra.mxu0 %v2717_v27  ;;  %1817 = vmatprep.subr.bf16.mxu1 %v2722_v28  ;;  %v2236_v27 = vcombine.low %v3301_v44, %v3306_v45  ;;  %v2244_v28 = vcombine.low %v3319_v49, %v3324_v50  ;;  %v3490_v45 = vld [vmem:[%s3926_s0 + $0x50] sm:$0xff] }
  0x55   :  { %2029 = vmatprep.subr.bf16.mxu0 %v2725_v29  ;;  %v39_v29 = vld [vmem:[%s3926_s0 + $0xc8] sm:$0xff]  ;;  %v2809_v49 = vld [vmem:[%s3925_s1 + $0x634] ss:$8 sps:$4 sm:$0xff]  }
  0x57   :  { %1818 = vmatpush1.bf16.msra.mxu1 %v2720_v32  ;;  %v35_v32 = vld [vmem:[%s3926_s0 + $0xa8] sm:$0xff] }
  0x58   :  { %2030 = vmatpush1.bf16.msra.mxu0 %v2723_v34  ;;  %1819 = vmatprep.subr.bf16.mxu1 %v2728_v38  ;;  %v2253_v34 = vcombine.high %v31_v26, %v39_v29  ;;  %v2261_v35 = vcombine.high %v35_v32, %v43_v33  ;;  %v2800_v38 = vld [vmem:[%s3925_s1 + $0x224] ss:$8 sps:$4 sm:$0xff]   ;;  %v2260_v44 = vcombine.low %v35_v32, %v43_v33  ;;  %v2870_v32 = vld [vmem:[%s3925_s1 + $0x2e0] ss:$8 sps:$4 sm:$0xff]  }
  0x59   :  { %2031 = vmatprep.subr.bf16.mxu0 %v2731_v41  ;;  %v2801_v41 = vld [vmem:[%s3925_s1 + $0x620] ss:$8 sps:$4 sm:$0xff]  }
  0x5a   :  { %v2873_v33 = vld [vmem:[%s3925_s1 + $0x6e0] ss:$8 sps:$4 sm:$0xff]  }
  0x5b   :  { %1820 = vmatpush1.bf16.msra.mxu1 %v2726_v42  ;;  %v3485_v42 = vld [vmem:[%s3926_s0 + $0x10] sm:$0xff] }
  0x5c   :  { %2032 = vmatpush1.bf16.msra.mxu0 %v2729_v43  ;;  %1821 = vmatprep.subr.bf16.mxu1 %v2734_v46  ;;  %v2252_v43 = vcombine.low %v31_v26, %v39_v29  ;;  %v3495_v46 = vld [vmem:[%s3926_s0 + $0x30] sm:$0xff]  ;;  %v2239_v50 = vcombine.high %v3485_v42, %v3490_v45 }
  0x5d   :  { %2033 = vmatprep.subr.bf16.mxu0 %v2737_v47  ;;  %v3500_v47 = vld [vmem:[%s3926_s0 + $0x70] sm:$0xff] }
  0x5e   :  { %v2866_v26 = vld [vmem:[%s3925_s1 + $0x2d4] ss:$8 sps:$4 sm:$0xff]   ;;  %v2867_v29 = vld [vmem:[%s3925_s1 + $0x6d0] ss:$8 sps:$4 sm:$0xff]  }
  0x5f   :  { %1822 = vmatpush1.bf16.msra.mxu1 %v2732_v51  ;;  %v2247_v51 = vcombine.high %v3495_v46, %v3500_v47 }
  0x60   :  { %2034 = vmatpush1.bf16.msra.mxu0 %v2735_v52  ;;  %1823 = vmatprep.subr.bf16.mxu1 %v2740_v54  ;;  %v2804_v52 = vld [vmem:[%s3925_s1 + $0x230] ss:$8 sps:$4 sm:$0xff]   ;;  %v2812_v54 = vld [vmem:[%s3925_s1 + $0x244] ss:$8 sps:$4 sm:$0xff]  }
  0x61   :  { %2035 = vmatprep.subr.bf16.mxu0 %v2743_v55  ;;  %v2815_v55 = vld [vmem:[%s3925_s1 + $0x644] ss:$8 sps:$4 sm:$0xff]  }
  0x63   :  { %1824 = vmatpush1.bf16.msra.mxu1 %v2738_v56  ;;  %v2810_v56 = vld [vmem:[%s3925_s1 + $0x240] ss:$8 sps:$4 sm:$0xff]  }
  0x64   :  { %2036 = vmatpush1.bf16.msra.mxu0 %v2741_v57  ;;  %1825 = vmatprep.subr.bf16.mxu1 %v2746_v58  ;;  %v2813_v57 = vld [vmem:[%s3925_s1 + $0x640] ss:$8 sps:$4 sm:$0xff]   ;;  %v2818_v58 = vld [vmem:[%s3925_s1 + $0x254] ss:$8 sps:$4 sm:$0xff]  }
  0x65   :  { %2037 = vmatprep.subr.bf16.mxu0 %v2749_v59  ;;  %v2821_v59 = vld [vmem:[%s3925_s1 + $0x654] ss:$8 sps:$4 sm:$0xff]  }
  0x67   :  { %1826 = vmatpush1.bf16.msra.mxu1 %v2744_v60  ;;  %v2816_v60 = vld [vmem:[%s3925_s1 + $0x250] ss:$8 sps:$4 sm:$0xff]  }
  0x68   :  { %2038 = vmatpush1.bf16.msra.mxu0 %v2747_v61  ;;  %1827 = vmatprep.subr.bf16.mxu1 %v2752_v62  ;;  %v2819_v61 = vld [vmem:[%s3925_s1 + $0x650] ss:$8 sps:$4 sm:$0xff]   ;;  %v2824_v62 = vld [vmem:[%s3925_s1 + $0x264] ss:$8 sps:$4 sm:$0xff]  }
  0x69   :  { %2039 = vmatprep.subr.bf16.mxu0 %v2755_v63  ;;  %v2827_v63 = vld [vmem:[%s3925_s1 + $0x664] ss:$8 sps:$4 sm:$0xff]  }
  0x6b   :  { %1828 = vmatpush1.bf16.msra.mxu1 %v2750_v0  ;;  %v2822_v0 = vld [vmem:[%s3925_s1 + $0x260] ss:$8 sps:$4 sm:$0xff]  }
  0x6c   :  { %2040 = vmatpush1.bf16.msra.mxu0 %v2753_v1  ;;  %1829 = vmatprep.subr.bf16.mxu1 %v2758_v2  ;;  %v2825_v1 = vld [vmem:[%s3925_s1 + $0x660] ss:$8 sps:$4 sm:$0xff]   ;;  %v2830_v2 = vld [vmem:[%s3925_s1 + $0x274] ss:$8 sps:$4 sm:$0xff]  }
  0x6d   :  { %2041 = vmatprep.subr.bf16.mxu0 %v2761_v3  ;;  %v2833_v3 = vld [vmem:[%s3925_s1 + $0x674] ss:$8 sps:$4 sm:$0xff]  }
  0x6f   :  { %1830 = vmatpush1.bf16.msra.mxu1 %v2756_v4  ;;  %v2828_v4 = vld [vmem:[%s3925_s1 + $0x270] ss:$8 sps:$4 sm:$0xff]  }
  0x70   :  { %2042 = vmatpush1.bf16.msra.mxu0 %v2759_v5  ;;  %1831 = vmatprep.subr.bf16.mxu1 %v2764_v6  ;;  %v2831_v5 = vld [vmem:[%s3925_s1 + $0x670] ss:$8 sps:$4 sm:$0xff]   ;;  %v2836_v6 = vld [vmem:[%s3925_s1 + $0x284] ss:$8 sps:$4 sm:$0xff]  }
  0x71   :  { %2043 = vmatprep.subr.bf16.mxu0 %v2767_v7  ;;  %v2839_v7 = vld [vmem:[%s3925_s1 + $0x684] ss:$8 sps:$4 sm:$0xff]  }
  0x73   :  { %1832 = vmatpush1.bf16.msra.mxu1 %v2762_v8  ;;  %v2834_v8 = vld [vmem:[%s3925_s1 + $0x280] ss:$8 sps:$4 sm:$0xff]  }
  0x74   :  { %2044 = vmatpush1.bf16.msra.mxu0 %v2765_v9  ;;  %1833 = vmatprep.subr.bf16.mxu1 %v2770_v10  ;;  %v2837_v9 = vld [vmem:[%s3925_s1 + $0x680] ss:$8 sps:$4 sm:$0xff]   ;;  %v2842_v10 = vld [vmem:[%s3925_s1 + $0x294] ss:$8 sps:$4 sm:$0xff]  }
  0x75   :  { %2045 = vmatprep.subr.bf16.mxu0 %v2773_v11  ;;  %v2845_v11 = vld [vmem:[%s3925_s1 + $0x694] ss:$8 sps:$4 sm:$0xff]  }
  0x77   :  { %1834 = vmatpush1.bf16.msra.mxu1 %v2768_v12  ;;  %v2840_v12 = vld [vmem:[%s3925_s1 + $0x290] ss:$8 sps:$4 sm:$0xff]  }
  0x78   :  { %2046 = vmatpush1.bf16.msra.mxu0 %v2771_v13  ;;  %1835 = vmatprep.subr.bf16.mxu1 %v2776_v14  ;;  %v2843_v13 = vld [vmem:[%s3925_s1 + $0x690] ss:$8 sps:$4 sm:$0xff]   ;;  %v2848_v14 = vld [vmem:[%s3925_s1 + $0x2a4] ss:$8 sps:$4 sm:$0xff]  }
  0x79   :  { %2047 = vmatprep.subr.bf16.mxu0 %v2779_v15  ;;  %v2851_v15 = vld [vmem:[%s3925_s1 + $0x6a4] ss:$8 sps:$4 sm:$0xff]  }
  0x7b   :  { %1836 = vmatpush1.bf16.msra.mxu1 %v2774_v16  ;;  %v2846_v16 = vld [vmem:[%s3925_s1 + $0x2a0] ss:$8 sps:$4 sm:$0xff]  }
  0x7c   :  { %2048 = vmatpush1.bf16.msra.mxu0 %v2777_v17  ;;  %1837 = vmatprep.subr.bf16.mxu1 %v2782_v18  ;;  %v2849_v17 = vld [vmem:[%s3925_s1 + $0x6a0] ss:$8 sps:$4 sm:$0xff]   ;;  %v2854_v18 = vld [vmem:[%s3925_s1 + $0x2b4] ss:$8 sps:$4 sm:$0xff]  }
  0x7d   :  { %2049 = vmatprep.subr.bf16.mxu0 %v2785_v19  ;;  %v2857_v19 = vld [vmem:[%s3925_s1 + $0x6b4] ss:$8 sps:$4 sm:$0xff]  }
  0x7f   :  { %1838 = vmatpush1.bf16.msra.mxu1 %v2780_v20  ;;  %v2852_v20 = vld [vmem:[%s3925_s1 + $0x2b0] ss:$8 sps:$4 sm:$0xff]  }
  0x80   :  { %2050 = vmatpush1.bf16.msra.mxu0 %v2783_v21  ;;  %1860 = vmatprep.subr.bf16.mxu1 %v2788_v22  ;;  %v2855_v21 = vld [vmem:[%s3925_s1 + $0x6b0] ss:$8 sps:$4 sm:$0xff]   ;;  %v2860_v22 = vld [vmem:[%s3925_s1 + $0x2c4] ss:$8 sps:$4 sm:$0xff]  }
  0x81   :  { %2072 = vmatprep.subr.bf16.mxu0 %v2791_v23  ;;  %v2863_v23 = vld [vmem:[%s3925_s1 + $0x6c4] ss:$8 sps:$4 sm:$0xff]  }
  0x82   :  { %1840 = vmatmul.mubr.bf16.vlgmr.msra.gmra.mrb[0].mxu1 %v2236_v27  ;;  %v2869_v27 = vld [vmem:[%s3925_s1 + $0x6d4] ss:$8 sps:$4 sm:$0xff]  }
  0x83   :  { %2052 = vmatmul.mubr.bf16.vlgmr.msra.gmra.mrb[0].mxu0 %v2244_v28  ;;  %1861 = vmatpush1.bf16.msra.mxu1 %v2786_v24  ;;  %v2858_v24 = vld [vmem:[%s3925_s1 + $0x2c0] ss:$8 sps:$4 sm:$0xff]   ;;  %v2864_v28 = vld [vmem:[%s3925_s1 + $0x2d0] ss:$8 sps:$4 sm:$0xff]  }
  0x84   :  { %2073 = vmatpush1.bf16.msra.mxu0 %v2789_v25  ;;  %1862 = vmatprep.subr.bf16.mxu1 %v2794_v30  ;;  %v2861_v25 = vld [vmem:[%s3925_s1 + $0x6c0] ss:$8 sps:$4 sm:$0xff]   ;;  %v2872_v30 = vld [vmem:[%s3925_s1 + $0x2e4] ss:$8 sps:$4 sm:$0xff]  }
  0x85   :  { %2074 = vmatprep.subr.bf16.mxu0 %v2797_v31  ;;  %1849 = vmatprep.mubr.bf16.mxu1 %v2253_v34  ;;  %v2875_v31 = vld [vmem:[%s3925_s1 + $0x6e4] ss:$8 sps:$4 sm:$0xff]   ;;  %v2878_v34 = vld [vmem:[%s3925_s1 + $0x2f4] ss:$8 sps:$4 sm:$0xff]  }
  0x86   :  { %2061 = vmatprep.mubr.bf16.mxu0 %v2261_v35  ;;  %v2881_v35 = vld [vmem:[%s3925_s1 + $0x6f4] ss:$8 sps:$4 sm:$0xff]  }
  0x87   :  { %1863 = vmatpush1.bf16.msra.mxu1 %v2792_v36  ;;  %v2876_v36 = vld [vmem:[%s3925_s1 + $0x2f0] ss:$8 sps:$4 sm:$0xff]  }
  0x88   :  { %2075 = vmatpush1.bf16.msra.mxu0 %v2795_v37  ;;  %1864 = vmatprep.subr.bf16.mxu1 %v2800_v38  ;;  %v2879_v37 = vld [vmem:[%s3925_s1 + $0x6f0] ss:$8 sps:$4 sm:$0xff]   ;;  %v2884_v38 = vld [vmem:[%s3925_s1 + $0x304] ss:$8 sps:$4 sm:$0xff]  }
  0x89   :  { %2076 = vmatprep.subr.bf16.mxu0 %v2803_v39  ;;  %v2887_v39 = vld [vmem:[%s3925_s1 + $0x704] ss:$8 sps:$4 sm:$0xff]  }
  0x8a   :  { %1850 = vmatmul.mubr.bf16.gmra.mrb[4].mxu1 %v2252_v43  ;;  %v2246_v43 = vcombine.low %v3495_v46, %v3500_v47  ;;  %v2890_v46 = vld [vmem:[%s3925_s1 + $0x314] ss:$8 sps:$4 sm:$0xff]  }
  0x8b   :  { %2062 = vmatmul.mubr.bf16.gmra.mrb[4].mxu0 %v2260_v44  ;;  %1865 = vmatpush1.bf16.msra.mxu1 %v2798_v40  ;;  %v32_v40 = vld [vmem:[%s3926_s0 + $0x90] sm:$0xff] }
  0x8c   :  { %2077 = vmatpush1.bf16.msra.mxu0 %v2801_v41  ;;  %1866 = vmatprep.subr.bf16.mxu1 %v2806_v48  ;;  %v2238_v41 = vcombine.low %v3485_v42, %v3490_v45  ;;  %v40_v44 = vld [vmem:[%s3926_s0 + $0xd0] sm:$0xff]  ;;  %v2882_v42 = vld [vmem:[%s3925_s1 + $0x300] ss:$8 sps:$4 sm:$0xff]  }
  0x8d   :  { %2078 = vmatprep.subr.bf16.mxu0 %v2809_v49  ;;  %1892 = vmatprep.mubr.bf16.mxu1 %v2239_v50  ;;  %v36_v48 = vld [vmem:[%s3926_s0 + $0xb0] sm:$0xff]  ;;  %v2885_v45 = vld [vmem:[%s3925_s1 + $0x700] ss:$8 sps:$4 sm:$0xff]   ;;  %v2255_v50 = vcombine.high %v32_v40, %v40_v44 }
  0x8e   :  { %2104 = vmatprep.mubr.bf16.mxu0 %v2247_v51  ;;  %v44_v49 = vld [vmem:[%s3926_s0 + $0xf0] sm:$0xff] }
  0x8f   :  { %1867 = vmatpush1.bf16.msra.mxu1 %v2804_v52  ;;  %v2893_v47 = vld [vmem:[%s3925_s1 + $0x714] ss:$8 sps:$4 sm:$0xff]   ;;  %v2263_v51 = vcombine.high %v36_v48, %v44_v49  ;;  %v2888_v52 = vld [vmem:[%s3925_s1 + $0x310] ss:$8 sps:$4 sm:$0xff]  }
  0x90   :  { %2079 = vmatpush1.bf16.msra.mxu0 %v2807_v53  ;;  %1868 = vmatprep.subr.bf16.mxu1 %v2812_v54  ;;  %v2891_v53 = vld [vmem:[%s3925_s1 + $0x710] ss:$8 sps:$4 sm:$0xff]   ;;  %v2896_v54 = vld [vmem:[%s3925_s1 + $0x324] ss:$8 sps:$4 sm:$0xff]  }
  0x91   :  { %2080 = vmatprep.subr.bf16.mxu0 %v2815_v55  ;;  %v2899_v55 = vld [vmem:[%s3925_s1 + $0x724] ss:$8 sps:$4 sm:$0xff]  }
  0x93   :  { %1869 = vmatpush1.bf16.msra.mxu1 %v2810_v56  ;;  %v3711_v56 = vld [vmem:[%s3926_s0 + $0x18] sm:$0xff] }
  0x94   :  { %2081 = vmatpush1.bf16.msra.mxu0 %v2813_v57  ;;  %1870 = vmatprep.subr.bf16.mxu1 %v2818_v58  ;;  %v2254_v57 = vcombine.low %v32_v40, %v40_v44  ;;  %v2262_v58 = vcombine.low %v36_v48, %v44_v49  ;;  %v2954_v40 = vld [vmem:[%s3925_s1 + $0x3c0] ss:$8 sps:$4 sm:$0xff]   ;;  %v2965_v44 = vld [vmem:[%s3925_s1 + $0x7d4] ss:$8 sps:$4 sm:$0xff]   ;;  %v2960_v48 = vld [vmem:[%s3925_s1 + $0x3d0] ss:$8 sps:$4 sm:$0xff]  }
  0x95   :  { %2082 = vmatprep.subr.bf16.mxu0 %v2821_v59  ;;  %v3716_v59 = vld [vmem:[%s3926_s0 + $0x58] sm:$0xff] }
  0x96   :  { %v2963_v49 = vld [vmem:[%s3925_s1 + $0x7d0] ss:$8 sps:$4 sm:$0xff]  }
  0x97   :  { %1871 = vmatpush1.bf16.msra.mxu1 %v2816_v60  ;;  %v3721_v60 = vld [vmem:[%s3926_s0 + $0x38] sm:$0xff] }
  0x98   :  { %2083 = vmatpush1.bf16.msra.mxu0 %v2819_v61  ;;  %1872 = vmatprep.subr.bf16.mxu1 %v2824_v62  ;;  %v3726_v61 = vld [vmem:[%s3926_s0 + $0x78] sm:$0xff]  ;;  %v2894_v62 = vld [vmem:[%s3925_s1 + $0x320] ss:$8 sps:$4 sm:$0xff]  }
  0x99   :  { %2084 = vmatprep.subr.bf16.mxu0 %v2827_v63  ;;  %v2897_v63 = vld [vmem:[%s3925_s1 + $0x720] ss:$8 sps:$4 sm:$0xff]  }
  0x9b   :  { %1873 = vmatpush1.bf16.msra.mxu1 %v2822_v0  ;;  %v2902_v0 = vld [vmem:[%s3925_s1 + $0x334] ss:$8 sps:$4 sm:$0xff]  }
  0x9c   :  { %2085 = vmatpush1.bf16.msra.mxu0 %v2825_v1  ;;  %1874 = vmatprep.subr.bf16.mxu1 %v2830_v2  ;;  %v2905_v1 = vld [vmem:[%s3925_s1 + $0x734] ss:$8 sps:$4 sm:$0xff]   ;;  %v2241_v2 = vcombine.high %v3711_v56, %v3716_v59 }
  0x9d   :  { %2086 = vmatprep.subr.bf16.mxu0 %v2833_v3  ;;  %v2249_v3 = vcombine.high %v3721_v60, %v3726_v61 }
  0x9f   :  { %1875 = vmatpush1.bf16.msra.mxu1 %v2828_v4  ;;  %v2900_v4 = vld [vmem:[%s3925_s1 + $0x330] ss:$8 sps:$4 sm:$0xff]  }
  0xa0   :  { %2087 = vmatpush1.bf16.msra.mxu0 %v2831_v5  ;;  %1876 = vmatprep.subr.bf16.mxu1 %v2836_v6  ;;  %v2903_v5 = vld [vmem:[%s3925_s1 + $0x730] ss:$8 sps:$4 sm:$0xff]   ;;  %v2908_v6 = vld [vmem:[%s3925_s1 + $0x344] ss:$8 sps:$4 sm:$0xff]  }
  0xa1   :  { %2088 = vmatprep.subr.bf16.mxu0 %v2839_v7  ;;  %v2911_v7 = vld [vmem:[%s3925_s1 + $0x744] ss:$8 sps:$4 sm:$0xff]  }
  0xa3   :  { %1877 = vmatpush1.bf16.msra.mxu1 %v2834_v8  ;;  %v2906_v8 = vld [vmem:[%s3925_s1 + $0x340] ss:$8 sps:$4 sm:$0xff]  }
  0xa4   :  { %2089 = vmatpush1.bf16.msra.mxu0 %v2837_v9  ;;  %1878 = vmatprep.subr.bf16.mxu1 %v2842_v10  ;;  %v2909_v9 = vld [vmem:[%s3925_s1 + $0x740] ss:$8 sps:$4 sm:$0xff]   ;;  %v2914_v10 = vld [vmem:[%s3925_s1 + $0x354] ss:$8 sps:$4 sm:$0xff]  }
  0xa5   :  { %2090 = vmatprep.subr.bf16.mxu0 %v2845_v11  ;;  %v2917_v11 = vld [vmem:[%s3925_s1 + $0x754] ss:$8 sps:$4 sm:$0xff]  }
  0xa7   :  { %1879 = vmatpush1.bf16.msra.mxu1 %v2840_v12  ;;  %v2912_v12 = vld [vmem:[%s3925_s1 + $0x350] ss:$8 sps:$4 sm:$0xff]  }
  0xa8   :  { %2091 = vmatpush1.bf16.msra.mxu0 %v2843_v13  ;;  %1880 = vmatprep.subr.bf16.mxu1 %v2848_v14  ;;  %v2915_v13 = vld [vmem:[%s3925_s1 + $0x750] ss:$8 sps:$4 sm:$0xff]   ;;  %v2920_v14 = vld [vmem:[%s3925_s1 + $0x364] ss:$8 sps:$4 sm:$0xff]  }
  0xa9   :  { %2092 = vmatprep.subr.bf16.mxu0 %v2851_v15  ;;  %v2923_v15 = vld [vmem:[%s3925_s1 + $0x764] ss:$8 sps:$4 sm:$0xff]  }
  0xab   :  { %1881 = vmatpush1.bf16.msra.mxu1 %v2846_v16  ;;  %v2918_v16 = vld [vmem:[%s3925_s1 + $0x360] ss:$8 sps:$4 sm:$0xff]  }
  0xac   :  { %2093 = vmatpush1.bf16.msra.mxu0 %v2849_v17  ;;  %1882 = vmatprep.subr.bf16.mxu1 %v2854_v18  ;;  %v2921_v17 = vld [vmem:[%s3925_s1 + $0x760] ss:$8 sps:$4 sm:$0xff]   ;;  %v2926_v18 = vld [vmem:[%s3925_s1 + $0x374] ss:$8 sps:$4 sm:$0xff]  }
  0xad   :  { %2094 = vmatprep.subr.bf16.mxu0 %v2857_v19  ;;  %v2929_v19 = vld [vmem:[%s3925_s1 + $0x774] ss:$8 sps:$4 sm:$0xff]  }
  0xaf   :  { %1883 = vmatpush1.bf16.msra.mxu1 %v2852_v20  ;;  %v2924_v20 = vld [vmem:[%s3925_s1 + $0x370] ss:$8 sps:$4 sm:$0xff]  }
  0xb0   :  { %2095 = vmatpush1.bf16.msra.mxu0 %v2855_v21  ;;  %1884 = vmatprep.subr.bf16.mxu1 %v2860_v22  ;;  %v2927_v21 = vld [vmem:[%s3925_s1 + $0x770] ss:$8 sps:$4 sm:$0xff]   ;;  %v2932_v22 = vld [vmem:[%s3925_s1 + $0x384] ss:$8 sps:$4 sm:$0xff]  }
  0xb1   :  { %2096 = vmatprep.subr.bf16.mxu0 %v2863_v23  ;;  %v2935_v23 = vld [vmem:[%s3925_s1 + $0x784] ss:$8 sps:$4 sm:$0xff]  }
  0xb3   :  { %1885 = vmatpush1.bf16.msra.mxu1 %v2858_v24  ;;  %v2930_v24 = vld [vmem:[%s3925_s1 + $0x380] ss:$8 sps:$4 sm:$0xff]  }
  0xb4   :  { %2097 = vmatpush1.bf16.msra.mxu0 %v2861_v25  ;;  %1886 = vmatprep.subr.bf16.mxu1 %v2866_v26  ;;  %v2933_v25 = vld [vmem:[%s3925_s1 + $0x780] ss:$8 sps:$4 sm:$0xff]   ;;  %v2938_v26 = vld [vmem:[%s3925_s1 + $0x394] ss:$8 sps:$4 sm:$0xff]  }
  0xb5   :  { %2098 = vmatprep.subr.bf16.mxu0 %v2869_v27  ;;  %v2941_v27 = vld [vmem:[%s3925_s1 + $0x794] ss:$8 sps:$4 sm:$0xff]  }
  0xb7   :  { %1887 = vmatpush1.bf16.msra.mxu1 %v2864_v28  ;;  %v2936_v28 = vld [vmem:[%s3925_s1 + $0x390] ss:$8 sps:$4 sm:$0xff]  }
  0xb8   :  { %2099 = vmatpush1.bf16.msra.mxu0 %v2867_v29  ;;  %1888 = vmatprep.subr.bf16.mxu1 %v2872_v30  ;;  %v2939_v29 = vld [vmem:[%s3925_s1 + $0x790] ss:$8 sps:$4 sm:$0xff]   ;;  %v2944_v30 = vld [vmem:[%s3925_s1 + $0x3a4] ss:$8 sps:$4 sm:$0xff]  }
  0xb9   :  { %2100 = vmatprep.subr.bf16.mxu0 %v2875_v31  ;;  %v2947_v31 = vld [vmem:[%s3925_s1 + $0x7a4] ss:$8 sps:$4 sm:$0xff]  }
  0xbb   :  { %1889 = vmatpush1.bf16.msra.mxu1 %v2870_v32  ;;  %v2942_v32 = vld [vmem:[%s3925_s1 + $0x3a0] ss:$8 sps:$4 sm:$0xff]  }
  0xbc   :  { %2101 = vmatpush1.bf16.msra.mxu0 %v2873_v33  ;;  %1890 = vmatprep.subr.bf16.mxu1 %v2878_v34  ;;  %v2945_v33 = vld [vmem:[%s3925_s1 + $0x7a0] ss:$8 sps:$4 sm:$0xff]   ;;  %v2950_v34 = vld [vmem:[%s3925_s1 + $0x3b4] ss:$8 sps:$4 sm:$0xff]  }
  0xbd   :  { %2102 = vmatprep.subr.bf16.mxu0 %v2881_v35  ;;  %v2953_v35 = vld [vmem:[%s3925_s1 + $0x7b4] ss:$8 sps:$4 sm:$0xff]  }
  0xbf   :  { %1891 = vmatpush1.bf16.msra.mxu1 %v2876_v36  ;;  %v2948_v36 = vld [vmem:[%s3925_s1 + $0x3b0] ss:$8 sps:$4 sm:$0xff]  }
  0xc0   :  { %2103 = vmatpush1.bf16.msra.mxu0 %v2879_v37  ;;  %1913 = vmatprep.subr.bf16.mxu1 %v2884_v38  ;;  %v2951_v37 = vld [vmem:[%s3925_s1 + $0x7b0] ss:$8 sps:$4 sm:$0xff]   ;;  %v2956_v38 = vld [vmem:[%s3925_s1 + $0x3c4] ss:$8 sps:$4 sm:$0xff]  }
  0xc1   :  { %2125 = vmatprep.subr.bf16.mxu0 %v2887_v39  ;;  %v2959_v39 = vld [vmem:[%s3925_s1 + $0x7c4] ss:$8 sps:$4 sm:$0xff]  }
  0xc2   :  { %1893 = vmatmul.mubr.bf16.vlgmr.msra.gmra.mrb[0].mxu1 %v2238_v41  ;;  %v2957_v41 = vld [vmem:[%s3925_s1 + $0x7c0] ss:$8 sps:$4 sm:$0xff]  }
  0xc3   :  { %2105 = vmatmul.mubr.bf16.vlgmr.msra.gmra.mrb[0].mxu0 %v2246_v43  ;;  %1914 = vmatpush1.bf16.msra.mxu1 %v2882_v42  ;;  %v2962_v43 = vld [vmem:[%s3925_s1 + $0x3d4] ss:$8 sps:$4 sm:$0xff]   ;;  %v2968_v42 = vld [vmem:[%s3925_s1 + $0x3e4] ss:$8 sps:$4 sm:$0xff]  }
  0xc4   :  { %2126 = vmatpush1.bf16.msra.mxu0 %v2885_v45  ;;  %1915 = vmatprep.subr.bf16.mxu1 %v2890_v46  ;;  %v2971_v45 = vld [vmem:[%s3925_s1 + $0x7e4] ss:$8 sps:$4 sm:$0xff]   ;;  %v2966_v46 = vld [vmem:[%s3925_s1 + $0x3e0] ss:$8 sps:$4 sm:$0xff]  }
  0xc5   :  { %2127 = vmatprep.subr.bf16.mxu0 %v2893_v47  ;;  %1902 = vmatprep.mubr.bf16.mxu1 %v2255_v50  ;;  %v2969_v47 = vld [vmem:[%s3925_s1 + $0x7e0] ss:$8 sps:$4 sm:$0xff]   ;;  %v2974_v50 = vld [vmem:[%s3925_s1 + $0x3f4] ss:$8 sps:$4 sm:$0xff]  }
  0xc6   :  { %2114 = vmatprep.mubr.bf16.mxu0 %v2263_v51  ;;  %v2977_v51 = vld [vmem:[%s3925_s1 + $0x7f4] ss:$8 sps:$4 sm:$0xff]  }
  0xc7   :  { %1916 = vmatpush1.bf16.msra.mxu1 %v2888_v52  ;;  %v2972_v52 = vld [vmem:[%s3925_s1 + $0x3f0] ss:$8 sps:$4 sm:$0xff]  }
  0xc8   :  { %2128 = vmatpush1.bf16.msra.mxu0 %v2891_v53  ;;  %1917 = vmatprep.subr.bf16.mxu1 %v2896_v54  ;;  %v2975_v53 = vld [vmem:[%s3925_s1 + $0x7f0] ss:$8 sps:$4 sm:$0xff]  }
  0xc9   :  { %2129 = vmatprep.subr.bf16.mxu0 %v2899_v55  ;;  %v33_v54 = vld [vmem:[%s3926_s0 + $0x98] sm:$0xff] }
  0xca   :  { %1903 = vmatmul.mubr.bf16.gmra.mrb[4].mxu1 %v2254_v57  ;;  %v41_v55 = vld [vmem:[%s3926_s0 + $0xd8] sm:$0xff] }
  0xcb   :  { %2115 = vmatmul.mubr.bf16.gmra.mrb[4].mxu0 %v2262_v58  ;;  %1918 = vmatpush1.bf16.msra.mxu1 %v2894_v62  ;;  %v37_v57 = vld [vmem:[%s3926_s0 + $0xb8] sm:$0xff]  ;;  %v2240_v62 = vcombine.low %v3711_v56, %v3716_v59  ;;  %v302_v56 = vld [vmem:[%s3927_s2] sm:$0x3] }
  0xcc   :  { %2130 = vmatpush1.bf16.msra.mxu0 %v2897_v63  ;;  %1919 = vmatprep.subr.bf16.mxu1 %v2902_v0  ;;  %v45_v58 = vld [vmem:[%s3926_s0 + $0xf8] sm:$0xff]  ;;  %v2248_v63 = vcombine.low %v3721_v60, %v3726_v61  ;;  %v2257_v0 = vcombine.high %v33_v54, %v41_v55 }
  0xcd   :  { %2131 = vmatprep.subr.bf16.mxu0 %v2905_v1  ;;  %1945 = vmatprep.mubr.bf16.mxu1 %v2241_v2  ;;  %v2265_v1 = vcombine.high %v37_v57, %v45_v58  ;;  %v2256_v2 = vcombine.low %v33_v54, %v41_v55 }
  0xce   :  { %2157 = vmatprep.mubr.bf16.mxu0 %v2249_v3  ;;  %v2264_v3 = vcombine.low %v37_v57, %v45_v58 }
  0xcf   :  { %1920 = vmatpush1.bf16.msra.mxu1 %v2900_v4  ;;  %v304_v4 = vlaneseq }
  0xd0   :  { %2132 = vmatpush1.bf16.msra.mxu0 %v2903_v5  ;;  %1921 = vmatprep.subr.bf16.mxu1 %v2908_v6 }
  0xd1   :  { %2133 = vmatprep.subr.bf16.mxu0 %v2911_v7  ;;  %v305_v5 = vshrl.u32 %v304_v4, 7 }
  0xd3   :  { %1922 = vmatpush1.bf16.msra.mxu1 %v2906_v8  ;;  %v306_v6 = vsub.s32 0, %v305_v5  ;;  %v310_v59 = vsub.s32 1, %v305_v5 }
  0xd4   :  { %2134 = vmatpush1.bf16.msra.mxu0 %v2909_v9  ;;  %1923 = vmatprep.subr.bf16.mxu1 %v2914_v10 }
  0xd5   :  { %2135 = vmatprep.subr.bf16.mxu0 %v2917_v11  ;;  %v307_v60 = vrot.slane %v302_v56, %v306_v6  ;;  %v311_v61 = vrot.slane %v302_v56, %v310_v59 }
  0xd7   :  { %1924 = vmatpush1.bf16.msra.mxu1 %v2912_v12 }
  0xd8   :  { %2136 = vmatpush1.bf16.msra.mxu0 %v2915_v13  ;;  %1925 = vmatprep.subr.bf16.mxu1 %v2920_v14 }
  0xd9   :  { %2137 = vmatprep.subr.bf16.mxu0 %v2923_v15 }
  0xdb   :  { %1926 = vmatpush1.bf16.msra.mxu1 %v2918_v16 }
  0xdc   :  { %2138 = vmatpush1.bf16.msra.mxu0 %v2921_v17  ;;  %1927 = vmatprep.subr.bf16.mxu1 %v2926_v18 }
  0xdd   :  { %2139 = vmatprep.subr.bf16.mxu0 %v2929_v19 }
  0xdf   :  { %1928 = vmatpush1.bf16.msra.mxu1 %v2924_v20 }
  0xe0   :  { %2140 = vmatpush1.bf16.msra.mxu0 %v2927_v21  ;;  %1929 = vmatprep.subr.bf16.mxu1 %v2932_v22 }
  0xe1   :  { %2141 = vmatprep.subr.bf16.mxu0 %v2935_v23 }
  0xe3   :  { %1930 = vmatpush1.bf16.msra.mxu1 %v2930_v24 }
  0xe4   :  { %2142 = vmatpush1.bf16.msra.mxu0 %v2933_v25  ;;  %1931 = vmatprep.subr.bf16.mxu1 %v2938_v26 }
  0xe5   :  { %2143 = vmatprep.subr.bf16.mxu0 %v2941_v27 }
  0xe7   :  { %1932 = vmatpush1.bf16.msra.mxu1 %v2936_v28 }
  0xe8   :  { %2144 = vmatpush1.bf16.msra.mxu0 %v2939_v29  ;;  %1933 = vmatprep.subr.bf16.mxu1 %v2944_v30 }
  0xe9   :  { %2145 = vmatprep.subr.bf16.mxu0 %v2947_v31 }
  0xeb   :  { %1934 = vmatpush1.bf16.msra.mxu1 %v2942_v32 }
  0xec   :  { %2146 = vmatpush1.bf16.msra.mxu0 %v2945_v33  ;;  %1935 = vmatprep.subr.bf16.mxu1 %v2950_v34 }
  0xed   :  { %2147 = vmatprep.subr.bf16.mxu0 %v2953_v35 }
  0xef   :  { %1936 = vmatpush1.bf16.msra.mxu1 %v2948_v36 }
  0xf0   :  { %2148 = vmatpush1.bf16.msra.mxu0 %v2951_v37  ;;  %1937 = vmatprep.subr.bf16.mxu1 %v2956_v38 }
  0xf1   :  { %2149 = vmatprep.subr.bf16.mxu0 %v2959_v39 }
  0xf3   :  { %1938 = vmatpush1.bf16.msra.mxu1 %v2954_v40 }
  0xf4   :  { %2150 = vmatpush1.bf16.msra.mxu0 %v2957_v41  ;;  %1939 = vmatprep.subr.bf16.mxu1 %v2962_v43 }
  0xf5   :  { %2151 = vmatprep.subr.bf16.mxu0 %v2965_v44 }
  0xf7   :  { %1940 = vmatpush1.bf16.msra.mxu1 %v2960_v48 }
  0xf8   :  { %2152 = vmatpush1.bf16.msra.mxu0 %v2963_v49  ;;  %1941 = vmatprep.subr.bf16.mxu1 %v2968_v42 }
  0xf9   :  { %2153 = vmatprep.subr.bf16.mxu0 %v2971_v45 }
  0xfb   :  { %1942 = vmatpush1.bf16.msra.mxu1 %v2966_v46 }
  0xfc   :  { %2154 = vmatpush1.bf16.msra.mxu0 %v2969_v47  ;;  %1943 = vmatprep.subr.bf16.mxu1 %v2974_v50 }
  0xfd   :  { %2155 = vmatprep.subr.bf16.mxu0 %v2977_v51 }
  0xff   :  { %1944 = vmatpush1.bf16.msra.mxu1 %v2972_v52 }
 0x100   :  { %2156 = vmatpush1.bf16.msra.mxu0 %v2975_v53 }
 0x102   :  { %1946 = vmatmul.mubr.bf16.vlgmr.msra.gmra.mrb[0].mxu1 %v2240_v62 }
 0x103   :  { %2158 = vmatmul.mubr.bf16.vlgmr.msra.gmra.mrb[0].mxu0 %v2248_v63  ;;  %1955 = vmatprep.mubr.bf16.mxu1 %v2257_v0 }
 0x104   :  { %2167 = vmatprep.mubr.bf16.mxu0 %v2265_v1 }
 0x10a   :  { %1956 = vmatmul.mubr.bf16.gmra.mrb[4].mxu1 %v2256_v2 }
 0x10b   :  { %2168 = vmatmul.mubr.bf16.gmra.mrb[4].mxu0 %v2264_v3 }
 0x1d5   :  { %v1947_v7 = vpop.f32.mrb[0].mxu1 }
 0x1d6   :  { %v2159_v8 = vpop.f32.mrb[0].mxu0  ;;  %v2530_v9 = vadd.f32 %v1947_v7, %v307_v60  ;;  %v1949_v10 = vpop.f32.mrb[1].mxu1 }
 0x1d7   :  { %v2161_v11 = vpop.f32.mrb[1].mxu0  ;;  %v2532_v12 = vadd.f32 %v1949_v10, %v311_v61  ;;  %v1951_v13 = vpop.f32.mrb[2].mxu1 }
 0x1d8   :  { %v2163_v14 = vpop.f32.mrb[2].mxu0  ;;  %v2531_v15 = vadd.f32 %v2530_v9, %v2159_v8  ;;  %v2534_v16 = vadd.f32 %v1951_v13, %v307_v60  ;;  %v1953_v17 = vpop.f32.mrb[3].mxu1 }
 0x1d9   :  { %v2165_v18 = vpop.f32.mrb[3].mxu0  ;;  %v2533_v19 = vadd.f32 %v2532_v12, %v2161_v11  ;;  %v2536_v20 = vadd.f32 %v1953_v17, %v311_v61 }
 0x1da   :  { %vm2178_vm0 = vcmp.gt.f32.partialorder %v2531_v15, 0.0  ;;  %v2186_v21 = vmul.f32 0.2, %v2531_v15  ;;  %v2535_v22 = vadd.f32 %v2534_v16, %v2163_v14 }
 0x1db   :  { %vm2179_vm1 = vcmp.gt.f32.partialorder %v2533_v19, 0.0  ;;  %v2187_v23 = vmul.f32 0.2, %v2533_v19  ;;  %v2537_v24 = vadd.f32 %v2536_v20, %v2165_v18 }
 0x1dc   :  { %v2194_v25 = vsel %vm2178_vm0, %v2531_v15, %v2186_v21  ;;  %vm2180_vm2 = vcmp.gt.f32.partialorder %v2535_v22, 0.0  ;;  %v2188_v26 = vmul.f32 0.2, %v2535_v22 }
 0x1dd   :  { %v2195_v27 = vsel %vm2179_vm1, %v2533_v19, %v2187_v23  ;;  %vm2181_vm3 = vcmp.gt.f32.partialorder %v2537_v24, 0.0  ;;  %v2189_v28 = vmul.f32 0.2, %v2537_v24  ;;  %v1957_v29 = vpop.f32.mrb[4].mxu1 }
 0x1de   :  { %v2169_v30 = vpop.f32.mrb[4].mxu0  ;;  %v2526_v31 = vpack.c.bf16 %v2195_v27, %v2194_v25  ;;  %v2196_v32 = vsel %vm2180_vm2, %v2535_v22, %v2188_v26  ;;  %v2538_v33 = vadd.f32 %v1957_v29, %v307_v60  ;;  %v1959_v34 = vpop.f32.mrb[5].mxu1 }
 0x1df   :  { %v2171_v35 = vpop.f32.mrb[5].mxu0  ;;  %v2197_v36 = vsel %vm2181_vm3, %v2537_v24, %v2189_v28  ;;  %v2540_v37 = vadd.f32 %v1959_v34, %v311_v61  ;;  %v1961_v38 = vpop.f32.mrb[6].mxu1 }
 0x1e0   :  { %v2173_v39 = vpop.f32.mrb[6].mxu0  ;;  %2226 = vst [vmem:[%s3928_s3] sm:$0xff] %v2526_v31  ;;  %v2527_v40 = vpack.c.bf16 %v2197_v36, %v2196_v32  ;;  %v2539_v41 = vadd.f32 %v2538_v33, %v2169_v30  ;;  %v2542_v43 = vadd.f32 %v1961_v38, %v307_v60  ;;  %v1963_v44 = vpop.f32.mrb[7].mxu1 }
 0x1e1   :  { %v2175_v48 = vpop.f32.mrb[7].mxu0  ;;  %v2541_v49 = vadd.f32 %v2540_v37, %v2171_v35  ;;  %v2544_v42 = vadd.f32 %v1963_v44, %v311_v61 }
 0x1e2   :  { %2227 = vst [vmem:[%s3928_s3 + $0x8] sm:$0xff] %v2527_v40  ;;  %vm2182_vm4 = vcmp.gt.f32.partialorder %v2539_v41, 0.0  ;;  %v2190_v45 = vmul.f32 0.2, %v2539_v41  ;;  %v2543_v46 = vadd.f32 %v2542_v43, %v2173_v39 }
 0x1e3   :  { %vm2183_vm5 = vcmp.gt.f32.partialorder %v2541_v49, 0.0  ;;  %v2191_v47 = vmul.f32 0.2, %v2541_v49  ;;  %v2545_v50 = vadd.f32 %v2544_v42, %v2175_v48 }
 0x1e4   :  { %v2198_v51 = vsel %vm2182_vm4, %v2539_v41, %v2190_v45  ;;  %vm2184_vm6 = vcmp.gt.f32.partialorder %v2543_v46, 0.0  ;;  %v2192_v52 = vmul.f32 0.2, %v2543_v46 }
 0x1e5   :  { %v2199_v53 = vsel %vm2183_vm5, %v2541_v49, %v2191_v47  ;;  %vm2185_vm7 = vcmp.gt.f32.partialorder %v2545_v50, 0.0  ;;  %v2193_v54 = vmul.f32 0.2, %v2545_v50 }
 0x1e6   :  { %v2528_v55 = vpack.c.bf16 %v2199_v53, %v2198_v51  ;;  %v2200_v57 = vsel %vm2184_vm6, %v2543_v46, %v2192_v52 }
 0x1e7   :  { %v2201_v58 = vsel %vm2185_vm7, %v2545_v50, %v2193_v54 }
 0x1e8   :  { %2228 = vst [vmem:[%s3928_s3 + $0x10] sm:$0xff] %v2528_v55  ;;  %v2529_v62 = vpack.c.bf16 %v2201_v58, %v2200_v57 }
 0x1ea   :  { %2229 = vst [vmem:[%s3928_s3 + $0x18] sm:$0xff] %v2529_v62 }

// kernel: pneumonia_discriminator_forward.7
= control target key start
LH: loop header
LB: loop body
LE: loop exit
PB: predicated region body
PF: predicated region fallthrough
CT: control target
= control target key end

     0   :  { %v3830_v22 = vmov 1966171168   ;;  %v546_v24 = vlaneseq  ;;  %s4683_s1 = inlined_call_operand.vmem [shape: bf16[4096,128], index: 1, kind: input, shape index: {}]   ;;  %s4684_s0 = inlined_call_operand.vmem [shape: bf16[2,4096], index: 0, kind: input, shape index: {}]   ;;  %s4685_s2 = inlined_call_operand.vmem [shape: f32[1,128], index: 2, kind: input, shape index: {}]   ;;  %s4686_s3 = inlined_call_operand.vmem [shape: f32[2,128], index: 3, kind: output, shape index: {}]  }
   0x1   :  { %v3566_v0 = vld [vmem:[%s4683_s1 + $0x40] sm:$0xff]   ;;  %v3570_v4 = vld [vmem:[%s4683_s1 + $0x48] sm:$0xff]   ;;  %v3574_v8 = vld [vmem:[%s4683_s1 + $0x50] sm:$0xff]   ;;  %v544_v23 = vunpack.c.l.s4 %v3830_v22 }
   0x2   :  { %v3567_v1 = vld [vmem:[%s4683_s1 + $0xc0] sm:$0xff]   ;;  %3213 = vmatprep.subr.bf16.mxu0 %v3566_v0  ;;  %v3571_v5 = vld [vmem:[%s4683_s1 + $0xc8] sm:$0xff]   ;;  %v3575_v9 = vld [vmem:[%s4683_s1 + $0xd0] sm:$0xff]   ;;  %v547_v30 = vshrl.u32 %v546_v24, 7 }
   0x3   :  { %v3568_v2 = vld [vmem:[%s4683_s1] sm:$0xff]   ;;  %3235 = vmatprep.subr.bf16.mxu1 %v3567_v1  ;;  %v3572_v6 = vld [vmem:[%s4683_s1 + $0x8] sm:$0xff]   ;;  %v3576_v10 = vld [vmem:[%s4683_s1 + $0x10] sm:$0xff]   ;;  %v545_v29 = vunpack.c.0.s8 %v544_v23 }
   0x4   :  { %v3569_v3 = vld [vmem:[%s4683_s1 + $0x80] sm:$0xff]   ;;  %3214 = vmatpush3.bf16.msra.mxu0 %v3568_v2  ;;  %v3573_v7 = vld [vmem:[%s4683_s1 + $0x88] sm:$0xff]   ;;  %v3577_v11 = vld [vmem:[%s4683_s1 + $0x90] sm:$0xff]  }
   0x5   :  { %3236 = vmatpush3.bf16.msra.mxu1 %v3569_v3  ;;  %3215 = vmatprep.subr.bf16.mxu0 %v3570_v4  ;;  %v3578_v12 = vld [vmem:[%s4683_s1 + $0x58] sm:$0xff]   ;;  %v3582_v16 = vld [vmem:[%s4683_s1 + $0x60] sm:$0xff]   ;;  %v3586_v20 = vld [vmem:[%s4683_s1 + $0x68] sm:$0xff]   ;;  %v3941_v35 = vsub.s32 %v545_v29, %v547_v30 }
   0x6   :  { %3237 = vmatprep.subr.bf16.mxu1 %v3571_v5  ;;  %v3579_v13 = vld [vmem:[%s4683_s1 + $0xd8] sm:$0xff]   ;;  %v3583_v17 = vld [vmem:[%s4683_s1 + $0xe0] sm:$0xff]   ;;  %v3587_v21 = vld [vmem:[%s4683_s1 + $0xe8] sm:$0xff]  }
   0x7   :  { %v3580_v14 = vld [vmem:[%s4683_s1 + $0x18] sm:$0xff]   ;;  %v3584_v18 = vld [vmem:[%s4683_s1 + $0x20] sm:$0xff]   ;;  %v3588_v25 = vld [vmem:[%s4683_s1 + $0x28] sm:$0xff]  }
   0x8   :  { %3216 = vmatpush3.bf16.msra.mxu0 %v3572_v6  ;;  %v3581_v15 = vld [vmem:[%s4683_s1 + $0x98] sm:$0xff]   ;;  %v3585_v19 = vld [vmem:[%s4683_s1 + $0xa0] sm:$0xff]   ;;  %v3589_v26 = vld [vmem:[%s4683_s1 + $0xa8] sm:$0xff]  }
   0x9   :  { %3238 = vmatpush3.bf16.msra.mxu1 %v3573_v7  ;;  %3217 = vmatprep.subr.bf16.mxu0 %v3574_v8  ;;  %v3590_v27 = vld [vmem:[%s4683_s1 + $0x70] sm:$0xff]   ;;  %v3594_v33 = vld [vmem:[%s4683_s1 + $0x78] sm:$0xff]   ;;  %v15_v38 = vld [vmem:[%s4684_s0] sm:$0xff] }
   0xa   :  { %3239 = vmatprep.subr.bf16.mxu1 %v3575_v9  ;;  %v3591_v28 = vld [vmem:[%s4683_s1 + $0xf0] sm:$0xff]   ;;  %v3595_v34 = vld [vmem:[%s4683_s1 + $0xf8] sm:$0xff]   ;;  %v542_v39 = vcombine.high %v15_v38, %v15_v38  ;;  %v549_v40 = vrot.slane %v15_v38, %v3941_v35  ;;  %v3599_v41 = vld [vmem:[%s4683_s1 + $0x140] sm:$0xff]  }
   0xb   :  { %v3592_v31 = vld [vmem:[%s4683_s1 + $0x30] sm:$0xff]   ;;  %v3596_v36 = vld [vmem:[%s4683_s1 + $0x38] sm:$0xff]   ;;  %v3600_v42 = vld [vmem:[%s4683_s1 + $0x1c0] sm:$0xff]  }
   0xc   :  { %3218 = vmatpush3.bf16.msra.mxu0 %v3576_v10  ;;  %v3593_v32 = vld [vmem:[%s4683_s1 + $0xb0] sm:$0xff]   ;;  %v3597_v37 = vld [vmem:[%s4683_s1 + $0xb8] sm:$0xff]   ;;  %v557_v43 = vcombine.high %v549_v40, %v549_v40  ;;  %v565_v44 = vrot.slane %v549_v40, %v3941_v35  ;;  %v3961_v45 = vrot.slane %v542_v39, %v3941_v35  ;;  %v3601_v46 = vld [vmem:[%s4683_s1 + $0x100] sm:$0xff]  }
   0xd   :  { %3240 = vmatpush3.bf16.msra.mxu1 %v3577_v11  ;;  %3219 = vmatprep.subr.bf16.mxu0 %v3578_v12  ;;  %v3602_v48 = vld [vmem:[%s4683_s1 + $0x180] sm:$0xff]   ;;  %v3603_v51 = vld [vmem:[%s4683_s1 + $0x148] sm:$0xff]   ;;  %v3607_v58 = vld [vmem:[%s4683_s1 + $0x150] sm:$0xff]  }
   0xe   :  { %3241 = vmatprep.subr.bf16.mxu1 %v3579_v13  ;;  %v579_v47 = vrot.slane %v557_v43, %v3941_v35  ;;  %v558_v49 = vcombine.high %v3961_v45, %v3961_v45  ;;  %v587_v50 = vcombine.high %v565_v44, %v565_v44  ;;  %v3604_v53 = vld [vmem:[%s4683_s1 + $0x1c8] sm:$0xff]   ;;  %v3608_v59 = vld [vmem:[%s4683_s1 + $0x1d0] sm:$0xff]   ;;  %v3611_v62 = vld [vmem:[%s4683_s1 + $0x158] sm:$0xff]  }
   0xf   :  { %v3605_v55 = vld [vmem:[%s4683_s1 + $0x108] sm:$0xff]   ;;  %v3609_v60 = vld [vmem:[%s4683_s1 + $0x110] sm:$0xff]   ;;  %v3612_v63 = vld [vmem:[%s4683_s1 + $0x1d8] sm:$0xff]  }
  0x10   :  { %3220 = vmatpush3.bf16.msra.mxu0 %v3580_v14  ;;  %2338 = vmatprep.mubr.bf16.mxu0 %v579_v47  ;;  %v589_v52 = vcombine.high %v579_v47, %v579_v47  ;;  %v586_v54 = vrot.slane %v558_v49, %v3941_v35  ;;  %v3606_v56 = vld [vmem:[%s4683_s1 + $0x188] sm:$0xff]   ;;  %v3610_v61 = vld [vmem:[%s4683_s1 + $0x190] sm:$0xff]   ;;  %v3613_v0 = vld [vmem:[%s4683_s1 + $0x118] sm:$0xff]  }
  0x11   :  { %3242 = vmatpush3.bf16.msra.mxu1 %v3581_v15  ;;  %3221 = vmatprep.subr.bf16.mxu0 %v3582_v16  ;;  %v3614_v1 = vld [vmem:[%s4683_s1 + $0x198] sm:$0xff]   ;;  %v3615_v2 = vld [vmem:[%s4683_s1 + $0x160] sm:$0xff]   ;;  %v3619_v6 = vld [vmem:[%s4683_s1 + $0x168] sm:$0xff]  }
  0x12   :  { %3243 = vmatprep.subr.bf16.mxu1 %v3583_v17  ;;  %2378 = vmatprep.mubr.bf16.mxu1 %v589_v52  ;;  %v590_v57 = vcombine.high %v586_v54, %v586_v54  ;;  %v3616_v3 = vld [vmem:[%s4683_s1 + $0x1e0] sm:$0xff]   ;;  %v3620_v7 = vld [vmem:[%s4683_s1 + $0x1e8] sm:$0xff]   ;;  %v3623_v10 = vld [vmem:[%s4683_s1 + $0x170] sm:$0xff]  }
  0x13   :  { %v3617_v4 = vld [vmem:[%s4683_s1 + $0x120] sm:$0xff]   ;;  %v3621_v8 = vld [vmem:[%s4683_s1 + $0x128] sm:$0xff]   ;;  %v3624_v11 = vld [vmem:[%s4683_s1 + $0x1f0] sm:$0xff]  }
  0x14   :  { %3222 = vmatpush3.bf16.msra.mxu0 %v3584_v18  ;;  %v3618_v5 = vld [vmem:[%s4683_s1 + $0x1a0] sm:$0xff]   ;;  %v3622_v9 = vld [vmem:[%s4683_s1 + $0x1a8] sm:$0xff]   ;;  %v3625_v12 = vld [vmem:[%s4683_s1 + $0x130] sm:$0xff]   ;;  %v572_v18 = vrot.slane %v3961_v45, %v3941_v35 }
  0x15   :  { %3244 = vmatpush3.bf16.msra.mxu1 %v3585_v19  ;;  %3223 = vmatprep.subr.bf16.mxu0 %v3586_v20  ;;  %v3626_v13 = vld [vmem:[%s4683_s1 + $0x1b0] sm:$0xff]   ;;  %v3627_v14 = vld [vmem:[%s4683_s1 + $0x178] sm:$0xff]   ;;  %v3631_v19 = vld [vmem:[%s4683_s1 + $0x240] sm:$0xff]  }
  0x16   :  { %3245 = vmatprep.subr.bf16.mxu1 %v3587_v21  ;;  %v3628_v15 = vld [vmem:[%s4683_s1 + $0x1f8] sm:$0xff]   ;;  %v3632_v20 = vld [vmem:[%s4683_s1 + $0x2c0] sm:$0xff]   ;;  %v588_v23 = vcombine.high %v572_v18, %v572_v18  ;;  %v3635_v24 = vld [vmem:[%s4683_s1 + $0x248] sm:$0xff]  }
  0x17   :  { %v3629_v16 = vld [vmem:[%s4683_s1 + $0x138] sm:$0xff]   ;;  %v3633_v21 = vld [vmem:[%s4683_s1 + $0x200] sm:$0xff]   ;;  %v3640_v29 = vld [vmem:[%s4683_s1 + $0x2d0] sm:$0xff]  }
  0x18   :  { %3224 = vmatpush3.bf16.msra.mxu0 %v3588_v25  ;;  %v3630_v17 = vld [vmem:[%s4683_s1 + $0x1b8] sm:$0xff]   ;;  %v3634_v22 = vld [vmem:[%s4683_s1 + $0x280] sm:$0xff]   ;;  %v3636_v25 = vld [vmem:[%s4683_s1 + $0x2c8] sm:$0xff]  }
  0x19   :  { %3246 = vmatpush3.bf16.msra.mxu1 %v3589_v26  ;;  %3225 = vmatprep.subr.bf16.mxu0 %v3590_v27  ;;  %v3637_v26 = vld [vmem:[%s4683_s1 + $0x208] sm:$0xff]   ;;  %v3641_v30 = vld [vmem:[%s4683_s1 + $0x210] sm:$0xff]   ;;  %v3648_v38 = vld [vmem:[%s4683_s1 + $0x2e0] sm:$0xff]  }
  0x1a   :  { %3247 = vmatprep.subr.bf16.mxu1 %v3591_v28  ;;  %v3638_v27 = vld [vmem:[%s4683_s1 + $0x288] sm:$0xff]   ;;  %v3639_v28 = vld [vmem:[%s4683_s1 + $0x250] sm:$0xff]   ;;  %v3649_v39 = vld [vmem:[%s4683_s1 + $0x220] sm:$0xff]  }
  0x1b   :  { %v3650_v40 = vld [vmem:[%s4683_s1 + $0x2a0] sm:$0xff]   ;;  %v3653_v43 = vld [vmem:[%s4683_s1 + $0x228] sm:$0xff]   ;;  %v3655_v45 = vld [vmem:[%s4683_s1 + $0x270] sm:$0xff]  }
  0x1c   :  { %3226 = vmatpush3.bf16.msra.mxu0 %v3592_v31  ;;  %v3642_v31 = vld [vmem:[%s4683_s1 + $0x290] sm:$0xff]   ;;  %v3659_v49 = vld [vmem:[%s4683_s1 + $0x278] sm:$0xff]   ;;  %v16_v52 = vld [vmem:[%s4684_s0 + $0x8] sm:$0xff] }
  0x1d   :  { %3248 = vmatpush3.bf16.msra.mxu1 %v3593_v32  ;;  %3227 = vmatprep.subr.bf16.mxu0 %v3594_v33  ;;  %v3643_v32 = vld [vmem:[%s4683_s1 + $0x258] sm:$0xff]   ;;  %v3657_v47 = vld [vmem:[%s4683_s1 + $0x230] sm:$0xff]  }
  0x1e   :  { %3249 = vmatprep.subr.bf16.mxu1 %v3595_v34  ;;  %v3644_v33 = vld [vmem:[%s4683_s1 + $0x2d8] sm:$0xff]  }
  0x1f   :  { %v3645_v34 = vld [vmem:[%s4683_s1 + $0x218] sm:$0xff]  }
  0x20   :  { %3228 = vmatpush3.bf16.msra.mxu0 %v3596_v36  ;;  %v3646_v36 = vld [vmem:[%s4683_s1 + $0x298] sm:$0xff]  }
  0x21   :  { %3250 = vmatpush3.bf16.msra.mxu1 %v3597_v37  ;;  %3257 = vmatprep.subr.bf16.mxu0 %v3599_v41  ;;  %v3647_v37 = vld [vmem:[%s4683_s1 + $0x260] sm:$0xff]   ;;  %v3651_v41 = vld [vmem:[%s4683_s1 + $0x268] sm:$0xff]  }
  0x22   :  { %3279 = vmatprep.subr.bf16.mxu1 %v3600_v42  ;;  %v3652_v42 = vld [vmem:[%s4683_s1 + $0x2e8] sm:$0xff]  }
  0x23   :  { %2339 = vmatmul.mubr.bf16.vlgmr.msra.gmra.mrb[0].mxu0 %v565_v44  ;;  %v3654_v44 = vld [vmem:[%s4683_s1 + $0x2a8] sm:$0xff]  }
  0x24   :  { %3258 = vmatpush3.bf16.msra.mxu0 %v3601_v46  ;;  %2379 = vmatmul.mubr.bf16.vlgmr.msra.gmra.mrb[0].mxu1 %v587_v50  ;;  %v3656_v46 = vld [vmem:[%s4683_s1 + $0x2f0] sm:$0xff]   ;;  %v3660_v50 = vld [vmem:[%s4683_s1 + $0x2f8] sm:$0xff]  }
  0x25   :  { %3259 = vmatprep.subr.bf16.mxu0 %v3603_v51  ;;  %3280 = vmatpush3.bf16.msra.mxu1 %v3602_v48  ;;  %v3658_v48 = vld [vmem:[%s4683_s1 + $0x2b0] sm:$0xff]   ;;  %v3661_v51 = vld [vmem:[%s4683_s1 + $0x238] sm:$0xff]  }
  0x26   :  { %2418 = vmatprep.mubr.bf16.mxu0 %v586_v54  ;;  %3281 = vmatprep.subr.bf16.mxu1 %v3604_v53  ;;  %v3662_v53 = vld [vmem:[%s4683_s1 + $0x2b8] sm:$0xff]   ;;  %v598_v54 = vrot.slane %v16_v52, %v3941_v35 }
  0x27   :  { %2458 = vmatprep.mubr.bf16.mxu1 %v590_v57 }
  0x28   :  { %3260 = vmatpush3.bf16.msra.mxu0 %v3605_v55  ;;  %v591_v55 = vcombine.high %v16_v52, %v16_v52  ;;  %v606_v57 = vcombine.high %v598_v54, %v598_v54  ;;  %v3712_v52 = vld [vmem:[%s4683_s1 + $0x460] sm:$0xff]  }
  0x29   :  { %3261 = vmatprep.subr.bf16.mxu0 %v3607_v58  ;;  %3282 = vmatpush3.bf16.msra.mxu1 %v3606_v56  ;;  %v3663_v56 = vld [vmem:[%s4683_s1 + $0x340] sm:$0xff]   ;;  %v614_v58 = vrot.slane %v598_v54, %v3941_v35 }
  0x2a   :  { %3283 = vmatprep.subr.bf16.mxu1 %v3608_v59  ;;  %v3664_v59 = vld [vmem:[%s4683_s1 + $0x3c0] sm:$0xff]  }
  0x2b   :  { %v3714_v54 = vld [vmem:[%s4683_s1 + $0x420] sm:$0xff]  }
  0x2c   :  { %3262 = vmatpush3.bf16.msra.mxu0 %v3609_v60  ;;  %v4167_v60 = vrot.slane %v591_v55, %v3941_v35  ;;  %v3715_v55 = vld [vmem:[%s4683_s1 + $0x4a0] sm:$0xff]  }
  0x2d   :  { %3263 = vmatprep.subr.bf16.mxu0 %v3611_v62  ;;  %3284 = vmatpush3.bf16.msra.mxu1 %v3610_v61  ;;  %v3665_v61 = vld [vmem:[%s4683_s1 + $0x300] sm:$0xff]   ;;  %v628_v62 = vrot.slane %v606_v57, %v3941_v35  ;;  %v3717_v57 = vld [vmem:[%s4683_s1 + $0x4e8] sm:$0xff]  }
  0x2e   :  { %3285 = vmatprep.subr.bf16.mxu1 %v3612_v63  ;;  %v3666_v63 = vld [vmem:[%s4683_s1 + $0x380] sm:$0xff]  }
  0x30   :  { %3264 = vmatpush3.bf16.msra.mxu0 %v3613_v0  ;;  %v607_v0 = vcombine.high %v4167_v60, %v4167_v60 }
  0x31   :  { %3265 = vmatprep.subr.bf16.mxu0 %v3615_v2  ;;  %3286 = vmatpush3.bf16.msra.mxu1 %v3614_v1  ;;  %v636_v1 = vcombine.high %v614_v58, %v614_v58  ;;  %v3667_v2 = vld [vmem:[%s4683_s1 + $0x348] sm:$0xff]  }
  0x32   :  { %3287 = vmatprep.subr.bf16.mxu1 %v3616_v3  ;;  %v638_v3 = vcombine.high %v628_v62, %v628_v62 }
  0x34   :  { %3266 = vmatpush3.bf16.msra.mxu0 %v3617_v4  ;;  %v3668_v4 = vld [vmem:[%s4683_s1 + $0x3c8] sm:$0xff]  }
  0x35   :  { %3267 = vmatprep.subr.bf16.mxu0 %v3619_v6  ;;  %3288 = vmatpush3.bf16.msra.mxu1 %v3618_v5  ;;  %v635_v5 = vrot.slane %v607_v0, %v3941_v35  ;;  %v3669_v6 = vld [vmem:[%s4683_s1 + $0x308] sm:$0xff]   ;;  %v3724_v0 = vld [vmem:[%s4683_s1 + $0x478] sm:$0xff]  }
  0x36   :  { %3289 = vmatprep.subr.bf16.mxu1 %v3620_v7  ;;  %v3670_v7 = vld [vmem:[%s4683_s1 + $0x388] sm:$0xff]  }
  0x38   :  { %3268 = vmatpush3.bf16.msra.mxu0 %v3621_v8  ;;  %v639_v8 = vcombine.high %v635_v5, %v635_v5 }
  0x39   :  { %3269 = vmatprep.subr.bf16.mxu0 %v3623_v10  ;;  %3290 = vmatpush3.bf16.msra.mxu1 %v3622_v9  ;;  %v3671_v9 = vld [vmem:[%s4683_s1 + $0x350] sm:$0xff]  }
  0x3a   :  { %3291 = vmatprep.subr.bf16.mxu1 %v3624_v11  ;;  %v3672_v10 = vld [vmem:[%s4683_s1 + $0x3d0] sm:$0xff]  }
  0x3b   :  { %v3673_v11 = vld [vmem:[%s4683_s1 + $0x310] sm:$0xff]  }
  0x3c   :  { %3270 = vmatpush3.bf16.msra.mxu0 %v3625_v12  ;;  %v3674_v12 = vld [vmem:[%s4683_s1 + $0x390] sm:$0xff]  }
  0x3d   :  { %3271 = vmatprep.subr.bf16.mxu0 %v3627_v14  ;;  %3292 = vmatpush3.bf16.msra.mxu1 %v3626_v13  ;;  %v3675_v13 = vld [vmem:[%s4683_s1 + $0x358] sm:$0xff]  }
  0x3e   :  { %3293 = vmatprep.subr.bf16.mxu1 %v3628_v15  ;;  %v3676_v14 = vld [vmem:[%s4683_s1 + $0x3d8] sm:$0xff]  }
  0x3f   :  { %v3677_v15 = vld [vmem:[%s4683_s1 + $0x318] sm:$0xff]  }
  0x40   :  { %3272 = vmatpush3.bf16.msra.mxu0 %v3629_v16  ;;  %v3678_v16 = vld [vmem:[%s4683_s1 + $0x398] sm:$0xff]  }
  0x41   :  { %3301 = vmatprep.subr.bf16.mxu0 %v3631_v19  ;;  %3294 = vmatpush3.bf16.msra.mxu1 %v3630_v17  ;;  %v3679_v17 = vld [vmem:[%s4683_s1 + $0x360] sm:$0xff]  }
  0x42   :  { %3323 = vmatprep.subr.bf16.mxu1 %v3632_v20  ;;  %v3681_v19 = vld [vmem:[%s4683_s1 + $0x320] sm:$0xff]  }
  0x43   :  { %2419 = vmatmul.mubr.bf16.vlgmr.msra.gmra.mrb[4].mxu0 %v572_v18  ;;  %v3680_v18 = vld [vmem:[%s4683_s1 + $0x3e0] sm:$0xff]  }
  0x44   :  { %3302 = vmatpush3.bf16.msra.mxu0 %v3633_v21  ;;  %2459 = vmatmul.mubr.bf16.vlgmr.msra.gmra.mrb[4].mxu1 %v588_v23  ;;  %v3682_v20 = vld [vmem:[%s4683_s1 + $0x3a0] sm:$0xff]   ;;  %v3683_v21 = vld [vmem:[%s4683_s1 + $0x368] sm:$0xff]  }
  0x45   :  { %3303 = vmatprep.subr.bf16.mxu0 %v3635_v24  ;;  %3324 = vmatpush3.bf16.msra.mxu1 %v3634_v22  ;;  %v3684_v22 = vld [vmem:[%s4683_s1 + $0x3e8] sm:$0xff]  }
  0x46   :  { %3325 = vmatprep.subr.bf16.mxu1 %v3636_v25  ;;  %2498 = vmatprep.mubr.bf16.mxu0 %v628_v62  ;;  %v3685_v23 = vld [vmem:[%s4683_s1 + $0x328] sm:$0xff]   ;;  %v3687_v25 = vld [vmem:[%s4683_s1 + $0x370] sm:$0xff]  }
  0x47   :  { %2538 = vmatprep.mubr.bf16.mxu1 %v638_v3  ;;  %v3686_v24 = vld [vmem:[%s4683_s1 + $0x3a8] sm:$0xff]   ;;  %v3722_v62 = vld [vmem:[%s4683_s1 + $0x430] sm:$0xff]  }
  0x48   :  { %3304 = vmatpush3.bf16.msra.mxu0 %v3637_v26  ;;  %v3688_v26 = vld [vmem:[%s4683_s1 + $0x3f0] sm:$0xff]  }
  0x49   :  { %3305 = vmatprep.subr.bf16.mxu0 %v3639_v28  ;;  %3326 = vmatpush3.bf16.msra.mxu1 %v3638_v27  ;;  %v3689_v27 = vld [vmem:[%s4683_s1 + $0x330] sm:$0xff]  }
  0x4a   :  { %3327 = vmatprep.subr.bf16.mxu1 %v3640_v29  ;;  %v3690_v28 = vld [vmem:[%s4683_s1 + $0x3b0] sm:$0xff]   ;;  %v3691_v29 = vld [vmem:[%s4683_s1 + $0x378] sm:$0xff]  }
  0x4b   :  { %v17_v3 = vld [vmem:[%s4684_s0 + $0x10] sm:$0xff] }
  0x4c   :  { %3306 = vmatpush3.bf16.msra.mxu0 %v3641_v30  ;;  %v3692_v30 = vld [vmem:[%s4683_s1 + $0x3f8] sm:$0xff]  }
  0x4d   :  { %3307 = vmatprep.subr.bf16.mxu0 %v3643_v32  ;;  %3328 = vmatpush3.bf16.msra.mxu1 %v3642_v31  ;;  %v3693_v31 = vld [vmem:[%s4683_s1 + $0x338] sm:$0xff]  }
  0x4e   :  { %3329 = vmatprep.subr.bf16.mxu1 %v3644_v33  ;;  %v3694_v32 = vld [vmem:[%s4683_s1 + $0x3b8] sm:$0xff]   ;;  %v621_v33 = vrot.slane %v4167_v60, %v3941_v35  ;;  %v3720_v60 = vld [vmem:[%s4683_s1 + $0x470] sm:$0xff]  }
  0x50   :  { %3308 = vmatpush3.bf16.msra.mxu0 %v3645_v34  ;;  %v3696_v34 = vld [vmem:[%s4683_s1 + $0x440] sm:$0xff]  }
  0x51   :  { %3309 = vmatprep.subr.bf16.mxu0 %v3647_v37  ;;  %3330 = vmatpush3.bf16.msra.mxu1 %v3646_v36  ;;  %v3697_v36 = vld [vmem:[%s4683_s1 + $0x4c0] sm:$0xff]  }
  0x52   :  { %3331 = vmatprep.subr.bf16.mxu1 %v3648_v38  ;;  %v3698_v37 = vld [vmem:[%s4683_s1 + $0x400] sm:$0xff]  }
  0x53   :  { %v3699_v38 = vld [vmem:[%s4683_s1 + $0x480] sm:$0xff]  }
  0x54   :  { %3310 = vmatpush3.bf16.msra.mxu0 %v3649_v39  ;;  %v637_v39 = vcombine.high %v621_v33, %v621_v33 }
  0x55   :  { %3311 = vmatprep.subr.bf16.mxu0 %v3651_v41  ;;  %3332 = vmatpush3.bf16.msra.mxu1 %v3650_v40  ;;  %v3700_v40 = vld [vmem:[%s4683_s1 + $0x448] sm:$0xff]  }
  0x56   :  { %3333 = vmatprep.subr.bf16.mxu1 %v3652_v42  ;;  %v3701_v41 = vld [vmem:[%s4683_s1 + $0x4c8] sm:$0xff]  }
  0x57   :  { %v3702_v42 = vld [vmem:[%s4683_s1 + $0x408] sm:$0xff]  }
  0x58   :  { %3312 = vmatpush3.bf16.msra.mxu0 %v3653_v43  ;;  %v3703_v43 = vld [vmem:[%s4683_s1 + $0x488] sm:$0xff]  }
  0x59   :  { %3313 = vmatprep.subr.bf16.mxu0 %v3655_v45  ;;  %3334 = vmatpush3.bf16.msra.mxu1 %v3654_v44  ;;  %v3704_v44 = vld [vmem:[%s4683_s1 + $0x450] sm:$0xff]  }
  0x5a   :  { %3335 = vmatprep.subr.bf16.mxu1 %v3656_v46  ;;  %v3705_v45 = vld [vmem:[%s4683_s1 + $0x4d0] sm:$0xff]  }
  0x5b   :  { %v3706_v46 = vld [vmem:[%s4683_s1 + $0x410] sm:$0xff]  }
  0x5c   :  { %3314 = vmatpush3.bf16.msra.mxu0 %v3657_v47  ;;  %v3707_v47 = vld [vmem:[%s4683_s1 + $0x490] sm:$0xff]  }
  0x5d   :  { %3315 = vmatprep.subr.bf16.mxu0 %v3659_v49  ;;  %3336 = vmatpush3.bf16.msra.mxu1 %v3658_v48  ;;  %v3708_v48 = vld [vmem:[%s4683_s1 + $0x458] sm:$0xff]  }
  0x5e   :  { %3337 = vmatprep.subr.bf16.mxu1 %v3660_v50  ;;  %v3709_v49 = vld [vmem:[%s4683_s1 + $0x4d8] sm:$0xff]  }
  0x5f   :  { %v3710_v50 = vld [vmem:[%s4683_s1 + $0x418] sm:$0xff]  }
  0x60   :  { %3316 = vmatpush3.bf16.msra.mxu0 %v3661_v51  ;;  %v3711_v51 = vld [vmem:[%s4683_s1 + $0x498] sm:$0xff]  }
  0x61   :  { %3345 = vmatprep.subr.bf16.mxu0 %v3663_v56  ;;  %3338 = vmatpush3.bf16.msra.mxu1 %v3662_v53  ;;  %v3713_v53 = vld [vmem:[%s4683_s1 + $0x4e0] sm:$0xff]   ;;  %v3716_v56 = vld [vmem:[%s4683_s1 + $0x468] sm:$0xff]  }
  0x62   :  { %3367 = vmatprep.subr.bf16.mxu1 %v3664_v59  ;;  %v3719_v59 = vld [vmem:[%s4683_s1 + $0x4a8] sm:$0xff]  }
  0x63   :  { %2499 = vmatmul.mubr.bf16.vlgmr.msra.gmra.mrb[8].mxu0 %v614_v58  ;;  %v3718_v58 = vld [vmem:[%s4683_s1 + $0x428] sm:$0xff]  }
  0x64   :  { %3346 = vmatpush3.bf16.msra.mxu0 %v3665_v61  ;;  %2539 = vmatmul.mubr.bf16.vlgmr.msra.gmra.mrb[8].mxu1 %v636_v1  ;;  %v3721_v61 = vld [vmem:[%s4683_s1 + $0x4f0] sm:$0xff]   ;;  %v3725_v1 = vld [vmem:[%s4683_s1 + $0x4f8] sm:$0xff]  }
  0x65   :  { %3347 = vmatprep.subr.bf16.mxu0 %v3667_v2  ;;  %3368 = vmatpush3.bf16.msra.mxu1 %v3666_v63  ;;  %v3723_v63 = vld [vmem:[%s4683_s1 + $0x4b0] sm:$0xff]   ;;  %v3726_v2 = vld [vmem:[%s4683_s1 + $0x438] sm:$0xff]  }
  0x66   :  { %2578 = vmatprep.mubr.bf16.mxu0 %v635_v5  ;;  %3369 = vmatprep.subr.bf16.mxu1 %v3668_v4  ;;  %v3727_v4 = vld [vmem:[%s4683_s1 + $0x4b8] sm:$0xff]   ;;  %v647_v5 = vrot.slane %v17_v3, %v3941_v35 }
  0x67   :  { %2618 = vmatprep.mubr.bf16.mxu1 %v639_v8 }
  0x68   :  { %3348 = vmatpush3.bf16.msra.mxu0 %v3669_v6  ;;  %v640_v6 = vcombine.high %v17_v3, %v17_v3  ;;  %v655_v8 = vcombine.high %v647_v5, %v647_v5  ;;  %v3777_v3 = vld [vmem:[%s4683_s1 + $0x660] sm:$0xff]  }
  0x69   :  { %3349 = vmatprep.subr.bf16.mxu0 %v3671_v9  ;;  %3370 = vmatpush3.bf16.msra.mxu1 %v3670_v7  ;;  %v3728_v7 = vld [vmem:[%s4683_s1 + $0x540] sm:$0xff]   ;;  %v663_v9 = vrot.slane %v647_v5, %v3941_v35 }
  0x6a   :  { %3371 = vmatprep.subr.bf16.mxu1 %v3672_v10  ;;  %v3729_v10 = vld [vmem:[%s4683_s1 + $0x5c0] sm:$0xff]  }
  0x6b   :  { %v3779_v5 = vld [vmem:[%s4683_s1 + $0x620] sm:$0xff]  }
  0x6c   :  { %3350 = vmatpush3.bf16.msra.mxu0 %v3673_v11  ;;  %v4373_v11 = vrot.slane %v640_v6, %v3941_v35  ;;  %v3780_v6 = vld [vmem:[%s4683_s1 + $0x6a0] sm:$0xff]  }
  0x6d   :  { %3351 = vmatprep.subr.bf16.mxu0 %v3675_v13  ;;  %3372 = vmatpush3.bf16.msra.mxu1 %v3674_v12  ;;  %v3730_v12 = vld [vmem:[%s4683_s1 + $0x500] sm:$0xff]   ;;  %v677_v13 = vrot.slane %v655_v8, %v3941_v35  ;;  %v3782_v8 = vld [vmem:[%s4683_s1 + $0x6e8] sm:$0xff]  }
  0x6e   :  { %3373 = vmatprep.subr.bf16.mxu1 %v3676_v14  ;;  %v3731_v14 = vld [vmem:[%s4683_s1 + $0x580] sm:$0xff]  }
  0x70   :  { %3352 = vmatpush3.bf16.msra.mxu0 %v3677_v15  ;;  %v656_v15 = vcombine.high %v4373_v11, %v4373_v11 }
  0x71   :  { %3353 = vmatprep.subr.bf16.mxu0 %v3679_v17  ;;  %3374 = vmatpush3.bf16.msra.mxu1 %v3678_v16  ;;  %v685_v16 = vcombine.high %v663_v9, %v663_v9  ;;  %v3732_v17 = vld [vmem:[%s4683_s1 + $0x548] sm:$0xff]  }
  0x72   :  { %3375 = vmatprep.subr.bf16.mxu1 %v3680_v18  ;;  %v687_v18 = vcombine.high %v677_v13, %v677_v13 }
  0x74   :  { %3354 = vmatpush3.bf16.msra.mxu0 %v3681_v19  ;;  %v3733_v19 = vld [vmem:[%s4683_s1 + $0x5c8] sm:$0xff]  }
  0x75   :  { %3355 = vmatprep.subr.bf16.mxu0 %v3683_v21  ;;  %3376 = vmatpush3.bf16.msra.mxu1 %v3682_v20  ;;  %v684_v20 = vrot.slane %v656_v15, %v3941_v35  ;;  %v3734_v21 = vld [vmem:[%s4683_s1 + $0x508] sm:$0xff]   ;;  %v3789_v15 = vld [vmem:[%s4683_s1 + $0x678] sm:$0xff]  }
  0x76   :  { %3377 = vmatprep.subr.bf16.mxu1 %v3684_v22  ;;  %v3735_v22 = vld [vmem:[%s4683_s1 + $0x588] sm:$0xff]  }
  0x78   :  { %3356 = vmatpush3.bf16.msra.mxu0 %v3685_v23  ;;  %v688_v23 = vcombine.high %v684_v20, %v684_v20 }
  0x79   :  { %3357 = vmatprep.subr.bf16.mxu0 %v3687_v25  ;;  %3378 = vmatpush3.bf16.msra.mxu1 %v3686_v24  ;;  %v3736_v24 = vld [vmem:[%s4683_s1 + $0x550] sm:$0xff]  }
  0x7a   :  { %3379 = vmatprep.subr.bf16.mxu1 %v3688_v26  ;;  %v3737_v25 = vld [vmem:[%s4683_s1 + $0x5d0] sm:$0xff]  }
  0x7b   :  { %v3738_v26 = vld [vmem:[%s4683_s1 + $0x510] sm:$0xff]  }
  0x7c   :  { %3358 = vmatpush3.bf16.msra.mxu0 %v3689_v27  ;;  %v3739_v27 = vld [vmem:[%s4683_s1 + $0x590] sm:$0xff]  }
  0x7d   :  { %3359 = vmatprep.subr.bf16.mxu0 %v3691_v29  ;;  %3380 = vmatpush3.bf16.msra.mxu1 %v3690_v28  ;;  %v3740_v28 = vld [vmem:[%s4683_s1 + $0x558] sm:$0xff]  }
  0x7e   :  { %3381 = vmatprep.subr.bf16.mxu1 %v3692_v30  ;;  %v3741_v29 = vld [vmem:[%s4683_s1 + $0x5d8] sm:$0xff]  }
  0x7f   :  { %v3742_v30 = vld [vmem:[%s4683_s1 + $0x518] sm:$0xff]  }
  0x80   :  { %3360 = vmatpush3.bf16.msra.mxu0 %v3693_v31  ;;  %v3743_v31 = vld [vmem:[%s4683_s1 + $0x598] sm:$0xff]  }
  0x81   :  { %3389 = vmatprep.subr.bf16.mxu0 %v3696_v34  ;;  %3382 = vmatpush3.bf16.msra.mxu1 %v3694_v32  ;;  %v3744_v32 = vld [vmem:[%s4683_s1 + $0x560] sm:$0xff]  }
  0x82   :  { %3411 = vmatprep.subr.bf16.mxu1 %v3697_v36  ;;  %v3746_v34 = vld [vmem:[%s4683_s1 + $0x520] sm:$0xff]  }
  0x83   :  { %2579 = vmatmul.mubr.bf16.vlgmr.msra.gmra.mrb[12].mxu0 %v621_v33  ;;  %v3745_v33 = vld [vmem:[%s4683_s1 + $0x5e0] sm:$0xff]  }
  0x84   :  { %3390 = vmatpush3.bf16.msra.mxu0 %v3698_v37  ;;  %2619 = vmatmul.mubr.bf16.vlgmr.msra.gmra.mrb[12].mxu1 %v637_v39  ;;  %v3747_v36 = vld [vmem:[%s4683_s1 + $0x5a0] sm:$0xff]   ;;  %v3748_v37 = vld [vmem:[%s4683_s1 + $0x568] sm:$0xff]  }
  0x85   :  { %3391 = vmatprep.subr.bf16.mxu0 %v3700_v40  ;;  %3412 = vmatpush3.bf16.msra.mxu1 %v3699_v38  ;;  %v3749_v38 = vld [vmem:[%s4683_s1 + $0x5e8] sm:$0xff]  }
  0x86   :  { %3413 = vmatprep.subr.bf16.mxu1 %v3701_v41  ;;  %2658 = vmatprep.mubr.bf16.mxu0 %v677_v13  ;;  %v3750_v39 = vld [vmem:[%s4683_s1 + $0x528] sm:$0xff]   ;;  %v3752_v41 = vld [vmem:[%s4683_s1 + $0x570] sm:$0xff]  }
  0x87   :  { %2698 = vmatprep.mubr.bf16.mxu1 %v687_v18  ;;  %v3751_v40 = vld [vmem:[%s4683_s1 + $0x5a8] sm:$0xff]   ;;  %v3787_v13 = vld [vmem:[%s4683_s1 + $0x630] sm:$0xff]   ;;  %v18_v18 = vld [vmem:[%s4684_s0 + $0x18] sm:$0xff] }
  0x88   :  { %3392 = vmatpush3.bf16.msra.mxu0 %v3702_v42  ;;  %v3753_v42 = vld [vmem:[%s4683_s1 + $0x5f0] sm:$0xff]  }
  0x89   :  { %3393 = vmatprep.subr.bf16.mxu0 %v3704_v44  ;;  %3414 = vmatpush3.bf16.msra.mxu1 %v3703_v43  ;;  %v3754_v43 = vld [vmem:[%s4683_s1 + $0x530] sm:$0xff]  }
  0x8a   :  { %3415 = vmatprep.subr.bf16.mxu1 %v3705_v45  ;;  %v3755_v44 = vld [vmem:[%s4683_s1 + $0x5b0] sm:$0xff]   ;;  %v3756_v45 = vld [vmem:[%s4683_s1 + $0x578] sm:$0xff]  }
  0x8c   :  { %3394 = vmatpush3.bf16.msra.mxu0 %v3706_v46  ;;  %v3757_v46 = vld [vmem:[%s4683_s1 + $0x5f8] sm:$0xff]  }
  0x8d   :  { %3395 = vmatprep.subr.bf16.mxu0 %v3708_v48  ;;  %3416 = vmatpush3.bf16.msra.mxu1 %v3707_v47  ;;  %v3758_v47 = vld [vmem:[%s4683_s1 + $0x538] sm:$0xff]  }
  0x8e   :  { %3417 = vmatprep.subr.bf16.mxu1 %v3709_v49  ;;  %v3759_v48 = vld [vmem:[%s4683_s1 + $0x5b8] sm:$0xff]   ;;  %v670_v49 = vrot.slane %v4373_v11, %v3941_v35  ;;  %v3785_v11 = vld [vmem:[%s4683_s1 + $0x670] sm:$0xff]  }
  0x90   :  { %3396 = vmatpush3.bf16.msra.mxu0 %v3710_v50  ;;  %v3761_v50 = vld [vmem:[%s4683_s1 + $0x640] sm:$0xff]  }
  0x91   :  { %3397 = vmatprep.subr.bf16.mxu0 %v3712_v52  ;;  %3418 = vmatpush3.bf16.msra.mxu1 %v3711_v51  ;;  %v3762_v51 = vld [vmem:[%s4683_s1 + $0x6c0] sm:$0xff]  }
  0x92   :  { %3419 = vmatprep.subr.bf16.mxu1 %v3713_v53  ;;  %v3763_v52 = vld [vmem:[%s4683_s1 + $0x600] sm:$0xff]  }
  0x93   :  { %v3764_v53 = vld [vmem:[%s4683_s1 + $0x680] sm:$0xff]  }
  0x94   :  { %3398 = vmatpush3.bf16.msra.mxu0 %v3714_v54  ;;  %v686_v54 = vcombine.high %v670_v49, %v670_v49 }
  0x95   :  { %3399 = vmatprep.subr.bf16.mxu0 %v3716_v56  ;;  %3420 = vmatpush3.bf16.msra.mxu1 %v3715_v55  ;;  %v3765_v55 = vld [vmem:[%s4683_s1 + $0x648] sm:$0xff]  }
  0x96   :  { %3421 = vmatprep.subr.bf16.mxu1 %v3717_v57  ;;  %v3766_v56 = vld [vmem:[%s4683_s1 + $0x6c8] sm:$0xff]  }
  0x97   :  { %v3767_v57 = vld [vmem:[%s4683_s1 + $0x608] sm:$0xff]  }
  0x98   :  { %3400 = vmatpush3.bf16.msra.mxu0 %v3718_v58  ;;  %v3768_v58 = vld [vmem:[%s4683_s1 + $0x688] sm:$0xff]  }
  0x99   :  { %3401 = vmatprep.subr.bf16.mxu0 %v3720_v60  ;;  %3422 = vmatpush3.bf16.msra.mxu1 %v3719_v59  ;;  %v3769_v59 = vld [vmem:[%s4683_s1 + $0x650] sm:$0xff]  }
  0x9a   :  { %3423 = vmatprep.subr.bf16.mxu1 %v3721_v61  ;;  %v3770_v60 = vld [vmem:[%s4683_s1 + $0x6d0] sm:$0xff]  }
  0x9b   :  { %v3771_v61 = vld [vmem:[%s4683_s1 + $0x610] sm:$0xff]  }
  0x9c   :  { %3402 = vmatpush3.bf16.msra.mxu0 %v3722_v62  ;;  %v3772_v62 = vld [vmem:[%s4683_s1 + $0x690] sm:$0xff]  }
  0x9d   :  { %3403 = vmatprep.subr.bf16.mxu0 %v3724_v0  ;;  %3424 = vmatpush3.bf16.msra.mxu1 %v3723_v63  ;;  %v3773_v63 = vld [vmem:[%s4683_s1 + $0x658] sm:$0xff]  }
  0x9e   :  { %3425 = vmatprep.subr.bf16.mxu1 %v3725_v1  ;;  %v3774_v0 = vld [vmem:[%s4683_s1 + $0x6d8] sm:$0xff]  }
  0x9f   :  { %v3775_v1 = vld [vmem:[%s4683_s1 + $0x618] sm:$0xff]  }
  0xa0   :  { %3404 = vmatpush3.bf16.msra.mxu0 %v3726_v2  ;;  %v3776_v2 = vld [vmem:[%s4683_s1 + $0x698] sm:$0xff]  }
  0xa1   :  { %3433 = vmatprep.subr.bf16.mxu0 %v3728_v7  ;;  %3426 = vmatpush3.bf16.msra.mxu1 %v3727_v4  ;;  %v3778_v4 = vld [vmem:[%s4683_s1 + $0x6e0] sm:$0xff]   ;;  %v3781_v7 = vld [vmem:[%s4683_s1 + $0x668] sm:$0xff]  }
  0xa2   :  { %3455 = vmatprep.subr.bf16.mxu1 %v3729_v10  ;;  %v3784_v10 = vld [vmem:[%s4683_s1 + $0x6a8] sm:$0xff]  }
  0xa3   :  { %2659 = vmatmul.mubr.bf16.vlgmr.msra.gmra.mrb[16].mxu0 %v663_v9  ;;  %v3783_v9 = vld [vmem:[%s4683_s1 + $0x628] sm:$0xff]  }
  0xa4   :  { %3434 = vmatpush3.bf16.msra.mxu0 %v3730_v12  ;;  %2699 = vmatmul.mubr.bf16.vlgmr.msra.gmra.mrb[16].mxu1 %v685_v16  ;;  %v3786_v12 = vld [vmem:[%s4683_s1 + $0x6f0] sm:$0xff]   ;;  %v3790_v16 = vld [vmem:[%s4683_s1 + $0x6f8] sm:$0xff]  }
  0xa5   :  { %3435 = vmatprep.subr.bf16.mxu0 %v3732_v17  ;;  %3456 = vmatpush3.bf16.msra.mxu1 %v3731_v14  ;;  %v3788_v14 = vld [vmem:[%s4683_s1 + $0x6b0] sm:$0xff]   ;;  %v3791_v17 = vld [vmem:[%s4683_s1 + $0x638] sm:$0xff]  }
  0xa6   :  { %2738 = vmatprep.mubr.bf16.mxu0 %v684_v20  ;;  %3457 = vmatprep.subr.bf16.mxu1 %v3733_v19  ;;  %v696_v19 = vrot.slane %v18_v18, %v3941_v35  ;;  %v3793_v20 = vld [vmem:[%s4683_s1 + $0x740] sm:$0xff]  }
  0xa7   :  { %2778 = vmatprep.mubr.bf16.mxu1 %v688_v23 }
  0xa8   :  { %3436 = vmatpush3.bf16.msra.mxu0 %v3734_v21  ;;  %v689_v21 = vcombine.high %v18_v18, %v18_v18  ;;  %v704_v23 = vcombine.high %v696_v19, %v696_v19 }
  0xa9   :  { %3437 = vmatprep.subr.bf16.mxu0 %v3736_v24  ;;  %3458 = vmatpush3.bf16.msra.mxu1 %v3735_v22  ;;  %v3792_v22 = vld [vmem:[%s4683_s1 + $0x6b8] sm:$0xff]   ;;  %v712_v24 = vrot.slane %v696_v19, %v3941_v35 }
  0xaa   :  { %3459 = vmatprep.subr.bf16.mxu1 %v3737_v25  ;;  %v3794_v25 = vld [vmem:[%s4683_s1 + $0x7c0] sm:$0xff]  }
  0xac   :  { %3438 = vmatpush3.bf16.msra.mxu0 %v3738_v26  ;;  %v4579_v26 = vrot.slane %v689_v21, %v3941_v35 }
  0xad   :  { %3439 = vmatprep.subr.bf16.mxu0 %v3740_v28  ;;  %3460 = vmatpush3.bf16.msra.mxu1 %v3739_v27  ;;  %v726_v27 = vrot.slane %v704_v23, %v3941_v35  ;;  %v3795_v28 = vld [vmem:[%s4683_s1 + $0x700] sm:$0xff]  }
  0xae   :  { %3461 = vmatprep.subr.bf16.mxu1 %v3741_v29  ;;  %v705_v29 = vcombine.high %v4579_v26, %v4579_v26 }
  0xb0   :  { %3440 = vmatpush3.bf16.msra.mxu0 %v3742_v30  ;;  %v734_v30 = vcombine.high %v712_v24, %v712_v24 }
  0xb1   :  { %3441 = vmatprep.subr.bf16.mxu0 %v3744_v32  ;;  %3462 = vmatpush3.bf16.msra.mxu1 %v3743_v31  ;;  %v3797_v31 = vld [vmem:[%s4683_s1 + $0x748] sm:$0xff]   ;;  %v736_v32 = vcombine.high %v726_v27, %v726_v27 }
  0xb2   :  { %3463 = vmatprep.subr.bf16.mxu1 %v3745_v33  ;;  %v3796_v33 = vld [vmem:[%s4683_s1 + $0x780] sm:$0xff]  }
  0xb4   :  { %3442 = vmatpush3.bf16.msra.mxu0 %v3746_v34  ;;  %v733_v34 = vrot.slane %v705_v29, %v3941_v35 }
  0xb5   :  { %3443 = vmatprep.subr.bf16.mxu0 %v3748_v37  ;;  %3464 = vmatpush3.bf16.msra.mxu1 %v3747_v36  ;;  %v3798_v36 = vld [vmem:[%s4683_s1 + $0x7c8] sm:$0xff]  }
  0xb6   :  { %3465 = vmatprep.subr.bf16.mxu1 %v3749_v38  ;;  %v3799_v37 = vld [vmem:[%s4683_s1 + $0x708] sm:$0xff]   ;;  %v737_v38 = vcombine.high %v733_v34, %v733_v34 }
  0xb8   :  { %3444 = vmatpush3.bf16.msra.mxu0 %v3750_v39  ;;  %v3801_v39 = vld [vmem:[%s4683_s1 + $0x750] sm:$0xff]  }
  0xb9   :  { %3445 = vmatprep.subr.bf16.mxu0 %v3752_v41  ;;  %3466 = vmatpush3.bf16.msra.mxu1 %v3751_v40  ;;  %v3800_v40 = vld [vmem:[%s4683_s1 + $0x788] sm:$0xff]   ;;  %v3802_v41 = vld [vmem:[%s4683_s1 + $0x7d0] sm:$0xff]  }
  0xba   :  { %3467 = vmatprep.subr.bf16.mxu1 %v3753_v42  ;;  %v3803_v42 = vld [vmem:[%s4683_s1 + $0x710] sm:$0xff]  }
  0xbc   :  { %3446 = vmatpush3.bf16.msra.mxu0 %v3754_v43  ;;  %v3805_v43 = vld [vmem:[%s4683_s1 + $0x758] sm:$0xff]  }
  0xbd   :  { %3447 = vmatprep.subr.bf16.mxu0 %v3756_v45  ;;  %3468 = vmatpush3.bf16.msra.mxu1 %v3755_v44  ;;  %v3804_v44 = vld [vmem:[%s4683_s1 + $0x790] sm:$0xff]   ;;  %v3806_v45 = vld [vmem:[%s4683_s1 + $0x7d8] sm:$0xff]  }
  0xbe   :  { %3469 = vmatprep.subr.bf16.mxu1 %v3757_v46  ;;  %v3807_v46 = vld [vmem:[%s4683_s1 + $0x718] sm:$0xff]  }
  0xc0   :  { %3448 = vmatpush3.bf16.msra.mxu0 %v3758_v47  ;;  %v3809_v47 = vld [vmem:[%s4683_s1 + $0x760] sm:$0xff]  }
  0xc1   :  { %3477 = vmatprep.subr.bf16.mxu0 %v3761_v50  ;;  %3470 = vmatpush3.bf16.msra.mxu1 %v3759_v48  ;;  %v3808_v48 = vld [vmem:[%s4683_s1 + $0x798] sm:$0xff]   ;;  %v3811_v50 = vld [vmem:[%s4683_s1 + $0x720] sm:$0xff]  }
  0xc2   :  { %3499 = vmatprep.subr.bf16.mxu1 %v3762_v51  ;;  %v3813_v51 = vld [vmem:[%s4683_s1 + $0x768] sm:$0xff]  }
  0xc3   :  { %2739 = vmatmul.mubr.bf16.vlgmr.msra.gmra.mrb[20].mxu0 %v670_v49  ;;  %v3810_v49 = vld [vmem:[%s4683_s1 + $0x7e0] sm:$0xff]  }
  0xc4   :  { %3478 = vmatpush3.bf16.msra.mxu0 %v3763_v52  ;;  %2779 = vmatmul.mubr.bf16.vlgmr.msra.gmra.mrb[20].mxu1 %v686_v54  ;;  %v3812_v52 = vld [vmem:[%s4683_s1 + $0x7a0] sm:$0xff]  }
  0xc5   :  { %3479 = vmatprep.subr.bf16.mxu0 %v3765_v55  ;;  %3500 = vmatpush3.bf16.msra.mxu1 %v3764_v53  ;;  %v3814_v53 = vld [vmem:[%s4683_s1 + $0x7e8] sm:$0xff]   ;;  %v2956_v54 = vld [vmem:[%s4685_s2] ss:$0 sm:$0xff] }
  0xc6   :  { %3501 = vmatprep.subr.bf16.mxu1 %v3766_v56  ;;  %2818 = vmatprep.mubr.bf16.mxu0 %v726_v27  ;;  %v3815_v55 = vld [vmem:[%s4683_s1 + $0x728] sm:$0xff]  }
  0xc7   :  { %2858 = vmatprep.mubr.bf16.mxu1 %v736_v32 }
  0xc8   :  { %3480 = vmatpush3.bf16.msra.mxu0 %v3767_v57  ;;  %v3817_v57 = vld [vmem:[%s4683_s1 + $0x770] sm:$0xff]  }
  0xc9   :  { %3481 = vmatprep.subr.bf16.mxu0 %v3769_v59  ;;  %3502 = vmatpush3.bf16.msra.mxu1 %v3768_v58  ;;  %v3816_v59 = vld [vmem:[%s4683_s1 + $0x7a8] sm:$0xff]  }
  0xca   :  { %3503 = vmatprep.subr.bf16.mxu1 %v3770_v60 }
  0xcc   :  { %3482 = vmatpush3.bf16.msra.mxu0 %v3771_v61 }
  0xcd   :  { %3483 = vmatprep.subr.bf16.mxu0 %v3773_v63  ;;  %3504 = vmatpush3.bf16.msra.mxu1 %v3772_v62  ;;  %v3818_v63 = vld [vmem:[%s4683_s1 + $0x7f0] sm:$0xff]  }
  0xce   :  { %3505 = vmatprep.subr.bf16.mxu1 %v3774_v0  ;;  %v3819_v0 = vld [vmem:[%s4683_s1 + $0x730] sm:$0xff]  }
  0xd0   :  { %3484 = vmatpush3.bf16.msra.mxu0 %v3775_v1 }
  0xd1   :  { %3485 = vmatprep.subr.bf16.mxu0 %v3777_v3  ;;  %3506 = vmatpush3.bf16.msra.mxu1 %v3776_v2 }
  0xd2   :  { %3507 = vmatprep.subr.bf16.mxu1 %v3778_v4 }
  0xd4   :  { %3486 = vmatpush3.bf16.msra.mxu0 %v3779_v5 }
  0xd5   :  { %3487 = vmatprep.subr.bf16.mxu0 %v3781_v7  ;;  %3508 = vmatpush3.bf16.msra.mxu1 %v3780_v6  ;;  %v3821_v6 = vld [vmem:[%s4683_s1 + $0x778] sm:$0xff]  }
  0xd6   :  { %3509 = vmatprep.subr.bf16.mxu1 %v3782_v8  ;;  %v3820_v8 = vld [vmem:[%s4683_s1 + $0x7b0] sm:$0xff]  }
  0xd8   :  { %3488 = vmatpush3.bf16.msra.mxu0 %v3783_v9 }
  0xd9   :  { %3489 = vmatprep.subr.bf16.mxu0 %v3785_v11  ;;  %3510 = vmatpush3.bf16.msra.mxu1 %v3784_v10  ;;  %v3822_v10 = vld [vmem:[%s4683_s1 + $0x7f8] sm:$0xff]  }
  0xda   :  { %3511 = vmatprep.subr.bf16.mxu1 %v3786_v12  ;;  %v3823_v11 = vld [vmem:[%s4683_s1 + $0x738] sm:$0xff]   ;;  %v719_v12 = vrot.slane %v4579_v26, %v3941_v35 }
  0xdc   :  { %3490 = vmatpush3.bf16.msra.mxu0 %v3787_v13  ;;  %v3824_v13 = vld [vmem:[%s4683_s1 + $0x7b8] sm:$0xff]  }
  0xdd   :  { %3491 = vmatprep.subr.bf16.mxu0 %v3789_v15  ;;  %3512 = vmatpush3.bf16.msra.mxu1 %v3788_v14  ;;  %v735_v14 = vcombine.high %v719_v12, %v719_v12 }
  0xde   :  { %3513 = vmatprep.subr.bf16.mxu1 %v3790_v16 }
  0xe0   :  { %3492 = vmatpush3.bf16.msra.mxu0 %v3791_v17 }
  0xe1   :  { %3521 = vmatprep.subr.bf16.mxu0 %v3793_v20  ;;  %3514 = vmatpush3.bf16.msra.mxu1 %v3792_v22 }
  0xe2   :  { %3543 = vmatprep.subr.bf16.mxu1 %v3794_v25 }
  0xe3   :  { %2819 = vmatmul.mubr.bf16.vlgmr.msra.gmra.mrb[24].mxu0 %v712_v24 }
  0xe4   :  { %3522 = vmatpush3.bf16.msra.mxu0 %v3795_v28  ;;  %2859 = vmatmul.mubr.bf16.vlgmr.msra.gmra.mrb[24].mxu1 %v734_v30 }
  0xe5   :  { %3523 = vmatprep.subr.bf16.mxu0 %v3797_v31  ;;  %3544 = vmatpush3.bf16.msra.mxu1 %v3796_v33 }
  0xe6   :  { %2898 = vmatprep.mubr.bf16.mxu0 %v733_v34  ;;  %3545 = vmatprep.subr.bf16.mxu1 %v3798_v36 }
  0xe7   :  { %2938 = vmatprep.mubr.bf16.mxu1 %v737_v38 }
  0xe8   :  { %3524 = vmatpush3.bf16.msra.mxu0 %v3799_v37 }
  0xe9   :  { %3525 = vmatprep.subr.bf16.mxu0 %v3801_v39  ;;  %3546 = vmatpush3.bf16.msra.mxu1 %v3800_v40 }
  0xea   :  { %3547 = vmatprep.subr.bf16.mxu1 %v3802_v41 }
  0xec   :  { %3526 = vmatpush3.bf16.msra.mxu0 %v3803_v42 }
  0xed   :  { %3527 = vmatprep.subr.bf16.mxu0 %v3805_v43  ;;  %3548 = vmatpush3.bf16.msra.mxu1 %v3804_v44 }
  0xee   :  { %3549 = vmatprep.subr.bf16.mxu1 %v3806_v45 }
  0xf0   :  { %3528 = vmatpush3.bf16.msra.mxu0 %v3807_v46 }
  0xf1   :  { %3529 = vmatprep.subr.bf16.mxu0 %v3809_v47  ;;  %3550 = vmatpush3.bf16.msra.mxu1 %v3808_v48 }
  0xf2   :  { %3551 = vmatprep.subr.bf16.mxu1 %v3810_v49 }
  0xf4   :  { %3530 = vmatpush3.bf16.msra.mxu0 %v3811_v50 }
  0xf5   :  { %3531 = vmatprep.subr.bf16.mxu0 %v3813_v51  ;;  %3552 = vmatpush3.bf16.msra.mxu1 %v3812_v52 }
  0xf6   :  { %v3229_v56 = vpop.f32.mrb[0].mxu0  ;;  %3553 = vmatprep.subr.bf16.mxu1 %v3814_v53 }
  0xf7   :  { %v3230_v58 = vpop.f32.mrb[1].mxu0  ;;  %v3251_v60 = vpop.f32.mrb[0].mxu1 }
  0xf8   :  { %v3231_v61 = vadd.f32 %v3230_v58, %v3229_v56  ;;  %v3232_v62 = vpop.f32.mrb[2].mxu0  ;;  %v3252_v1 = vpop.f32.mrb[1].mxu1  ;;  %3532 = vmatpush3.bf16.msra.mxu0 %v3815_v55 }
  0xf9   :  { %v3233_v2 = vpop.f32.mrb[3].mxu0  ;;  %v3253_v4 = vadd.f32 %v3252_v1, %v3251_v60  ;;  %v3254_v5 = vpop.f32.mrb[2].mxu1  ;;  %3533 = vmatprep.subr.bf16.mxu0 %v3817_v57  ;;  %3554 = vmatpush3.bf16.msra.mxu1 %v3816_v59 }
  0xfa   :  { %v2341_v3 = vadd.f32 %v3231_v61, %v2956_v54  ;;  %v3255_v7 = vpop.f32.mrb[3].mxu1  ;;  %3555 = vmatprep.subr.bf16.mxu1 %v3818_v63 }
  0xfc   :  { %v2381_v9 = vadd.f32 %v3253_v4, %v2341_v3  ;;  %3534 = vmatpush3.bf16.msra.mxu0 %v3819_v0 }
  0xfd   :  { %3535 = vmatprep.subr.bf16.mxu0 %v3821_v6  ;;  %3556 = vmatpush3.bf16.msra.mxu1 %v3820_v8 }
  0xfe   :  { %3557 = vmatprep.subr.bf16.mxu1 %v3822_v10 }
 0x100   :  { %3536 = vmatpush3.bf16.msra.mxu0 %v3823_v11 }
 0x101   :  { %3558 = vmatpush3.bf16.msra.mxu1 %v3824_v13 }
 0x103   :  { %2899 = vmatmul.mubr.bf16.vlgmr.msra.gmra.mrb[28].mxu0 %v719_v12 }
 0x104   :  { %2939 = vmatmul.mubr.bf16.vlgmr.msra.gmra.mrb[28].mxu1 %v735_v14 }
 0x116   :  { %v3273_v15 = vpop.f32.mrb[4].mxu0 }
 0x117   :  { %v3274_v16 = vpop.f32.mrb[5].mxu0  ;;  %v3295_v17 = vpop.f32.mrb[4].mxu1 }
 0x118   :  { %v3275_v18 = vadd.f32 %v3274_v16, %v3273_v15  ;;  %v3276_v19 = vpop.f32.mrb[6].mxu0  ;;  %v3296_v20 = vpop.f32.mrb[5].mxu1 }
 0x119   :  { %v3277_v21 = vpop.f32.mrb[7].mxu0  ;;  %v3297_v35 = vadd.f32 %v3296_v20, %v3295_v17  ;;  %v3298_v23 = vpop.f32.mrb[6].mxu1 }
 0x11a   :  { %v2421_v22 = vadd.f32 %v3275_v18, %v2381_v9  ;;  %v3299_v24 = vpop.f32.mrb[7].mxu1 }
 0x11c   :  { %v2461_v25 = vadd.f32 %v3297_v35, %v2421_v22 }
 0x136   :  { %v3317_v26 = vpop.f32.mrb[8].mxu0 }
 0x137   :  { %v3318_v27 = vpop.f32.mrb[9].mxu0  ;;  %v3339_v28 = vpop.f32.mrb[8].mxu1 }
 0x138   :  { %v3319_v29 = vadd.f32 %v3318_v27, %v3317_v26  ;;  %v3320_v30 = vpop.f32.mrb[10].mxu0  ;;  %v3340_v31 = vpop.f32.mrb[9].mxu1 }
 0x139   :  { %v3321_v32 = vpop.f32.mrb[11].mxu0  ;;  %v3341_v34 = vadd.f32 %v3340_v31, %v3339_v28  ;;  %v3342_v36 = vpop.f32.mrb[10].mxu1 }
 0x13a   :  { %v2501_v33 = vadd.f32 %v3319_v29, %v2461_v25  ;;  %v3343_v37 = vpop.f32.mrb[11].mxu1 }
 0x13c   :  { %v2541_v38 = vadd.f32 %v3341_v34, %v2501_v33 }
 0x156   :  { %v3361_v39 = vpop.f32.mrb[12].mxu0 }
 0x157   :  { %v3362_v40 = vpop.f32.mrb[13].mxu0  ;;  %v3383_v41 = vpop.f32.mrb[12].mxu1 }
 0x158   :  { %v3363_v42 = vadd.f32 %v3362_v40, %v3361_v39  ;;  %v3364_v43 = vpop.f32.mrb[14].mxu0  ;;  %v3384_v44 = vpop.f32.mrb[13].mxu1 }
 0x159   :  { %v3365_v45 = vpop.f32.mrb[15].mxu0  ;;  %v3385_v47 = vadd.f32 %v3384_v44, %v3383_v41  ;;  %v3386_v48 = vpop.f32.mrb[14].mxu1 }
 0x15a   :  { %v2581_v46 = vadd.f32 %v3363_v42, %v2541_v38  ;;  %v3387_v49 = vpop.f32.mrb[15].mxu1 }
 0x15c   :  { %v2621_v50 = vadd.f32 %v3385_v47, %v2581_v46 }
 0x176   :  { %v3405_v51 = vpop.f32.mrb[16].mxu0 }
 0x177   :  { %v3406_v52 = vpop.f32.mrb[17].mxu0  ;;  %v3427_v53 = vpop.f32.mrb[16].mxu1 }
 0x178   :  { %v3407_v54 = vadd.f32 %v3406_v52, %v3405_v51  ;;  %v3408_v55 = vpop.f32.mrb[18].mxu0  ;;  %v3428_v56 = vpop.f32.mrb[17].mxu1 }
 0x179   :  { %v3409_v57 = vpop.f32.mrb[19].mxu0  ;;  %v3429_v59 = vadd.f32 %v3428_v56, %v3427_v53  ;;  %v3430_v60 = vpop.f32.mrb[18].mxu1 }
 0x17a   :  { %v2661_v58 = vadd.f32 %v3407_v54, %v2621_v50  ;;  %v3431_v61 = vpop.f32.mrb[19].mxu1 }
 0x17c   :  { %v2701_v62 = vadd.f32 %v3429_v59, %v2661_v58 }
 0x196   :  { %v3449_v63 = vpop.f32.mrb[20].mxu0 }
 0x197   :  { %v3450_v0 = vpop.f32.mrb[21].mxu0  ;;  %v3471_v1 = vpop.f32.mrb[20].mxu1 }
 0x198   :  { %v3451_v2 = vadd.f32 %v3450_v0, %v3449_v63  ;;  %v3452_v3 = vpop.f32.mrb[22].mxu0  ;;  %v3472_v4 = vpop.f32.mrb[21].mxu1 }
 0x199   :  { %v3453_v5 = vpop.f32.mrb[23].mxu0  ;;  %v3473_v7 = vadd.f32 %v3472_v4, %v3471_v1  ;;  %v3474_v8 = vpop.f32.mrb[22].mxu1 }
 0x19a   :  { %v2741_v6 = vadd.f32 %v3451_v2, %v2701_v62  ;;  %v3475_v9 = vpop.f32.mrb[23].mxu1 }
 0x19c   :  { %v2781_v10 = vadd.f32 %v3473_v7, %v2741_v6 }
 0x1b6   :  { %v3493_v11 = vpop.f32.mrb[24].mxu0 }
 0x1b7   :  { %v3494_v12 = vpop.f32.mrb[25].mxu0  ;;  %v3515_v13 = vpop.f32.mrb[24].mxu1 }
 0x1b8   :  { %v3495_v14 = vadd.f32 %v3494_v12, %v3493_v11  ;;  %v3496_v15 = vpop.f32.mrb[26].mxu0  ;;  %v3516_v16 = vpop.f32.mrb[25].mxu1 }
 0x1b9   :  { %v3497_v17 = vpop.f32.mrb[27].mxu0  ;;  %v3517_v19 = vadd.f32 %v3516_v16, %v3515_v13  ;;  %v3518_v20 = vpop.f32.mrb[26].mxu1 }
 0x1ba   :  { %v2821_v18 = vadd.f32 %v3495_v14, %v2781_v10  ;;  %v3519_v21 = vpop.f32.mrb[27].mxu1 }
 0x1bc   :  { %v2861_v22 = vadd.f32 %v3517_v19, %v2821_v18 }
 0x1d6   :  { %v3537_v35 = vpop.f32.mrb[28].mxu0 }
 0x1d7   :  { %v3538_v23 = vpop.f32.mrb[29].mxu0  ;;  %v3559_v24 = vpop.f32.mrb[28].mxu1 }
 0x1d8   :  { %v3539_v25 = vadd.f32 %v3538_v23, %v3537_v35  ;;  %v3540_v26 = vpop.f32.mrb[30].mxu0  ;;  %v3560_v27 = vpop.f32.mrb[29].mxu1 }
 0x1d9   :  { %v3541_v28 = vpop.f32.mrb[31].mxu0  ;;  %v3561_v30 = vadd.f32 %v3560_v27, %v3559_v24  ;;  %v3562_v31 = vpop.f32.mrb[30].mxu1 }
 0x1da   :  { %v2901_v29 = vadd.f32 %v3539_v25, %v2861_v22  ;;  %v3563_v32 = vpop.f32.mrb[31].mxu1 }
 0x1dc   :  { %v2941_v33 = vadd.f32 %v3561_v30, %v2901_v29 }
 0x1de   :  { %v2946_v34 = vsub.f32 0.0, %v2941_v33 }
 0x1e0   :  { %v2947_v36 = vmul.f32 1.442695, %v2946_v34 }
 0x1e2   :  { %3826 = vpow2.f32 %v2947_v36 }
 0x1ec   :  { %v3827_v37 = vpop.eup %3826 }
 0x1ed   :  { %v2949_v38 = vadd.f32 1.0, %v3827_v37 }
 0x1ef   :  { %3828 = vrcp.f32 %v2949_v38 }
 0x1f9   :  { %v3829_v39 = vpop.eup %3828 }
 0x1fa   :  { %2951 = vst [vmem:[%s4686_s3] sm:$0x3] %v3829_v39 }

</bundles_post_ra>
